<compile_context>
chip_gen: v7x
topology: tpu7x:2x2x1
jax: 0.10.0
libtpu: 0.0.40
codegen_flags: <defaults>
</compile_context>

<pallas_src>
import functools

import jax
import jax.numpy as jnp
import numpy as np
from jax.experimental import pallas as pl
from jax.experimental.pallas import tpu as pltpu


def _round_up(x, m):
    return (x + m - 1) // m * m


def _basic_block_kernel(xf_ref, mask_ref, w1_ref, sb1_ref, w2_ref, sb2_ref,
                        out_ref, y1f_ref, *, Wpa, Nv, H):
    """One batch sample per grid step.

    xf_ref : (Npad, Cin_p)   bf16 zero-padded, row-major flattened NHWC input
    mask_ref:(Nv, 1)         f32, 1.0 where the flattened column is a valid
                             output column (j % Wpa < W), 0.0 otherwise
    w1_ref : (9, Cin_p, Cout_p)  bf16 conv1 taps, tap k = ky*3 + kx
    sb1_ref: (2, Cout_p)     f32, row 0 = BN1 scale, row 1 = BN1 bias (folded)
    w2_ref : (9, Cout_p, Cout_p) bf16
    sb2_ref: (2, Cout_p)
    out_ref: (Nv, Cout_p)    f32 flattened output; row j = h*Wpa + w holds out(h, w)
    y1f_ref: (Npad, Cout_p)  bf16 VMEM scratch: zero-padded intermediate for conv2
    """
    cout = y1f_ref.shape[1]

    # Zero only the halo row bands of the scratch (top 2*Wpa rows, bottom 2*Wpa
    # rows). The interior [Wpa+1, (H+1)*Wpa+1) is fully overwritten below every
    # grid step, so this stays correct even when the batch axis is sharded
    # across TensorCores.
    zeros_halo = jnp.zeros((2 * Wpa, cout), y1f_ref.dtype)
    y1f_ref[pl.ds(0, 2 * Wpa), :] = zeros_halo
    y1f_ref[pl.ds((H + 1) * Wpa, 2 * Wpa), :] = zeros_halo

    # ---- conv1: 9 shifted bf16 matmuls on the MXU, f32 accumulation --------
    acc = jnp.zeros((Nv, cout), jnp.float32)
    for k in range(9):
        ky, kx = divmod(k, 3)
        patch = xf_ref[pl.ds(ky * Wpa + kx, Nv), :]              # (Nv, Cin_p) bf16
        acc = acc + jnp.dot(patch, w1_ref[k],
                            preferred_element_type=jnp.float32)

    # ---- BN1 (folded scale/bias, f32) + ReLU + padding-column mask ----------
    y1 = jnp.maximum(acc * sb1_ref[0:1, :] + sb1_ref[1:2, :], 0.0) * mask_ref[...]

    # Store the (already correctly zeroed) interior of the padded intermediate.
    y1f_ref[pl.ds(Wpa + 1, Nv), :] = y1.astype(y1f_ref.dtype)

    # ---- conv2: 9 shifted bf16 matmuls -------------------------------------
    acc2 = jnp.zeros((Nv, cout), jnp.float32)
    for k in range(9):
        ky, kx = divmod(k, 3)
        patch = y1f_ref[pl.ds(ky * Wpa + kx, Nv), :]             # (Nv, Cout_p) bf16
        acc2 = acc2 + jnp.dot(patch, w2_ref[k],
                              preferred_element_type=jnp.float32)

    # ---- BN2 + identity residual + ReLU (all f32) ---------------------------
    y2 = acc2 * sb2_ref[0:1, :] + sb2_ref[1:2, :]
    res = xf_ref[pl.ds(Wpa + 1, Nv), :].astype(jnp.float32)      # x at same pos
    out_ref[...] = jnp.maximum(y2 + res, 0.0).astype(out_ref.dtype)


def basic_block_forward(x, conv1_w, bn1_params, conv2_w, bn2_params,
                        stride=1, downsample=None, eps=1e-5):
    """JAX/Pallas equivalent of BasicBlock.forward (eval-mode BN).

    x        : (B, Cin, H, W) NCHW, like PyTorch
    conv1_w  : (Cout, Cin, 3, 3)   conv2_w : (Cout, Cout, 3, 3)
    bn*_params: (gamma, beta, running_mean, running_var), each (Cout,)
    """
    assert stride == 1 and downsample is None, \
        "TODO(synk): stride>1 / downsample path not implemented"
    B, Cin, H, W = x.shape
    Cout = conv1_w.shape[0]
    assert conv1_w.shape == (Cout, Cin, 3, 3)
    assert conv2_w.shape == (Cout, Cout, 3, 3)
    assert Cin == Cout, "identity residual requires inplanes == planes"

    LANE = 128
    Cin_p = _round_up(Cin, LANE)
    Cout_p = _round_up(Cout, LANE)
    Wpa = _round_up(W + 2, 8)          # padded width, sublane aligned
    Nv = H * Wpa                       # flattened output rows (multiple of 8)
    Npad = (H + 3) * Wpa               # flattened padded-input rows (1 top, 2 bottom)

    # Fold BN (inference mode) into per-channel scale / bias; pad channels.
    def fold(p):
        g, b, m, v = [jnp.asarray(t, jnp.float32) for t in p]
        s = g / jnp.sqrt(v + eps)
        sb = jnp.stack([s, b - m * s])                           # (2, Cout)
        return jnp.pad(sb, ((0, 0), (0, Cout_p - Cout)))
    sb1 = fold(bn1_params)
    sb2 = fold(bn2_params)

    # NCHW -> NHWC bf16, zero-pad (1 top, 2 bottom rows; 1 left, Wpa-W-1 right
    # cols; channels to Cin_p), flatten spatial row-major.
    x_nhwc = jnp.transpose(x, (0, 2, 3, 1)).astype(jnp.bfloat16)
    x_pad = jnp.pad(x_nhwc, ((0, 0), (1, 2), (1, Wpa - W - 1), (0, Cin_p - Cin)))
    xf = x_pad.reshape(B, Npad, Cin_p)

    # OIHW -> (kh*kw, Cin_p, Cout_p), bf16, zero-padded channels.
    def prep_w(w, cin, cin_p):
        w = jnp.transpose(w, (2, 3, 1, 0)).reshape(9, cin, Cout)
        w = jnp.pad(w, ((0, 0), (0, cin_p - cin), (0, Cout_p - Cout)))
        return w.astype(jnp.bfloat16)
    w1 = prep_w(conv1_w, Cin, Cin_p)
    w2 = prep_w(conv2_w, Cout, Cout_p)

    # Precomputed valid-output-column mask: 1 where (j % Wpa) < W.
    mask = ((jnp.arange(Nv, dtype=jnp.int32) % Wpa) < W).astype(jnp.float32)
    mask = mask.reshape(Nv, 1)

    kernel = functools.partial(_basic_block_kernel, Wpa=Wpa, Nv=Nv, H=H)

    # Advisory cost estimate + explicit VMEM budget for the per-step blocks.
    flops = 2 * B * H * W * 9 * (Cin * Cout + Cout * Cout)
    bytes_accessed = (xf.size * 2 + w1.size * 2 + w2.size * 2
                      + B * Nv * Cout_p * 4 + mask.size * 4)
    vmem_bytes = (2 * Npad * Cin_p * 2          # xf block, double-buffered bf16
                  + 2 * Nv * Cout_p * 4         # out block, double-buffered f32
                  + 2 * 9 * (Cin_p + Cout_p) * Cout_p * 2   # weights
                  + Npad * Cout_p * 2           # bf16 scratch
                  + 4 * Nv * Cout_p * 4)        # accumulator / temporaries headroom
    vmem_limit = int(min(max(vmem_bytes + (4 << 20), 32 << 20), 100 << 20))

    out_flat = pl.pallas_call(
        kernel,
        out_shape=jax.ShapeDtypeStruct((B, Nv, Cout_p), jnp.float32),
        grid=(B,),
        in_specs=[
            pl.BlockSpec((None, Npad, Cin_p), lambda b: (b, 0, 0)),
            pl.BlockSpec((Nv, 1), lambda b: (0, 0)),
            pl.BlockSpec((9, Cin_p, Cout_p), lambda b: (0, 0, 0)),
            pl.BlockSpec((2, Cout_p), lambda b: (0, 0)),
            pl.BlockSpec((9, Cout_p, Cout_p), lambda b: (0, 0, 0)),
            pl.BlockSpec((2, Cout_p), lambda b: (0, 0)),
        ],
        out_specs=pl.BlockSpec((None, Nv, Cout_p), lambda b: (b, 0, 0)),
        scratch_shapes=[pltpu.VMEM((Npad, Cout_p), jnp.bfloat16)],
        compiler_params=pltpu.CompilerParams(
            dimension_semantics=("parallel",),
            vmem_limit_bytes=vmem_limit),
        cost_estimate=pl.CostEstimate(
            flops=flops, transcendentals=0, bytes_accessed=bytes_accessed),
    )(xf, mask, w1, sb1, w2, sb2)

    # Row j = h*Wpa + w holds output (h, w); cols [W, Wpa) and channels
    # [Cout, Cout_p) are junk/padding — never expose the raw kernel output.
    out_nhwc = out_flat.reshape(B, H, Wpa, Cout_p)[:, :, :W, :Cout]
    return jnp.transpose(out_nhwc, (0, 3, 1, 2)).astype(x.dtype)


def _bn_ref(y, p, eps):
    g, b, m, v = p
    s = (g / jnp.sqrt(v + eps))[None, :, None, None]
    return (y - m[None, :, None, None]) * s + b[None, :, None, None]


def _ref_basic_block(x, w1, bn1, w2, bn2, eps=1e-5):
    """Pure-JAX f32 reference (eval-mode BN)."""
    dn = ("NCHW", "OIHW", "NCHW")
    y = jax.lax.conv_general_dilated(x, w1, (1, 1), "SAME", dimension_numbers=dn,
                                     precision=jax.lax.Precision.HIGHEST)
    y = jnp.maximum(_bn_ref(y, bn1, eps), 0.0)
    y = jax.lax.conv_general_dilated(y, w2, (1, 1), "SAME", dimension_numbers=dn,
                                     precision=jax.lax.Precision.HIGHEST)
    return jnp.maximum(_bn_ref(y, bn2, eps) + x, 0.0)


def _ref_basic_block_bf16(x, w1, bn1, w2, bn2, eps=1e-5):
    """Reference with the same bf16 input/weight/intermediate quantization as the kernel."""
    q = lambda t: t.astype(jnp.bfloat16).astype(jnp.float32)
    dn = ("NCHW", "OIHW", "NCHW")
    xq = q(x)
    y = jax.lax.conv_general_dilated(xq, q(w1), (1, 1), "SAME", dimension_numbers=dn,
                                     precision=jax.lax.Precision.HIGHEST)
    y = q(jnp.maximum(_bn_ref(y, bn1, eps), 0.0))
    y = jax.lax.conv_general_dilated(y, q(w2), (1, 1), "SAME", dimension_numbers=dn,
                                     precision=jax.lax.Precision.HIGHEST)
    return jnp.maximum(_bn_ref(y, bn2, eps) + xq, 0.0)


if __name__ == "__main__":
    key = jax.random.PRNGKey(0)
    keys = jax.random.split(key, 11)

    B, C, H, W = 2, 4, 16, 16
    x = jax.random.normal(keys[0], (B, C, H, W), dtype=jnp.float32)
    w1 = 0.2 * jax.random.normal(keys[1], (C, C, 3, 3), dtype=jnp.float32)
    w2 = 0.2 * jax.random.normal(keys[2], (C, C, 3, 3), dtype=jnp.float32)
    bn1 = (1.0 + 0.1 * jax.random.normal(keys[3], (C,), dtype=jnp.float32),
           0.1 * jax.random.normal(keys[4], (C,), dtype=jnp.float32),
           0.1 * jax.random.normal(keys[5], (C,), dtype=jnp.float32),
           0.5 + jnp.abs(jax.random.normal(keys[6], (C,), dtype=jnp.float32)))
    bn2 = (1.0 + 0.1 * jax.random.normal(keys[7], (C,), dtype=jnp.float32),
           0.1 * jax.random.normal(keys[8], (C,), dtype=jnp.float32),
           0.1 * jax.random.normal(keys[9], (C,), dtype=jnp.float32),
           0.5 + jnp.abs(jax.random.normal(keys[10], (C,), dtype=jnp.float32)))

    out = basic_block_forward(x, w1, bn1, w2, bn2)
    out = jax.block_until_ready(out)

    # Numerics-matched check (bf16 operands, f32 accumulation) — tight-ish.
    ref_bf16 = _ref_basic_block_bf16(x, w1, bn1, w2, bn2)
    np.testing.assert_allclose(np.asarray(out), np.asarray(ref_bf16),
                               rtol=1e-2, atol=1e-2)

    # Sanity check against the full-f32 module semantics (loose, bf16-induced error).
    ref_f32 = _ref_basic_block(x, w1, bn1, w2, bn2)
    np.testing.assert_allclose(np.asarray(out), np.asarray(ref_f32),
                               rtol=1e-1, atol=1e-1)

    print("KERNEL_OK")
</pallas_src>

<mosaic_0001>
module attributes {stable_mosaic.version = 11 : i64} {
  func.func @_basic_block_kernel(%arg0: i32, %arg1: memref<1x456x128xbf16, #tpu.memory_space<vmem>>, %arg2: memref<384x1xf32, #tpu.memory_space<vmem>>, %arg3: memref<9x128x128xbf16, #tpu.memory_space<vmem>>, %arg4: memref<2x128xf32, #tpu.memory_space<vmem>>, %arg5: memref<9x128x128xbf16, #tpu.memory_space<vmem>>, %arg6: memref<2x128xf32, #tpu.memory_space<vmem>>, %arg7: memref<1x384x128xf32, #tpu.memory_space<vmem>>, %arg8: memref<456x128xbf16, #tpu.memory_space<vmem>>) attributes {dimension_semantics = [#tpu.dimension_semantics<parallel>], iteration_bounds = array<i64: 2>, scalar_prefetch = 0 : i64, scratch_operands = 1 : i64, tpu.core_type = #tpu.core_type<tc>, window_params = [{transform_indices = @transform_0, window_bounds = array<i64: 1, 456, 128>}, {pipeline_mode = #tpu.pipeline_mode<synchronous>, transform_indices = @transform_1, window_bounds = array<i64: 384, 1>}, {pipeline_mode = #tpu.pipeline_mode<synchronous>, transform_indices = @transform_2, window_bounds = array<i64: 9, 128, 128>}, {pipeline_mode = #tpu.pipeline_mode<synchronous>, transform_indices = @transform_3, window_bounds = array<i64: 2, 128>}, {pipeline_mode = #tpu.pipeline_mode<synchronous>, transform_indices = @transform_4, window_bounds = array<i64: 9, 128, 128>}, {pipeline_mode = #tpu.pipeline_mode<synchronous>, transform_indices = @transform_5, window_bounds = array<i64: 2, 128>}, {transform_indices = @transform_6, window_bounds = array<i64: 1, 384, 128>}]} {
    %cst = arith.constant 0.000000e+00 : bf16
    %0 = vector.broadcast %cst : bf16 to vector<48x128xbf16>
    %c0 = arith.constant 0 : index
    %c0_0 = arith.constant 0 : index
    %1 = vector.load %arg8[%c0, %c0_0] : memref<456x128xbf16, #tpu.memory_space<vmem>>, vector<48x128xbf16>
    tpu.vector_store %arg8[%c0, %c0_0], %0 {strides = array<i32>} : memref<456x128xbf16, #tpu.memory_space<vmem>>, vector<48x128xbf16>,
    %c408 = arith.constant 408 : index
    %c0_1 = arith.constant 0 : index
    %2 = vector.load %arg8[%c408, %c0_1] : memref<456x128xbf16, #tpu.memory_space<vmem>>, vector<48x128xbf16>
    tpu.vector_store %arg8[%c408, %c0_1], %0 {strides = array<i32>} : memref<456x128xbf16, #tpu.memory_space<vmem>>, vector<48x128xbf16>,
    %cst_2 = arith.constant 0.000000e+00 : f32
    %3 = vector.broadcast %cst_2 : f32 to vector<384x128xf32>
    %c0_3 = arith.constant 0 : index
    %c0_4 = arith.constant 0 : index
    %c0_5 = arith.constant 0 : index
    %4 = vector.load %arg1[%c0_3, %c0_4, %c0_5] : memref<1x456x128xbf16, #tpu.memory_space<vmem>>, vector<1x384x128xbf16>
    %5 = vector.shape_cast %4 : vector<1x384x128xbf16> to vector<384x128xbf16>
    %c0_6 = arith.constant 0 : index
    %c0_7 = arith.constant 0 : index
    %c0_8 = arith.constant 0 : index
    %6 = vector.load %arg3[%c0_6, %c0_7, %c0_8] : memref<9x128x128xbf16, #tpu.memory_space<vmem>>, vector<1x128x128xbf16>
    %7 = vector.shape_cast %6 : vector<1x128x128xbf16> to vector<128x128xbf16>
    %cst_9 = arith.constant dense<0.000000e+00> : vector<384x128xf32>
    %8 = tpu.matmul %5, %7, %cst_9 {dimension_numbers = #tpu.dot_dimension_numbers<[1], [0], [0], [1], [0, 0, 1, 1], [], []>} : vector<384x128xbf16>, vector<128x128xbf16>, vector<384x128xf32> -> vector<384x128xf32>
    %9 = arith.addf %3, %8 : vector<384x128xf32>
    %c0_10 = arith.constant 0 : index
    %c1 = arith.constant 1 : index
    %c0_11 = arith.constant 0 : index
    %10 = vector.load %arg1[%c0_10, %c1, %c0_11] : memref<1x456x128xbf16, #tpu.memory_space<vmem>>, vector<1x384x128xbf16>
    %11 = vector.shape_cast %10 : vector<1x384x128xbf16> to vector<384x128xbf16>
    %c1_12 = arith.constant 1 : index
    %c0_13 = arith.constant 0 : index
    %c0_14 = arith.constant 0 : index
    %12 = vector.load %arg3[%c1_12, %c0_13, %c0_14] : memref<9x128x128xbf16, #tpu.memory_space<vmem>>, vector<1x128x128xbf16>
    %13 = vector.shape_cast %12 : vector<1x128x128xbf16> to vector<128x128xbf16>
    %cst_15 = arith.constant dense<0.000000e+00> : vector<384x128xf32>
    %14 = tpu.matmul %11, %13, %cst_15 {dimension_numbers = #tpu.dot_dimension_numbers<[1], [0], [0], [1], [0, 0, 1, 1], [], []>} : vector<384x128xbf16>, vector<128x128xbf16>, vector<384x128xf32> -> vector<384x128xf32>
    %15 = arith.addf %9, %14 : vector<384x128xf32>
    %c0_16 = arith.constant 0 : index
    %c2 = arith.constant 2 : index
    %c0_17 = arith.constant 0 : index
    %16 = vector.load %arg1[%c0_16, %c2, %c0_17] : memref<1x456x128xbf16, #tpu.memory_space<vmem>>, vector<1x384x128xbf16>
    %17 = vector.shape_cast %16 : vector<1x384x128xbf16> to vector<384x128xbf16>
    %c2_18 = arith.constant 2 : index
    %c0_19 = arith.constant 0 : index
    %c0_20 = arith.constant 0 : index
    %18 = vector.load %arg3[%c2_18, %c0_19, %c0_20] : memref<9x128x128xbf16, #tpu.memory_space<vmem>>, vector<1x128x128xbf16>
    %19 = vector.shape_cast %18 : vector<1x128x128xbf16> to vector<128x128xbf16>
    %cst_21 = arith.constant dense<0.000000e+00> : vector<384x128xf32>
    %20 = tpu.matmul %17, %19, %cst_21 {dimension_numbers = #tpu.dot_dimension_numbers<[1], [0], [0], [1], [0, 0, 1, 1], [], []>} : vector<384x128xbf16>, vector<128x128xbf16>, vector<384x128xf32> -> vector<384x128xf32>
    %21 = arith.addf %15, %20 : vector<384x128xf32>
    %c0_22 = arith.constant 0 : index
    %c24 = arith.constant 24 : index
    %c0_23 = arith.constant 0 : index
    %22 = vector.load %arg1[%c0_22, %c24, %c0_23] : memref<1x456x128xbf16, #tpu.memory_space<vmem>>, vector<1x384x128xbf16>
    %23 = vector.shape_cast %22 : vector<1x384x128xbf16> to vector<384x128xbf16>
    %c3 = arith.constant 3 : index
    %c0_24 = arith.constant 0 : index
    %c0_25 = arith.constant 0 : index
    %24 = vector.load %arg3[%c3, %c0_24, %c0_25] : memref<9x128x128xbf16, #tpu.memory_space<vmem>>, vector<1x128x128xbf16>
    %25 = vector.shape_cast %24 : vector<1x128x128xbf16> to vector<128x128xbf16>
    %cst_26 = arith.constant dense<0.000000e+00> : vector<384x128xf32>
    %26 = tpu.matmul %23, %25, %cst_26 {dimension_numbers = #tpu.dot_dimension_numbers<[1], [0], [0], [1], [0, 0, 1, 1], [], []>} : vector<384x128xbf16>, vector<128x128xbf16>, vector<384x128xf32> -> vector<384x128xf32>
    %27 = arith.addf %21, %26 : vector<384x128xf32>
    %c0_27 = arith.constant 0 : index
    %c25 = arith.constant 25 : index
    %c0_28 = arith.constant 0 : index
    %28 = vector.load %arg1[%c0_27, %c25, %c0_28] : memref<1x456x128xbf16, #tpu.memory_space<vmem>>, vector<1x384x128xbf16>
    %29 = vector.shape_cast %28 : vector<1x384x128xbf16> to vector<384x128xbf16>
    %c4 = arith.constant 4 : index
    %c0_29 = arith.constant 0 : index
    %c0_30 = arith.constant 0 : index
    %30 = vector.load %arg3[%c4, %c0_29, %c0_30] : memref<9x128x128xbf16, #tpu.memory_space<vmem>>, vector<1x128x128xbf16>
    %31 = vector.shape_cast %30 : vector<1x128x128xbf16> to vector<128x128xbf16>
    %cst_31 = arith.constant dense<0.000000e+00> : vector<384x128xf32>
    %32 = tpu.matmul %29, %31, %cst_31 {dimension_numbers = #tpu.dot_dimension_numbers<[1], [0], [0], [1], [0, 0, 1, 1], [], []>} : vector<384x128xbf16>, vector<128x128xbf16>, vector<384x128xf32> -> vector<384x128xf32>
    %33 = arith.addf %27, %32 : vector<384x128xf32>
    %c0_32 = arith.constant 0 : index
    %c26 = arith.constant 26 : index
    %c0_33 = arith.constant 0 : index
    %34 = vector.load %arg1[%c0_32, %c26, %c0_33] : memref<1x456x128xbf16, #tpu.memory_space<vmem>>, vector<1x384x128xbf16>
    %35 = vector.shape_cast %34 : vector<1x384x128xbf16> to vector<384x128xbf16>
    %c5 = arith.constant 5 : index
    %c0_34 = arith.constant 0 : index
    %c0_35 = arith.constant 0 : index
    %36 = vector.load %arg3[%c5, %c0_34, %c0_35] : memref<9x128x128xbf16, #tpu.memory_space<vmem>>, vector<1x128x128xbf16>
    %37 = vector.shape_cast %36 : vector<1x128x128xbf16> to vector<128x128xbf16>
    %cst_36 = arith.constant dense<0.000000e+00> : vector<384x128xf32>
    %38 = tpu.matmul %35, %37, %cst_36 {dimension_numbers = #tpu.dot_dimension_numbers<[1], [0], [0], [1], [0, 0, 1, 1], [], []>} : vector<384x128xbf16>, vector<128x128xbf16>, vector<384x128xf32> -> vector<384x128xf32>
    %39 = arith.addf %33, %38 : vector<384x128xf32>
    %c0_37 = arith.constant 0 : index
    %c48 = arith.constant 48 : index
    %c0_38 = arith.constant 0 : index
    %40 = vector.load %arg1[%c0_37, %c48, %c0_38] : memref<1x456x128xbf16, #tpu.memory_space<vmem>>, vector<1x384x128xbf16>
    %41 = vector.shape_cast %40 : vector<1x384x128xbf16> to vector<384x128xbf16>
    %c6 = arith.constant 6 : index
    %c0_39 = arith.constant 0 : index
    %c0_40 = arith.constant 0 : index
    %42 = vector.load %arg3[%c6, %c0_39, %c0_40] : memref<9x128x128xbf16, #tpu.memory_space<vmem>>, vector<1x128x128xbf16>
    %43 = vector.shape_cast %42 : vector<1x128x128xbf16> to vector<128x128xbf16>
    %cst_41 = arith.constant dense<0.000000e+00> : vector<384x128xf32>
    %44 = tpu.matmul %41, %43, %cst_41 {dimension_numbers = #tpu.dot_dimension_numbers<[1], [0], [0], [1], [0, 0, 1, 1], [], []>} : vector<384x128xbf16>, vector<128x128xbf16>, vector<384x128xf32> -> vector<384x128xf32>
    %45 = arith.addf %39, %44 : vector<384x128xf32>
    %c0_42 = arith.constant 0 : index
    %c49 = arith.constant 49 : index
    %c0_43 = arith.constant 0 : index
    %46 = vector.load %arg1[%c0_42, %c49, %c0_43] : memref<1x456x128xbf16, #tpu.memory_space<vmem>>, vector<1x384x128xbf16>
    %47 = vector.shape_cast %46 : vector<1x384x128xbf16> to vector<384x128xbf16>
    %c7 = arith.constant 7 : index
    %c0_44 = arith.constant 0 : index
    %c0_45 = arith.constant 0 : index
    %48 = vector.load %arg3[%c7, %c0_44, %c0_45] : memref<9x128x128xbf16, #tpu.memory_space<vmem>>, vector<1x128x128xbf16>
    %49 = vector.shape_cast %48 : vector<1x128x128xbf16> to vector<128x128xbf16>
    %cst_46 = arith.constant dense<0.000000e+00> : vector<384x128xf32>
    %50 = tpu.matmul %47, %49, %cst_46 {dimension_numbers = #tpu.dot_dimension_numbers<[1], [0], [0], [1], [0, 0, 1, 1], [], []>} : vector<384x128xbf16>, vector<128x128xbf16>, vector<384x128xf32> -> vector<384x128xf32>
    %51 = arith.addf %45, %50 : vector<384x128xf32>
    %c0_47 = arith.constant 0 : index
    %c50 = arith.constant 50 : index
    %c0_48 = arith.constant 0 : index
    %52 = vector.load %arg1[%c0_47, %c50, %c0_48] : memref<1x456x128xbf16, #tpu.memory_space<vmem>>, vector<1x384x128xbf16>
    %53 = vector.shape_cast %52 : vector<1x384x128xbf16> to vector<384x128xbf16>
    %c8 = arith.constant 8 : index
    %c0_49 = arith.constant 0 : index
    %c0_50 = arith.constant 0 : index
    %54 = vector.load %arg3[%c8, %c0_49, %c0_50] : memref<9x128x128xbf16, #tpu.memory_space<vmem>>, vector<1x128x128xbf16>
    %55 = vector.shape_cast %54 : vector<1x128x128xbf16> to vector<128x128xbf16>
    %cst_51 = arith.constant dense<0.000000e+00> : vector<384x128xf32>
    %56 = tpu.matmul %53, %55, %cst_51 {dimension_numbers = #tpu.dot_dimension_numbers<[1], [0], [0], [1], [0, 0, 1, 1], [], []>} : vector<384x128xbf16>, vector<128x128xbf16>, vector<384x128xf32> -> vector<384x128xf32>
    %57 = arith.addf %51, %56 : vector<384x128xf32>
    %c0_52 = arith.constant 0 : index
    %c0_53 = arith.constant 0 : index
    %58 = vector.load %arg4[%c0_52, %c0_53] : memref<2x128xf32, #tpu.memory_space<vmem>>, vector<1x128xf32>
    %59 = vector.broadcast %58 : vector<1x128xf32> to vector<384x128xf32>
    %60 = arith.mulf %57, %59 : vector<384x128xf32>
    %c1_54 = arith.constant 1 : index
    %c0_55 = arith.constant 0 : index
    %61 = vector.load %arg4[%c1_54, %c0_55] : memref<2x128xf32, #tpu.memory_space<vmem>>, vector<1x128xf32>
    %62 = vector.broadcast %61 : vector<1x128xf32> to vector<384x128xf32>
    %63 = arith.addf %60, %62 : vector<384x128xf32>
    %cst_56 = arith.constant 0.000000e+00 : f32
    %64 = vector.broadcast %cst_56 : f32 to vector<384x128xf32>
    %65 = arith.maximumf %63, %64 : vector<384x128xf32>
    %c0_57 = arith.constant 0 : index
    %c0_58 = arith.constant 0 : index
    %66 = vector.load %arg2[%c0_57, %c0_58] : memref<384x1xf32, #tpu.memory_space<vmem>>, vector<384x1xf32>
    %67 = vector.broadcast %66 : vector<384x1xf32> to vector<384x128xf32>
    %68 = arith.mulf %65, %67 : vector<384x128xf32>
    %69 = arith.truncf %68 : vector<384x128xf32> to vector<384x128xbf16>
    %c25_59 = arith.constant 25 : index
    %c0_60 = arith.constant 0 : index
    %70 = vector.load %arg8[%c25_59, %c0_60] : memref<456x128xbf16, #tpu.memory_space<vmem>>, vector<384x128xbf16>
    tpu.vector_store %arg8[%c25_59, %c0_60], %69 {strides = array<i32>} : memref<456x128xbf16, #tpu.memory_space<vmem>>, vector<384x128xbf16>,
    %cst_61 = arith.constant 0.000000e+00 : f32
    %71 = vector.broadcast %cst_61 : f32 to vector<384x128xf32>
    %c0_62 = arith.constant 0 : index
    %c0_63 = arith.constant 0 : index
    %72 = vector.load %arg8[%c0_62, %c0_63] : memref<456x128xbf16, #tpu.memory_space<vmem>>, vector<384x128xbf16>
    %c0_64 = arith.constant 0 : index
    %c0_65 = arith.constant 0 : index
    %c0_66 = arith.constant 0 : index
    %73 = vector.load %arg5[%c0_64, %c0_65, %c0_66] : memref<9x128x128xbf16, #tpu.memory_space<vmem>>, vector<1x128x128xbf16>
    %74 = vector.shape_cast %73 : vector<1x128x128xbf16> to vector<128x128xbf16>
    %cst_67 = arith.constant dense<0.000000e+00> : vector<384x128xf32>
    %75 = tpu.matmul %72, %74, %cst_67 {dimension_numbers = #tpu.dot_dimension_numbers<[1], [0], [0], [1], [0, 0, 1, 1], [], []>} : vector<384x128xbf16>, vector<128x128xbf16>, vector<384x128xf32> -> vector<384x128xf32>
    %76 = arith.addf %71, %75 : vector<384x128xf32>
    %c1_68 = arith.constant 1 : index
    %c0_69 = arith.constant 0 : index
    %77 = vector.load %arg8[%c1_68, %c0_69] : memref<456x128xbf16, #tpu.memory_space<vmem>>, vector<384x128xbf16>
    %c1_70 = arith.constant 1 : index
    %c0_71 = arith.constant 0 : index
    %c0_72 = arith.constant 0 : index
    %78 = vector.load %arg5[%c1_70, %c0_71, %c0_72] : memref<9x128x128xbf16, #tpu.memory_space<vmem>>, vector<1x128x128xbf16>
    %79 = vector.shape_cast %78 : vector<1x128x128xbf16> to vector<128x128xbf16>
    %cst_73 = arith.constant dense<0.000000e+00> : vector<384x128xf32>
    %80 = tpu.matmul %77, %79, %cst_73 {dimension_numbers = #tpu.dot_dimension_numbers<[1], [0], [0], [1], [0, 0, 1, 1], [], []>} : vector<384x128xbf16>, vector<128x128xbf16>, vector<384x128xf32> -> vector<384x128xf32>
    %81 = arith.addf %76, %80 : vector<384x128xf32>
    %c2_74 = arith.constant 2 : index
    %c0_75 = arith.constant 0 : index
    %82 = vector.load %arg8[%c2_74, %c0_75] : memref<456x128xbf16, #tpu.memory_space<vmem>>, vector<384x128xbf16>
    %c2_76 = arith.constant 2 : index
    %c0_77 = arith.constant 0 : index
    %c0_78 = arith.constant 0 : index
    %83 = vector.load %arg5[%c2_76, %c0_77, %c0_78] : memref<9x128x128xbf16, #tpu.memory_space<vmem>>, vector<1x128x128xbf16>
    %84 = vector.shape_cast %83 : vector<1x128x128xbf16> to vector<128x128xbf16>
    %cst_79 = arith.constant dense<0.000000e+00> : vector<384x128xf32>
    %85 = tpu.matmul %82, %84, %cst_79 {dimension_numbers = #tpu.dot_dimension_numbers<[1], [0], [0], [1], [0, 0, 1, 1], [], []>} : vector<384x128xbf16>, vector<128x128xbf16>, vector<384x128xf32> -> vector<384x128xf32>
    %86 = arith.addf %81, %85 : vector<384x128xf32>
    %c24_80 = arith.constant 24 : index
    %c0_81 = arith.constant 0 : index
    %87 = vector.load %arg8[%c24_80, %c0_81] : memref<456x128xbf16, #tpu.memory_space<vmem>>, vector<384x128xbf16>
    %c3_82 = arith.constant 3 : index
    %c0_83 = arith.constant 0 : index
    %c0_84 = arith.constant 0 : index
    %88 = vector.load %arg5[%c3_82, %c0_83, %c0_84] : memref<9x128x128xbf16, #tpu.memory_space<vmem>>, vector<1x128x128xbf16>
    %89 = vector.shape_cast %88 : vector<1x128x128xbf16> to vector<128x128xbf16>
    %cst_85 = arith.constant dense<0.000000e+00> : vector<384x128xf32>
    %90 = tpu.matmul %87, %89, %cst_85 {dimension_numbers = #tpu.dot_dimension_numbers<[1], [0], [0], [1], [0, 0, 1, 1], [], []>} : vector<384x128xbf16>, vector<128x128xbf16>, vector<384x128xf32> -> vector<384x128xf32>
    %91 = arith.addf %86, %90 : vector<384x128xf32>
    %c25_86 = arith.constant 25 : index
    %c0_87 = arith.constant 0 : index
    %92 = vector.load %arg8[%c25_86, %c0_87] : memref<456x128xbf16, #tpu.memory_space<vmem>>, vector<384x128xbf16>
    %c4_88 = arith.constant 4 : index
    %c0_89 = arith.constant 0 : index
    %c0_90 = arith.constant 0 : index
    %93 = vector.load %arg5[%c4_88, %c0_89, %c0_90] : memref<9x128x128xbf16, #tpu.memory_space<vmem>>, vector<1x128x128xbf16>
    %94 = vector.shape_cast %93 : vector<1x128x128xbf16> to vector<128x128xbf16>
    %cst_91 = arith.constant dense<0.000000e+00> : vector<384x128xf32>
    %95 = tpu.matmul %92, %94, %cst_91 {dimension_numbers = #tpu.dot_dimension_numbers<[1], [0], [0], [1], [0, 0, 1, 1], [], []>} : vector<384x128xbf16>, vector<128x128xbf16>, vector<384x128xf32> -> vector<384x128xf32>
    %96 = arith.addf %91, %95 : vector<384x128xf32>
    %c26_92 = arith.constant 26 : index
    %c0_93 = arith.constant 0 : index
    %97 = vector.load %arg8[%c26_92, %c0_93] : memref<456x128xbf16, #tpu.memory_space<vmem>>, vector<384x128xbf16>
    %c5_94 = arith.constant 5 : index
    %c0_95 = arith.constant 0 : index
    %c0_96 = arith.constant 0 : index
    %98 = vector.load %arg5[%c5_94, %c0_95, %c0_96] : memref<9x128x128xbf16, #tpu.memory_space<vmem>>, vector<1x128x128xbf16>
    %99 = vector.shape_cast %98 : vector<1x128x128xbf16> to vector<128x128xbf16>
    %cst_97 = arith.constant dense<0.000000e+00> : vector<384x128xf32>
    %100 = tpu.matmul %97, %99, %cst_97 {dimension_numbers = #tpu.dot_dimension_numbers<[1], [0], [0], [1], [0, 0, 1, 1], [], []>} : vector<384x128xbf16>, vector<128x128xbf16>, vector<384x128xf32> -> vector<384x128xf32>
    %101 = arith.addf %96, %100 : vector<384x128xf32>
    %c48_98 = arith.constant 48 : index
    %c0_99 = arith.constant 0 : index
    %102 = vector.load %arg8[%c48_98, %c0_99] : memref<456x128xbf16, #tpu.memory_space<vmem>>, vector<384x128xbf16>
    %c6_100 = arith.constant 6 : index
    %c0_101 = arith.constant 0 : index
    %c0_102 = arith.constant 0 : index
    %103 = vector.load %arg5[%c6_100, %c0_101, %c0_102] : memref<9x128x128xbf16, #tpu.memory_space<vmem>>, vector<1x128x128xbf16>
    %104 = vector.shape_cast %103 : vector<1x128x128xbf16> to vector<128x128xbf16>
    %cst_103 = arith.constant dense<0.000000e+00> : vector<384x128xf32>
    %105 = tpu.matmul %102, %104, %cst_103 {dimension_numbers = #tpu.dot_dimension_numbers<[1], [0], [0], [1], [0, 0, 1, 1], [], []>} : vector<384x128xbf16>, vector<128x128xbf16>, vector<384x128xf32> -> vector<384x128xf32>
    %106 = arith.addf %101, %105 : vector<384x128xf32>
    %c49_104 = arith.constant 49 : index
    %c0_105 = arith.constant 0 : index
    %107 = vector.load %arg8[%c49_104, %c0_105] : memref<456x128xbf16, #tpu.memory_space<vmem>>, vector<384x128xbf16>
    %c7_106 = arith.constant 7 : index
    %c0_107 = arith.constant 0 : index
    %c0_108 = arith.constant 0 : index
    %108 = vector.load %arg5[%c7_106, %c0_107, %c0_108] : memref<9x128x128xbf16, #tpu.memory_space<vmem>>, vector<1x128x128xbf16>
    %109 = vector.shape_cast %108 : vector<1x128x128xbf16> to vector<128x128xbf16>
    %cst_109 = arith.constant dense<0.000000e+00> : vector<384x128xf32>
    %110 = tpu.matmul %107, %109, %cst_109 {dimension_numbers = #tpu.dot_dimension_numbers<[1], [0], [0], [1], [0, 0, 1, 1], [], []>} : vector<384x128xbf16>, vector<128x128xbf16>, vector<384x128xf32> -> vector<384x128xf32>
    %111 = arith.addf %106, %110 : vector<384x128xf32>
    %c50_110 = arith.constant 50 : index
    %c0_111 = arith.constant 0 : index
    %112 = vector.load %arg8[%c50_110, %c0_111] : memref<456x128xbf16, #tpu.memory_space<vmem>>, vector<384x128xbf16>
    %c8_112 = arith.constant 8 : index
    %c0_113 = arith.constant 0 : index
    %c0_114 = arith.constant 0 : index
    %113 = vector.load %arg5[%c8_112, %c0_113, %c0_114] : memref<9x128x128xbf16, #tpu.memory_space<vmem>>, vector<1x128x128xbf16>
    %114 = vector.shape_cast %113 : vector<1x128x128xbf16> to vector<128x128xbf16>
    %cst_115 = arith.constant dense<0.000000e+00> : vector<384x128xf32>
    %115 = tpu.matmul %112, %114, %cst_115 {dimension_numbers = #tpu.dot_dimension_numbers<[1], [0], [0], [1], [0, 0, 1, 1], [], []>} : vector<384x128xbf16>, vector<128x128xbf16>, vector<384x128xf32> -> vector<384x128xf32>
    %116 = arith.addf %111, %115 : vector<384x128xf32>
    %c0_116 = arith.constant 0 : index
    %c0_117 = arith.constant 0 : index
    %117 = vector.load %arg6[%c0_116, %c0_117] : memref<2x128xf32, #tpu.memory_space<vmem>>, vector<1x128xf32>
    %118 = vector.broadcast %117 : vector<1x128xf32> to vector<384x128xf32>
    %119 = arith.mulf %116, %118 : vector<384x128xf32>
    %c1_118 = arith.constant 1 : index
    %c0_119 = arith.constant 0 : index
    %120 = vector.load %arg6[%c1_118, %c0_119] : memref<2x128xf32, #tpu.memory_space<vmem>>, vector<1x128xf32>
    %121 = vector.broadcast %120 : vector<1x128xf32> to vector<384x128xf32>
    %122 = arith.addf %119, %121 : vector<384x128xf32>
    %c0_120 = arith.constant 0 : index
    %c25_121 = arith.constant 25 : index
    %c0_122 = arith.constant 0 : index
    %123 = vector.load %arg1[%c0_120, %c25_121, %c0_122] : memref<1x456x128xbf16, #tpu.memory_space<vmem>>, vector<1x384x128xbf16>
    %124 = vector.shape_cast %123 : vector<1x384x128xbf16> to vector<384x128xbf16>
    %125 = arith.extf %124 : vector<384x128xbf16> to vector<384x128xf32>
    %126 = arith.addf %122, %125 : vector<384x128xf32>
    %cst_123 = arith.constant 0.000000e+00 : f32
    %127 = vector.broadcast %cst_123 : f32 to vector<384x128xf32>
    %128 = arith.maximumf %126, %127 : vector<384x128xf32>
    %c0_124 = arith.constant 0 : index
    %c0_125 = arith.constant 0 : index
    %c0_126 = arith.constant 0 : index
    %129 = vector.load %arg7[%c0_124, %c0_125, %c0_126] : memref<1x384x128xf32, #tpu.memory_space<vmem>>, vector<1x384x128xf32>
    %130 = vector.shape_cast %129 : vector<1x384x128xf32> to vector<384x128xf32>
    %131 = vector.shape_cast %128 : vector<384x128xf32> to vector<1x384x128xf32>
    tpu.vector_store %arg7[%c0_124, %c0_125, %c0_126], %131 {strides = array<i32>} : memref<1x384x128xf32, #tpu.memory_space<vmem>>, vector<1x384x128xf32>,
    return
  }
  func.func @transform_0(%arg0: i32) -> (i32, i32, i32) {
    %c0_i32 = arith.constant 0 : i32
    %c0_i32_0 = arith.constant 0 : i32
    %c0_i32_1 = arith.constant 0 : i32
    return %arg0, %c0_i32, %c0_i32_0 : i32, i32, i32
  }
  func.func @transform_1(%arg0: i32) -> (i32, i32) {
    %c0_i32 = arith.constant 0 : i32
    %c0_i32_0 = arith.constant 0 : i32
    %c0_i32_1 = arith.constant 0 : i32
    return %c0_i32, %c0_i32_0 : i32, i32
  }
  func.func @transform_2(%arg0: i32) -> (i32, i32, i32) {
    %c0_i32 = arith.constant 0 : i32
    %c0_i32_0 = arith.constant 0 : i32
    %c0_i32_1 = arith.constant 0 : i32
    %c0_i32_2 = arith.constant 0 : i32
    return %c0_i32, %c0_i32_0, %c0_i32_1 : i32, i32, i32
  }
  func.func @transform_3(%arg0: i32) -> (i32, i32) {
    %c0_i32 = arith.constant 0 : i32
    %c0_i32_0 = arith.constant 0 : i32
    %c0_i32_1 = arith.constant 0 : i32
    return %c0_i32, %c0_i32_0 : i32, i32
  }
  func.func @transform_4(%arg0: i32) -> (i32, i32, i32) {
    %c0_i32 = arith.constant 0 : i32
    %c0_i32_0 = arith.constant 0 : i32
    %c0_i32_1 = arith.constant 0 : i32
    %c0_i32_2 = arith.constant 0 : i32
    return %c0_i32, %c0_i32_0, %c0_i32_1 : i32, i32, i32
  }
  func.func @transform_5(%arg0: i32) -> (i32, i32) {
    %c0_i32 = arith.constant 0 : i32
    %c0_i32_0 = arith.constant 0 : i32
    %c0_i32_1 = arith.constant 0 : i32
    return %c0_i32, %c0_i32_0 : i32, i32
  }
  func.func @transform_6(%arg0: i32) -> (i32, i32, i32) {
    %c0_i32 = arith.constant 0 : i32
    %c0_i32_0 = arith.constant 0 : i32
    %c0_i32_1 = arith.constant 0 : i32
    return %arg0, %c0_i32, %c0_i32_0 : i32, i32, i32
  }
}

</mosaic_0001>

<bundles_post_ra>
// kernel: tpu_custom_call.1
= control target key start
LH: loop header
LB: loop body
LE: loop exit
PB: predicated region body
PF: predicated region fallthrough
CT: control target
= control target key end

     0   :  { %11 = vsyncpa [#allocation4], 0  ;;  %s17831_s0 = inlined_call_operand.hbm [shape: bf16[2,456,128], index: 0, kind: input, shape index: {}]   ;;  %s17832_s1 = inlined_call_operand.vmem [shape: f32[384,1], index: 1, kind: input, shape index: {}]   ;;  %s17833_s2 = inlined_call_operand.hbm [shape: bf16[9,128,128], index: 2, kind: input, shape index: {}]   ;;  %s17834_s3 = inlined_call_operand.vmem [shape: f32[2,128], index: 3, kind: input, shape index: {}]   ;;  %s17835_s4 = inlined_call_operand.hbm [shape: bf16[9,128,128], index: 4, kind: input, shape index: {}]   ;;  %s17836_s5 = inlined_call_operand.vmem [shape: f32[2,128], index: 5, kind: input, shape index: {}]   ;;  %s17837_s6 = inlined_call_operand.hbm [shape: f32[2,384,128], index: 6, kind: output, shape index: {}]  }
   0x1   :  { %13 = vsyncpa [#allocation4 + $0x1], 0 }
   0x2   :  { %14 = vsyncpa [#allocation7], 0 }
   0x3   :  { %15 = vsyncpa [#allocation5], 0 }
   0x4   :  { %17 = vsyncpa [#allocation5 + $0x1], 0  ;;  %s15517_s21 = smov 0   ;;  %s15519_s22 = smov 0  }
   0x5   :  { %s15521_s23 = smov 0   ;;  %s15523_s24 = smov 0  }
   0x6 LB: > { %s15538_s25 = sadd.s32 4294967295, %s15471_s24   ;;  %s11658_s26 = sadd.s32 4294967294, %s15471_s24   ;;  %s15471_s24 = sphi %s15523_s24, %s17962_s24   ;;  %s15467_s23 = sphi %s15521_s23, %s17961_s23   ;;  %s15463_s22 = sphi %s15519_s22, %s17960_s22   ;;  %s15459_s21 = sphi %s15517_s21, %s17959_s21  }
   0x7   : > { %p43_p0 = scmp.ne.s32.totalorder %s15463_s22, %s15459_s21  ;;  %p17838_p1 = scmp.eq.s32.totalorder %s15538_s25, 0 }
   0x8   : > { %p178_p3 = scmp.eq.s32.totalorder %s11658_s26, 1  ;;  %p11659_p5 = scmp.ge.s32.totalorder %s15471_s24, 1 }
   0x9   : > { %p15547_p4 = por %p17838_p1, %p43_p0  ;;  %p185_p7 = scmp.lt.s32.totalorder %s15471_s24, 3 }
   0xa   : > { %p15552_p6 = por %p178_p3, %p43_p0  ;;  %s15473_s30 = smov [#allocation6]  }
   0xb   : > { %s17860_s27 = scalar_select %p15547_p4, 1, 0 }
   0xc   : > { %s17861_s28 = scalar_select %p15552_p6, 1, 0 }
   0xd   : > { %p15557_p8 = pnand %p11659_p5, %p185_p7  ;;  %s200_s7 = sshll.u32 %s15473_s30, 4  ;;  %s15561_s7 = int_to_ptr.vmem [resolvable:$true] %s200_s7 }
   0xe   : > { %s15474_s9 = smov [#allocation8]   ;;  %s15315_s13 = scalar_lea.hbm %s17833_s2, 9216 }
   0xf   : > { %p14794_p9 = pneg %p15557_p8  ;;  %s216_s10 = sshll.u32 %s15474_s9, 4  ;;  %s15572_s10 = int_to_ptr.vmem [resolvable:$true] %s216_s10 }
  0x10   : > { %p15316_p12 = scmp.ne.s32.totalorder %s17833_s2, %s15315_s13  ;;  %p15322_p5 = scmp.lt.u32.totalorder %s15315_s13, %s17833_s2 }
  0x11   : > { %p15568_p11 = pnand %p14794_p9, %p17838_p1 }
  0x13   : > { %p15317_p13 = pneg %p15568_p11 }
  0x15   : > { %p15318_p0 = pnand %p15317_p13, %p15316_p12 }
  0x17   : > { %p15319_p3 = pneg %p15318_p0 }
  0x19   : > { %p15324_p7 = pnand %p15322_p5, %p15319_p3 }
  0x1b   : > { %15327 = shalt.err (!%p15324_p7)
}
  0x1c   : > { %s15328_s18 = scalar_lea.vmem %s15561_s7, 9216  ;;  %p15336_p2 = scmp.lt.s32.totalorder %s15561_s7, %s15561_s7 }
  0x1d   : > { %p15329_p9 = scmp.ne.s32.totalorder %s15561_s7, %s15328_s18  ;;  %p15337_p12 = scmp.lt.s32.totalorder %s15328_s18, %s15328_s18 }
  0x1f   : > { %p15331_p10 = pnand %p15329_p9, %p15317_p13  ;;  %p15338_p0 = por %p15337_p12, %p15336_p2 }
  0x21   : > { %p15332_p1 = pneg %p15331_p10 }
  0x23   : > { %p15339_p6 = pnand %p15338_p0, %p15332_p1 }
  0x25   : > { %15342 = shalt.err (!%p15339_p6)
}
  0x26   : > { %s17839_s19 = smov 64   ;;  %s17840_s20 = smov 4  }
  0x27   : > { %14797 = dma.hbm_to_vmem [thread:$0]  (!%p15568_p11), %s17833_s2, 9216, %s15561_s7, [#allocation7], %s17839_s19, %s17839_s19, %s17840_s20  }
  0x28   : > { %s15343_s12 = scalar_lea.hbm %s17835_s4, 9216 }
  0x29   : > { %p15344_p1 = scmp.ne.s32.totalorder %s17835_s4, %s15343_s12  ;;  %p15350_p10 = scmp.lt.u32.totalorder %s15343_s12, %s17835_s4 }
  0x2b   : > { %p15346_p2 = pnand %p15344_p1, %p15317_p13 }
  0x2d   : > { %p15347_p6 = pneg %p15346_p2 }
  0x2f   : > { %p15352_p3 = pnand %p15350_p10, %p15347_p6 }
  0x31   : > { %15355 = shalt.err (!%p15352_p3)
}
  0x32   : > { %s15356_s7 = scalar_lea.vmem %s15572_s10, 9216  ;;  %p15364_p12 = scmp.lt.s32.totalorder %s15572_s10, %s15572_s10 }
  0x33   : > { %p15357_p5 = scmp.ne.s32.totalorder %s15572_s10, %s15356_s7  ;;  %p15365_p0 = scmp.lt.s32.totalorder %s15356_s7, %s15356_s7 }
  0x35   : > { %p15359_p7 = pnand %p15357_p5, %p15317_p13  ;;  %p15366_p1 = por %p15365_p0, %p15364_p12 }
  0x37   : > { %p15360_p9 = pneg %p15359_p7 }
  0x39   : > { %p15367_p2 = pnand %p15366_p1, %p15360_p9 }
  0x3b   : > { %15370 = shalt.err (!%p15367_p2)
}
  0x3c   : > { %14800 = dma.hbm_to_vmem [thread:$0]  (!%p15568_p11), %s17835_s4, 9216, %s15572_s10, [#allocation7], %s17839_s19, %s17839_s19, %s17840_s20  }
  0x3d   : > { %s15633_s8 = sadd.s32 1, %s15471_s24   ;;  %s30_s26 = sadd.s32 1, %s15467_s23 }
  0x3e   : > { %s27_s30 = ssub.s32 %s15471_s24, %s15633_s8  ;;  %p37_p13 = scmp.ne.s32.totalorder %s15467_s23, %s15463_s22 }
  0x3f   : > { %p28_p6 = scmp.eq.s32.totalorder %s27_s30, 0  ;;  %p38_p10 = scmp.eq.s32.totalorder %s15471_s24, 0 }
  0x40   : > { %p17864_p3 = scmp.eq.s32.totalorder %s15538_s25, 1  ;;  %p14811_p7 = scmp.lt.s32.totalorder %s15471_s24, 2 }
  0x41   : > { %s15649_s11 = scalar_select %p28_p6, %s15467_s23, %s30_s26  }
  0x42   : > { %p15643_p5 = por %p17864_p3, %p37_p13  ;;  %p39_p9 = por %p38_p10, %p37_p13 }
  0x43   : > { %s233_s12 = sand.u32 1, %s15467_s23   ;;  %s14778_s10 = smul.u32 3648, %s15471_s24 }
  0x44   : > { %s17865_s9 = scalar_select %p15643_p5, 1, 0 }
  0x45   : > { %s14777_s13 = smul.u32 228, %s233_s12  ;;  %p15653_p11 = pnand %p14811_p7, %p39_p9 }
  0x46   : > { %s15660_s7 = scalar_lea.hbm %s17831_s0, %s14778_s10  ;;  %s15664_s26 = scalar_lea.sflag [#allocation4], %s233_s12 }
  0x47   : > { %s237_s17 = scalar_lea.vmem [#allocation3], %s14777_s13  ;;  %s15371_s30 = scalar_lea.hbm %s15660_s7, 3648 }
  0x48   : > { %s244_s18 = sshll.u32 %s237_s17, 4  ;;  %p15372_p12 = scmp.ne.s32.totalorder %s15660_s7, %s15371_s30  ;;  %s15662_s18 = int_to_ptr.vmem [resolvable:$true] %s244_s18 }
  0x49   : > { %p15373_p0 = pneg %p15653_p11  ;;  %s15376_s16 = scalar_lea.hbm %s17831_s0, 7296 }
  0x4a   : > { %p15377_p13 = scmp.lt.u32.totalorder %s15660_s7, %s17831_s0  ;;  %p15378_p6 = scmp.lt.u32.totalorder %s15376_s16, %s15371_s30 }
  0x4b   : > { %p15374_p1 = pnand %p15373_p0, %p15372_p12  ;;  %p15380_p3 = scmp.lt.u32.totalorder %s15371_s30, %s15660_s7 }
  0x4c   : > { %p15379_p10 = por %p15378_p6, %p15377_p13 }
  0x4d   : > { %p15375_p2 = pneg %p15374_p1 }
  0x4e   : > { %p15381_p7 = por %p15380_p3, %p15379_p10 }
  0x50   : > { %p15382_p9 = pnand %p15381_p7, %p15375_p2 }
  0x52   : > { %15385 = shalt.err (!%p15382_p9)
}
  0x53   : > { %s15386_s12 = scalar_lea.vmem %s15662_s18, 3648  ;;  %s15477_s13 = smov [#allocation3]  }
  0x54   : > { %p15387_p12 = scmp.ne.s32.totalorder %s15662_s18, %s15386_s12  ;;  %s15391_s17 = sshll.u32 %s15477_s13, 4  ;;  %s15392_s17 = int_to_ptr.vmem [resolvable:$false] %s15391_s17 }
  0x55   : > { %s15393_s19 = scalar_lea.vmem %s15392_s17, 7296  ;;  %p15394_p4 = scmp.lt.s32.totalorder %s15662_s18, %s15392_s17 }
  0x56   : > { %p15389_p1 = pnand %p15387_p12, %p15373_p0  ;;  %p15395_p13 = scmp.lt.s32.totalorder %s15393_s19, %s15386_s12 }
  0x58   : > { %p15390_p5 = pneg %p15389_p1  ;;  %p15396_p6 = por %p15395_p13, %p15394_p4 }
  0x5a   : > { %p15397_p10 = pnand %p15396_p6, %p15390_p5 }
  0x5c   : > { %15400 = shalt.err (!%p15397_p10)
}
  0x5d   : > { %s17867_s20 = smov 4   ;;  %s17868_s30 = smov 64  }
  0x5e   : > { %14804 = dma.hbm_to_vmem [thread:$0]  (!%p15653_p11), %s15660_s7, 3648, %s15662_s18, %s15664_s26, %s17868_s30, %s17868_s30, %s17867_s20  }
  0x5f   : > { %256 = sbr.rel (%p15557_p8) target bundleno = 2316 (0x90c), region = 44 }
  0x66   : > { %s15698_s10 = sand.u32 1, %s15463_s22   ;;  %p17869_p4 = scmp.ne.s32.totalorder %s17860_s27, 0 }
  0x67   : > { %s14779_s15 = smul.u32 228, %s15698_s10  ;;  %s259_s16 = scalar_lea.sflag [#allocation4], %s15698_s10 }
  0x69   : > { %s15702_s12 = scalar_lea.vmem [#allocation3], %s14779_s15 }
  0x6a   : > { %15446 = dma.done.wait (%p17869_p4), %s259_s16, 3648  }
  0x6b   : > { %15448 = vsyncadd (%p17869_p4), %s259_s16, 4294963648  ;;  %p17870_p5 = scmp.eq.s32.totalorder %s15538_s25, 0 }
  0x6d   : > { %15450 = dma.done.wait (%p17870_p5), [#allocation7], 18432   ;;  %p17871_p8 = pmov %p17870_p5 }
  0x6e   : > { %v14856_v0 = vld [vmem:[#allocation6 + $0x40] sm:$0xff]   ;;  %v14857_v1 = vld [vmem:[#allocation6 + $0x48] sm:$0xff]   ;;  %v14858_v2 = vld [vmem:[#allocation6 + $0x50] sm:$0xff]   ;;  %vm517_vm0 = vsmask.f32 7424  ;;  %vm1329_vm1 = vcmask 1046528  }
  0x6f   : > { %15452 = vsyncadd (%p17871_p8), [#allocation7], 4294948864  ;;  %12857 = vmatprep.subr.bf16.mxu0 %v14856_v0  ;;  %v14859_v3 = vld [vmem:[#allocation6 + $0x58] sm:$0xff]   ;;  %v15717_v7 = vld [vmem:[%s15702_s12 + $0x8] sm:$0xff]   ;;  %vm6191_vm2 = vcmask 1043456   ;;  %vm6244_vm8 = vcmask 1040384  }
  0x70   : > { %12858 = vmatpush3.bf16.msra.mxu0 %v14856_v0  ;;  %v312_v4 = vld [vmem:[%s15702_s12] sm:$0xf]  ;;  %v313_v5 = vld [vmem:[%s15702_s12 + $0x4] sm:$0xf]  ;;  %v526_v10 = vshll.u32 %v15717_v7, 16  ;;  %v14861_v15 = vld [vmem:[#allocation6 + $0x68] sm:$0xff]  }
  0x71   : > { %12859 = vmatprep.subr.bf16.mxu0 %v14857_v1  ;;  %v15714_v6 = vcombine.low %v312_v4, %v313_v5  ;;  %v14860_v11 = vld [vmem:[#allocation6 + $0x60] sm:$0xff]   ;;  %v15724_v17 = vld [vmem:[%s15702_s12 + $0x10] sm:$0xff]   ;;  %v15727_v18 = vld [vmem:[%s15702_s12 + $0x18] sm:$0xff]   ;;  %v530_v22 = vshrl.u32 %v15717_v7, 16  ;;  %vm6192_vm3 = vsmask.f32 7938 }
  0x72   : > { %v528_v13 = vrot.slane %v526_v10, 1  ;;  %v14862_v19 = vld [vmem:[#allocation6 + $0x70] sm:$0xff]   ;;  %v14863_v20 = vld [vmem:[#allocation6 + $0x78] sm:$0xff]   ;;  %v534_v21 = vshll.u32 %v15724_v17, 16  ;;  %v538_v23 = vshrl.u32 %v15724_v17, 16  ;;  %v542_v24 = vshll.u32 %v15727_v18, 16  ;;  %vm16608_vm6 = vmand %vm6191_vm2, %vm6192_vm3 }
  0x73   : > { %v519_v8 = vshrl.u32 %v15714_v6, 16  ;;  %v521_v9 = vshll.u32 %v15714_v6, 16  ;;  %v15734_v25 = vld [vmem:[%s15702_s12 + $0x20] sm:$0xff]   ;;  %v15738_v30 = vld [vmem:[%s15702_s12 + $0x28] sm:$0xff]   ;;  %v15741_v33 = vld [vmem:[%s15702_s12 + $0x30] sm:$0xff]   ;;  %v546_v35 = vshrl.u32 %v15727_v18, 16 }
  0x74   : > { %12860 = vmatpush3.bf16.msra.mxu0 %v14857_v1  ;;  %v536_v26 = vrot.slane %v534_v21, 1  ;;  %v532_v27 = vor.u32 %v530_v22, %v528_v13  ;;  %v14867_v28 = vld [vmem:[#allocation6] sm:$0xff]   ;;  %v550_v29 = vshll.u32 %v15734_v25, 16  ;;  %v544_v32 = vrot.slane %v542_v24, 1  ;;  %v15744_v34 = vld [vmem:[%s15702_s12 + $0x38] sm:$0xff]   ;;  %v14870_v39 = vld [vmem:[#allocation6 + $0x8] sm:$0xff]  }
  0x75   : > { %12861 = vmatprep.subr.bf16.mxu0 %v14858_v2  ;;  %v523_v12 = vrot.slane %v521_v9, 1  ;;  %v15748_v36 = vld [vmem:[%s15702_s12 + $0x40] sm:$0xff]   ;;  %v554_v40 = vshrl.u32 %v15734_v25, 16  ;;  %v558_v41 = vshll.u32 %v15738_v30, 16  ;;  %v562_v43 = vshrl.u32 %v15738_v30, 16  ;;  %v15758_v46 = vld [vmem:[%s15702_s12 + $0x48] sm:$0xff]  }
  0x76   : > { %v540_v31 = vor.u32 %v538_v23, %v536_v26  ;;  %v537_v37 = vsel %vm517_vm0, %v532_v27, %v536_v26  ;;  %v552_v38 = vrot.slane %v550_v29, 1  ;;  %v566_v44 = vshll.u32 %v15741_v33, 16  ;;  %v15762_v48 = vld [vmem:[%s15702_s12 + $0x50] sm:$0xff]   ;;  %v15767_v56 = vld [vmem:[%s15702_s12 + $0x58] sm:$0xff]   ;;  %v15772_v61 = vld [vmem:[%s15702_s12 + $0x60] sm:$0xff]   ;;  %s14780_s18 = smul.u32 384, %s15698_s10 }
  0x77   : > { %v524_v14 = vor.u32 %v523_v12, %v519_v8  ;;  %v574_v45 = vshll.u32 %v15744_v34, 16  ;;  %v582_v47 = vshll.u32 %v15748_v36, 16  ;;  %v548_v49 = vor.u32 %v546_v35, %v544_v32  ;;  %v14875_v55 = vld [vmem:[#allocation6 + $0x10] sm:$0xff]   ;;  %v15777_v0 = vld [vmem:[%s15702_s12 + $0x68] sm:$0xff]   ;;  %p17956_p0 = scmp.ne.s32.totalorder %s17865_s9, 0  ;;  %s15479_s15 = smov [#allocation9]  }
  0x78   : > { %12862 = vmatpush3.bf16.msra.mxu0 %v14858_v2  ;;  %v545_v42 = vsel %vm517_vm0, %v540_v31, %v544_v32  ;;  %v560_v50 = vrot.slane %v558_v41, 1  ;;  %v570_v51 = vshrl.u32 %v15741_v33, 16  ;;  %v556_v52 = vor.u32 %v554_v40, %v552_v38  ;;  %v14878_v2 = vld [vmem:[#allocation6 + $0x18] sm:$0xff]   ;;  %v15784_v8 = vld [vmem:[%s15702_s12 + $0x70] sm:$0xff]   ;;  %v14883_v21 = vld [vmem:[#allocation6 + $0x20] sm:$0xff]   ;;  %s17579_s26 = scalar_lea.vmem [#allocation9], %s14780_s18 }
  0x79   : > { %12863 = vmatprep.subr.bf16.mxu0 %v14859_v3  ;;  %v529_v16 = vsel %vm517_vm0, %v524_v14, %v528_v13  ;;  %v568_v53 = vrot.slane %v566_v44, 1  ;;  %v578_v54 = vshrl.u32 %v15744_v34, 16  ;;  %v576_v57 = vrot.slane %v574_v45, 1  ;;  %v15787_v9 = vld [vmem:[%s15702_s12 + $0x78] sm:$0xff]   ;;  %v15802_v32 = vld [vmem:[%s15702_s12 + $0x88] sm:$0xff]   ;;  %v14888_v45 = vld [vmem:[%s15702_s12 + $0x90] sm:$0xff]  }
  0x7a   : > { %12873 = vmatprep.mubr.bf16.mxu0 %v529_v16  ;;  %v584_v58 = vrot.slane %v582_v47, 1  ;;  %v590_v59 = vshll.u32 %v15758_v46, 16  ;;  %v598_v60 = vshll.u32 %v15762_v48, 16  ;;  %v553_v62 = vsel %vm517_vm0, %v548_v49, %v552_v38  ;;  %v15793_v16 = vld [vmem:[%s15702_s12 + $0x80] sm:$0xff]   ;;  %v14891_v47 = vld [vmem:[#allocation6 + $0x30] sm:$0xff]   ;;  %s11566_s13 = sshll.u32 %s17579_s26, 4  ;;  %s17785_s13 = int_to_ptr.vmem [resolvable:$true] %s11566_s13 }
  0x7b   : > { %v586_v63 = vshrl.u32 %v15748_v36, 16  ;;  %v561_v1 = vsel %vm517_vm0, %v556_v52, %v560_v50  ;;  %v594_v4 = vshrl.u32 %v15758_v46, 16  ;;  %v602_v5 = vshrl.u32 %v15762_v48, 16  ;;  %v14886_v36 = vld [vmem:[#allocation6 + $0x28] sm:$0xff]   ;;  %v14894_v48 = vld [vmem:[#allocation6 + $0x38] sm:$0xff]   ;;  %v15813_v52 = vld [vmem:[#allocation6 + $0x80] sm:$0xff]  }
  0x7c   : > { %12864 = vmatpush3.bf16.msra.mxu0 %v14859_v3  ;;  %v606_v3 = vshll.u32 %v15767_v56, 16  ;;  %v592_v10 = vrot.slane %v590_v59, 1  ;;  %v564_v12 = vor.u32 %v562_v43, %v560_v50  ;;  %v610_v13 = vshrl.u32 %v15767_v56, 16  ;;  %s15401_s30 = scalar_lea.vmem %s17785_s13, 6144  ;;  %s15405_s16 = sshll.u32 %s15479_s15, 4  ;;  %s15406_s16 = int_to_ptr.vmem [resolvable:$false] %s15405_s16 }
  0x7d   : > { %12865 = vmatprep.subr.bf16.mxu0 %v14860_v11  ;;  %v614_v14 = vshll.u32 %v15772_v61, 16  ;;  %v630_v22 = vshll.u32 %v15784_v8, 16  ;;  %v638_v23 = vshll.u32 %v15787_v9, 16  ;;  %v618_v24 = vshrl.u32 %v15772_v61, 16  ;;  %p15402_p11 = scmp.ne.s32.totalorder %s17785_s13, %s15401_s30  ;;  %s15407_s27 = scalar_lea.vmem %s15406_s16, 12288 }
  0x7e   : > { %v626_v26 = vshrl.u32 %v15777_v0, 16  ;;  %v569_v27 = vsel %vm517_vm0, %v564_v12, %v568_v53  ;;  %v646_v31 = vshll.u32 %v15793_v16, 16  ;;  %v634_v35 = vshrl.u32 %v15784_v8, 16  ;;  %p15408_p7 = scmp.lt.s32.totalorder %s17785_s13, %s15406_s16  ;;  %p15409_p9 = scmp.lt.s32.totalorder %s15407_s27, %s15401_s30 }
  0x7f   : > { %v640_v38 = vrot.slane %v638_v23, 1  ;;  %v650_v40 = vshrl.u32 %v15793_v16, 16  ;;  %v580_v41 = vor.u32 %v578_v54, %v576_v57  ;;  %v654_v43 = vshll.u32 %v15802_v32, 16  ;;  %p15403_p2 = pnand %p15402_p11, %p17956_p0 }
  0x80   : > { %12866 = vmatpush3.bf16.msra.mxu0 %v14860_v11  ;;  %v600_v11 = vrot.slane %v598_v60, 1  ;;  %v588_v44 = vor.u32 %v586_v63, %v584_v58  ;;  %v658_v46 = vshrl.u32 %v15802_v32, 16  ;;  %vm5708_vm4 = vsmask.f32 256  ;;  %p15410_p12 = por %p15409_p9, %p15408_p7 }
  0x81   : > { %12867 = vmatprep.subr.bf16.mxu0 %v14861_v15  ;;  %v585_v49 = vsel %vm517_vm0, %v580_v41, %v584_v58  ;;  %v656_v61 = vrot.slane %v654_v43, 1  ;;  %vm5709_vm5 = vsmask.f32 4368  ;;  %vm6245_vm9 = vmand %vm6244_vm8, %vm5708_vm4  ;;  %p15404_p3 = pneg %p15403_p2 }
  0x82   : > { %v593_v50 = vsel %vm517_vm0, %v588_v44, %v592_v10  ;;  %v604_v54 = vor.u32 %v602_v5, %v600_v11  ;;  %vm16614_vm7 = vmor %vm5708_vm4, %vm5709_vm5 }
  0x83   : > { %p15411_p1 = pnand %p15410_p12, %p15404_p3 }
  0x84   : > { %12868 = vmatpush3.bf16.msra.mxu0 %v14861_v15  ;;  %v622_v15 = vshll.u32 %v15777_v0, 16 }
  0x85   : > { %12869 = vmatprep.subr.bf16.mxu0 %v14862_v19 }
  0x86   : > { %v624_v29 = vrot.slane %v622_v15, 1 }
  0x88   : > { %12870 = vmatpush3.bf16.msra.mxu0 %v14862_v19  ;;  %v572_v19 = vor.u32 %v570_v51, %v568_v53  ;;  %v662_v51 = vshll.u32 %v14888_v45, 16  ;;  %v596_v53 = vor.u32 %v594_v4, %v592_v10  ;;  %v628_v63 = vor.u32 %v626_v26, %v624_v29 }
  0x89   : > { %12871 = vmatprep.subr.bf16.mxu0 %v14863_v20 }
  0x8a   : > { %v577_v34 = vsel %vm517_vm0, %v572_v19, %v576_v57 }
  0x8c   : > { %12872 = vmatpush3.bf16.msra.mxu0 %v14863_v20  ;;  %v608_v20 = vrot.slane %v606_v3, 1 }
  0x8d   : > { %12921 = vmatprep.subr.bf16.mxu0 %v14867_v28 }
  0x8e   : > { %v609_v56 = vsel %vm517_vm0, %v604_v54, %v608_v20  ;;  %v612_v57 = vor.u32 %v610_v13, %v608_v20  ;;  %v660_v20 = vor.u32 %v658_v46, %v656_v61  ;;  %v14899_v54 = vld [vmem:[#allocation6 + $0x90] sm:$0xff]  }
  0x8f   : > { %12874 = vmatmul.mubr.bf16.vlgmr.msra.gmra.mrb[0].mxu0 %v537_v37  ;;  %v632_v37 = vrot.slane %v630_v22, 1 }
  0x90   : > { %12922 = vmatpush3.bf16.msra.mxu0 %v14867_v28  ;;  %12877 = vmatprep.mubr.bf16.mxu0 %v545_v42  ;;  %v616_v28 = vrot.slane %v614_v14, 1  ;;  %v648_v42 = vrot.slane %v646_v31, 1  ;;  %v664_v14 = vrot.slane %v662_v51, 1 }
  0x91   : > { %12923 = vmatprep.subr.bf16.mxu0 %v14870_v39  ;;  %v636_v0 = vor.u32 %v634_v35, %v632_v37  ;;  %v633_v3 = vsel %vm517_vm0, %v628_v63, %v632_v37  ;;  %v15909_v63 = vld [vmem:[%s15702_s12 + $0x88] sm:$0xff]  }
  0x92   : > { %v620_v58 = vor.u32 %v618_v24, %v616_v28  ;;  %v617_v59 = vsel %vm517_vm0, %v612_v57, %v616_v28  ;;  %v652_v10 = vor.u32 %v650_v40, %v648_v42  ;;  %v15839_v24 = vld [vmem:[%s15702_s12 + $0xb0] sm:$0xff]   ;;  %v665_v28 = vsel %vm517_vm0, %v660_v20, %v664_v14  ;;  %v15885_v57 = vld [vmem:[%s15702_s12 + $0x58] sm:$0xff]  }
  0x93   : > { %v641_v4 = vsel %vm517_vm0, %v636_v0, %v640_v38  ;;  %v694_v32 = vshll.u32 %v15839_v24, 16  ;;  %v698_v35 = vshrl.u32 %v15839_v24, 16  ;;  %v15913_v0 = vld [vmem:[%s15702_s12 + $0x90] sm:$0xff]  }
  0x94   : > { %12924 = vmatpush3.bf16.msra.mxu0 %v14870_v39  ;;  %v642_v39 = vshrl.u32 %v15787_v9, 16  ;;  %v625_v60 = vsel %vm517_vm0, %v620_v58, %v624_v29  ;;  %v657_v13 = vsel %vm517_vm0, %v652_v10, %v656_v61  ;;  %v15889_v58 = vld [vmem:[%s15702_s12 + $0x60] sm:$0xff]   ;;  %v15901_v61 = vld [vmem:[%s15702_s12 + $0x78] sm:$0xff]  }
  0x95   : > { %12925 = vmatprep.subr.bf16.mxu0 %v14875_v55  ;;  %v696_v41 = vrot.slane %v694_v32, 1 }
  0x96   : > { %v644_v9 = vor.u32 %v642_v39, %v640_v38  ;;  %v15851_v38 = vld [vmem:[%s15702_s12 + $0xc0] ss:$0 sps:$4 sm:$0x11]  }
  0x97   : > { %12878 = vmatmul.mubr.bf16.gmra.mrb[4].mxu0 %v553_v62  ;;  %v666_v62 = vshrl.u32 %v14888_v45, 16  ;;  %v710_v45 = vshll.u32 %v15851_v38, 16  ;;  %v700_v46 = vor.u32 %v698_v35, %v696_v41  ;;  %v14910_v35 = vld [vmem:[#allocation6 + $0xe0] sm:$0xff]  }
  0x98   : > { %12881 = vmatprep.mubr.bf16.mxu0 %v561_v1  ;;  %12926 = vmatpush3.bf16.msra.mxu0 %v14875_v55  ;;  %v601_v55 = vsel %vm517_vm0, %v596_v53, %v600_v11  ;;  %v15821_v1 = vld [vmem:[%s15702_s12 + $0x98] sm:$0xff]   ;;  %v15831_v11 = vld [vmem:[%s15702_s12 + $0xa8] sm:$0xff]   ;;  %v649_v12 = vsel %vm517_vm0, %v644_v9, %v648_v42 }
  0x99   : > { %12927 = vmatprep.subr.bf16.mxu0 %v14878_v2  ;;  %v670_v5 = vshll.u32 %v15821_v1, 16  ;;  %v674_v16 = vshrl.u32 %v15821_v1, 16  ;;  %v686_v22 = vshll.u32 %v15831_v11, 16  ;;  %v668_v23 = vor.u32 %v666_v62, %v664_v14  ;;  %v14898_v53 = vld [vmem:[#allocation6 + $0x88] sm:$0xff]   ;;  %v15905_v62 = vld [vmem:[%s15702_s12 + $0x80] sm:$0xff]  }
  0x9a   : > { %v690_v26 = vshrl.u32 %v15831_v11, 16  ;;  %v15265_v9 = vld [vmem:[%s15702_s12 + $0x8] sm:$0xff]  }
  0x9b   : > { %v672_v15 = vrot.slane %v670_v5, 1  ;;  %v688_v31 = vrot.slane %v686_v22, 1  ;;  %v1331_v10 = vrot.slane %v15265_v9, 1 }
  0x9c   : > { %12928 = vmatpush3.bf16.msra.mxu0 %v14878_v2  ;;  %v15824_v2 = vld [vmem:[%s15702_s12 + $0xa0] sm:$0xff]  }
  0x9d   : > { %12929 = vmatprep.subr.bf16.mxu0 %v14883_v21  ;;  %v678_v8 = vshll.u32 %v15824_v2, 16  ;;  %v682_v19 = vshrl.u32 %v15824_v2, 16  ;;  %v673_v29 = vsel %vm517_vm0, %v668_v23, %v672_v15  ;;  %v692_v43 = vor.u32 %v690_v26, %v688_v31  ;;  %v14908_v23 = vld [vmem:[#allocation6 + $0xd0] sm:$0xff]  }
  0x9f   : > { %12882 = vmatmul.mubr.bf16.gmra.mrb[8].mxu0 %v569_v27  ;;  %v15843_v27 = vld [vmem:[%s15702_s12 + $0xb8] sm:$0xff]  }
  0xa0   : > { %12885 = vmatprep.mubr.bf16.mxu0 %v577_v34  ;;  %12930 = vmatpush3.bf16.msra.mxu0 %v14883_v21  ;;  %v680_v21 = vrot.slane %v678_v8, 1  ;;  %v676_v34 = vor.u32 %v674_v16, %v672_v15  ;;  %v706_v42 = vshrl.u32 %v15843_v27, 16  ;;  %v14907_v16 = vld [vmem:[#allocation6 + $0xc8] sm:$0xff]  }
  0xa1   : > { %12931 = vmatprep.subr.bf16.mxu0 %v14886_v36 }
  0xa2   : > { %v684_v37 = vor.u32 %v682_v19, %v680_v21  ;;  %v681_v39 = vsel %vm517_vm0, %v676_v34, %v680_v21  ;;  %v15268_v19 = vld [vmem:[%s15702_s12 + $0x20] sm:$0xff]   ;;  %v15269_v21 = vld [vmem:[%s15702_s12 + $0x28] sm:$0xff]  }
  0xa3   : > { %v1337_v20 = vrot.slane %v15268_v19, 1  ;;  %v1339_v22 = vrot.slane %v15269_v21, 1  ;;  %v14921_v19 = vld [vmem:[%s15702_s12 + $0x34] sm:$0xff]  }
  0xa4   : > { %12932 = vmatpush3.bf16.msra.mxu0 %v14886_v36  ;;  %v702_v36 = vshll.u32 %v15843_v27, 16  ;;  %v689_v40 = vsel %vm517_vm0, %v684_v37, %v688_v31  ;;  %v15270_v31 = vld [vmem:[%s15702_s12 + $0x30] sm:$0xff]  }
  0xa5   : > { %12933 = vmatprep.subr.bf16.mxu0 %v14891_v47  ;;  %v1341_v32 = vrot.slane %v15270_v31, 1  ;;  %v14935_v21 = vld [vmem:[#allocation6 + $0x128] sm:$0xff]  }
  0xa6   : > { %v704_v44 = vrot.slane %v702_v36, 1  ;;  %v14926_v31 = vld [vmem:[%s15702_s12 + $0x54] sm:$0xff]  }
  0xa7   : > { %12886 = vmatmul.mubr.bf16.gmra.mrb[12].mxu0 %v585_v49  ;;  %v1342_v36 = vsel %vm1329_vm1, %v1339_v22, %v1341_v32 }
  0xa8   : > { %12889 = vmatprep.mubr.bf16.mxu0 %v593_v50  ;;  %12934 = vmatpush3.bf16.msra.mxu0 %v14891_v47  ;;  %v697_v47 = vsel %vm517_vm0, %v692_v43, %v696_v41  ;;  %v708_v49 = vor.u32 %v706_v42, %v704_v44  ;;  %v712_v50 = vrot.slane %v710_v45, 1  ;;  %v14912_v42 = vld [vmem:[#allocation6 + $0xf0] sm:$0xff]   ;;  %v14913_v45 = vld [vmem:[#allocation6 + $0xf8] sm:$0xff]  }
  0xa9   : > { %12935 = vmatprep.subr.bf16.mxu0 %v14894_v48 }
  0xaa   : > { %v713_v51 = vsel %vm517_vm0, %v708_v49, %v712_v50 }
  0xac   : > { %12936 = vmatpush3.bf16.msra.mxu0 %v14894_v48  ;;  %v705_v48 = vsel %vm517_vm0, %v700_v46, %v704_v44 }
  0xad   : > { %12985 = vmatprep.subr.bf16.mxu0 %v15813_v52 }
  0xaf   : > { %12890 = vmatmul.mubr.bf16.gmra.mrb[16].mxu0 %v601_v55  ;;  %v14900_v55 = vld [vmem:[#allocation6 + $0x98] sm:$0xff]  }
  0xb0   : > { %12893 = vmatprep.mubr.bf16.mxu0 %v609_v56  ;;  %v14902_v56 = vld [vmem:[#allocation6 + $0xa8] sm:$0xff]  }
  0xb7   : > { %12894 = vmatmul.mubr.bf16.gmra.mrb[20].mxu0 %v617_v59  ;;  %v15893_v59 = vld [vmem:[%s15702_s12 + $0x68] sm:$0xff]  }
  0xb8   : > { %12897 = vmatprep.mubr.bf16.mxu0 %v625_v60  ;;  %v15897_v60 = vld [vmem:[%s15702_s12 + $0x70] sm:$0xff]  }
  0xbf   : > { %12898 = vmatmul.mubr.bf16.gmra.mrb[24].mxu0 %v633_v3  ;;  %v1308_v3 = vld [vmem:[%s15702_s12] sm:$0xe] }
  0xc0   : > { %12901 = vmatprep.mubr.bf16.mxu0 %v641_v4  ;;  %v15264_v4 = vld [vmem:[%s15702_s12 + $0x4] sm:$0xf] }
  0xc1   : > { %v11708_v5 = vcombine.low %v1308_v3, %v15264_v4 }
  0xc3   : > { %v1330_v8 = vrot.slane %v11708_v5, 1 }
  0xc7   : > { %12902 = vmatmul.mubr.bf16.gmra.mrb[28].mxu0 %v649_v12  ;;  %v1332_v12 = vsel %vm1329_vm1, %v1330_v8, %v1331_v10  ;;  %v1375_v8 = vrot.slane %v15843_v27, 1 }
  0xc8   : > { %12905 = vmatprep.mubr.bf16.mxu0 %v657_v13  ;;  %v15267_v13 = vld [vmem:[%s15702_s12 + $0x18] sm:$0xff]  }
  0xc9   : > { %v1335_v14 = vrot.slane %v15267_v13, 1  ;;  %v14915_v13 = vld [vmem:[%s15702_s12 + $0x14] sm:$0xff]  }
  0xcb   : > { %v1338_v26 = vsel %vm1329_vm1, %v1335_v14, %v1337_v20 }
  0xcf   : > { %12906 = vmatmul.mubr.bf16.gmra.mrb[32].mxu0 %v665_v28  ;;  %v1340_v28 = vsel %vm1329_vm1, %v1337_v20, %v1339_v22  ;;  %v14922_v20 = vld [vmem:[%s15702_s12 + $0x3c] sm:$0xff]  }
  0xd0   : > { %12909 = vmatprep.mubr.bf16.mxu0 %v673_v29  ;;  %v14909_v29 = vld [vmem:[#allocation6 + $0xd8] sm:$0xff]   ;;  %v14940_v22 = vld [vmem:[#allocation6 + $0x130] sm:$0xff]  }
  0xd7   : > { %12910 = vmatmul.mubr.bf16.gmra.mrb[36].mxu0 %v681_v39  ;;  %v14911_v39 = vld [vmem:[#allocation6 + $0xe8] sm:$0xff]  }
  0xd8   : > { %12913 = vmatprep.mubr.bf16.mxu0 %v689_v40 }
  0xdf   : > { %12914 = vmatmul.mubr.bf16.gmra.mrb[40].mxu0 %v697_v47  ;;  %v1351_v47 = vrot.slane %v15885_v57, 1 }
  0xe0   : > { %12917 = vmatprep.mubr.bf16.mxu0 %v705_v48  ;;  %v14916_v48 = vld [vmem:[#allocation6 + $0x100] sm:$0xff]  }
  0xe7   : > { %12918 = vmatmul.mubr.bf16.gmra.mrb[44].mxu0 %v713_v51  ;;  %v1353_v51 = vrot.slane %v15889_v58, 1 }
  0xe8   : > { %12937 = vmatprep.mubr.bf16.mxu0 %v15714_v6  ;;  %v14901_v6 = vld [vmem:[#allocation6 + $0xa0] sm:$0xff]  }
  0xef   : > { %12938 = vmatmul.mubr.bf16.vlgmr.msra.gmra.mrb[0].mxu0 %v15717_v7  ;;  %v14903_v7 = vld [vmem:[#allocation6 + $0xb0] sm:$0xff]  }
  0xf0   : > { %12986 = vmatpush3.bf16.msra.mxu0 %v15813_v52  ;;  %12941 = vmatprep.mubr.bf16.mxu0 %v15724_v17  ;;  %v14904_v17 = vld [vmem:[#allocation6 + $0xb8] sm:$0xff]   ;;  %v15881_v52 = vld [vmem:[%s15702_s12 + $0x50] sm:$0xff]  }
  0xf1   : > { %12987 = vmatprep.subr.bf16.mxu0 %v14898_v53  ;;  %v1349_v46 = vrot.slane %v15881_v52, 1 }
  0xf3   : > { %v1352_v50 = vsel %vm1329_vm1, %v1349_v46, %v1351_v47 }
  0xf4   : > { %12988 = vmatpush3.bf16.msra.mxu0 %v14898_v53  ;;  %v1355_v53 = vrot.slane %v15893_v59, 1 }
  0xf5   : > { %12989 = vmatprep.subr.bf16.mxu0 %v14899_v54 }
  0xf7   : > { %12942 = vmatmul.mubr.bf16.gmra.mrb[4].mxu0 %v15727_v18  ;;  %v15869_v18 = vld [vmem:[%s15702_s12 + $0x38] sm:$0xff]  }
  0xf8   : > { %12945 = vmatprep.mubr.bf16.mxu0 %v15734_v25  ;;  %12990 = vmatpush3.bf16.msra.mxu0 %v14899_v54  ;;  %v15873_v25 = vld [vmem:[%s15702_s12 + $0x40] sm:$0xff]   ;;  %v1343_v34 = vrot.slane %v15869_v18, 1  ;;  %v1354_v54 = vsel %vm1329_vm1, %v1351_v47, %v1353_v51 }
  0xf9   : > { %12991 = vmatprep.subr.bf16.mxu0 %v14900_v55  ;;  %v1345_v40 = vrot.slane %v15873_v25, 1 }
  0xfa   : > { %v1344_v37 = vsel %vm1329_vm1, %v1341_v32, %v1343_v34  ;;  %v14928_v32 = vld [vmem:[%s15702_s12 + $0x5c] sm:$0xff]  }
  0xfb   : > { %v1346_v43 = vsel %vm1329_vm1, %v1343_v34, %v1345_v40  ;;  %v14929_v34 = vld [vmem:[%s15702_s12 + $0x64] sm:$0xff]  }
  0xfc   : > { %12992 = vmatpush3.bf16.msra.mxu0 %v14900_v55  ;;  %v1356_v55 = vsel %vm1329_vm1, %v1353_v51, %v1355_v53  ;;  %v14944_v51 = vld [vmem:[%s15702_s12 + $0xbc] sm:$0xff]  }
  0xfd   : > { %12993 = vmatprep.subr.bf16.mxu0 %v14901_v6 }
  0xff   : > { %12946 = vmatmul.mubr.bf16.gmra.mrb[8].mxu0 %v15738_v30  ;;  %v14906_v30 = vld [vmem:[#allocation6 + $0xc0] sm:$0xff]  }
 0x100   : > { %12949 = vmatprep.mubr.bf16.mxu0 %v15741_v33  ;;  %12994 = vmatpush3.bf16.msra.mxu0 %v14901_v6  ;;  %v15877_v33 = vld [vmem:[%s15702_s12 + $0x48] sm:$0xff]   ;;  %v1357_v6 = vrot.slane %v15897_v60, 1 }
 0x101   : > { %12995 = vmatprep.subr.bf16.mxu0 %v14902_v56  ;;  %v1347_v41 = vrot.slane %v15877_v33, 1 }
 0x103   : > { %v1348_v44 = vsel %vm1329_vm1, %v1345_v40, %v1347_v41  ;;  %v1350_v49 = vsel %vm1329_vm1, %v1347_v41, %v1349_v46  ;;  %v14936_v40 = vld [vmem:[%s15702_s12 + $0x8c] sm:$0xff]   ;;  %v14937_v41 = vld [vmem:[%s15702_s12 + $0x94] sm:$0xff]  }
 0x104   : > { %12996 = vmatpush3.bf16.msra.mxu0 %v14902_v56  ;;  %v1359_v56 = vrot.slane %v15901_v61, 1  ;;  %v14941_v46 = vld [vmem:[%s15702_s12 + $0xac] sm:$0xff]  }
 0x105   : > { %12997 = vmatprep.subr.bf16.mxu0 %v14903_v7 }
 0x107   : > { %12950 = vmatmul.mubr.bf16.gmra.mrb[12].mxu0 %v15869_v18  ;;  %v1361_v18 = vrot.slane %v15905_v62, 1 }
 0x108   : > { %12953 = vmatprep.mubr.bf16.mxu0 %v15873_v25  ;;  %12998 = vmatpush3.bf16.msra.mxu0 %v14903_v7  ;;  %v1358_v7 = vsel %vm1329_vm1, %v1355_v53, %v1357_v6  ;;  %v1363_v25 = vrot.slane %v15909_v63, 1 }
 0x109   : > { %12999 = vmatprep.subr.bf16.mxu0 %v14904_v17 }
 0x10c   : > { %13000 = vmatpush3.bf16.msra.mxu0 %v14904_v17  ;;  %v1360_v17 = vsel %vm1329_vm1, %v1357_v6, %v1359_v56  ;;  %v16007_v6 = vld [vmem:[%s15702_s12 + $0x1c] sm:$0xff]  }
 0x10d   : > { %13049 = vmatprep.subr.bf16.mxu0 %v14906_v30 }
 0x10f   : > { %12954 = vmatmul.mubr.bf16.gmra.mrb[16].mxu0 %v15877_v33  ;;  %v1364_v33 = vsel %vm1329_vm1, %v1361_v18, %v1363_v25 }
 0x110   : > { %12957 = vmatprep.mubr.bf16.mxu0 %v15881_v52  ;;  %v1365_v52 = vrot.slane %v15913_v0, 1 }
 0x117   : > { %12958 = vmatmul.mubr.bf16.gmra.mrb[20].mxu0 %v15885_v57  ;;  %v15271_v57 = vld [vmem:[%s15702_s12 + $0x98] sm:$0xff]  }
 0x118   : > { %12961 = vmatprep.mubr.bf16.mxu0 %v15889_v58  ;;  %v1367_v58 = vrot.slane %v15271_v57, 1 }
 0x11f   : > { %12962 = vmatmul.mubr.bf16.gmra.mrb[24].mxu0 %v15893_v59  ;;  %v1366_v59 = vsel %vm1329_vm1, %v1363_v25, %v1365_v52  ;;  %v2459_v25 = vshll.u32 %v16007_v6, 16 }
 0x120   : > { %12965 = vmatprep.mubr.bf16.mxu0 %v15897_v60  ;;  %v1368_v60 = vsel %vm1329_vm1, %v1365_v52, %v1367_v58  ;;  %v2463_v52 = vshrl.u32 %v16007_v6, 16 }
 0x127   : > { %12966 = vmatmul.mubr.bf16.gmra.mrb[28].mxu0 %v15901_v61  ;;  %v15272_v61 = vld [vmem:[%s15702_s12 + $0xa0] sm:$0xff]  }
 0x128   : > { %12969 = vmatprep.mubr.bf16.mxu0 %v15905_v62  ;;  %v1369_v62 = vrot.slane %v15272_v61, 1 }
 0x12a   : > { %v1370_v4 = vsel %vm1329_vm1, %v1367_v58, %v1369_v62  ;;  %v2461_v58 = vrot.slane %v2459_v25, 1 }
 0x12c   : > { %v2465_v61 = vor.u32 %v2463_v52, %v2461_v58 }
 0x12f   : > { %12970 = vmatmul.mubr.bf16.gmra.mrb[32].mxu0 %v15909_v63  ;;  %v15273_v63 = vld [vmem:[%s15702_s12 + $0xa8] sm:$0xff]  }
 0x130   : > { %12973 = vmatprep.mubr.bf16.mxu0 %v15913_v0  ;;  %v1371_v3 = vrot.slane %v15273_v63, 1  ;;  %v1373_v0 = vrot.slane %v15839_v24, 1  ;;  %v16022_v63 = vld [vmem:[%s15702_s12 + $0x34] sm:$0xff]  }
 0x132   : > { %v1372_v5 = vsel %vm1329_vm1, %v1369_v62, %v1371_v3  ;;  %v1374_v9 = vsel %vm1329_vm1, %v1371_v3, %v1373_v0 }
 0x137   : > { %12974 = vmatmul.mubr.bf16.gmra.mrb[36].mxu0 %v15821_v1  ;;  %v15266_v1 = vld [vmem:[%s15702_s12 + $0x10] sm:$0xff]  }
 0x138   : > { %12977 = vmatprep.mubr.bf16.mxu0 %v15824_v2  ;;  %v1333_v2 = vrot.slane %v15266_v1, 1 }
 0x13a   : > { %v1334_v15 = vsel %vm1329_vm1, %v1331_v10, %v1333_v2  ;;  %v1376_v10 = vsel %vm1329_vm1, %v1373_v0, %v1375_v8 }
 0x13f   : > { %12978 = vmatmul.mubr.bf16.gmra.mrb[40].mxu0 %v15831_v11  ;;  %v1336_v11 = vsel %vm1329_vm1, %v1333_v2, %v1335_v14  ;;  %v14914_v2 = vld [vmem:[%s15702_s12 + $0xc] sm:$0xff]   ;;  %v14917_v14 = vld [vmem:[%s15702_s12 + $0x1c] sm:$0xff]  }
 0x140   : > { %12981 = vmatprep.mubr.bf16.mxu0 %v15839_v24  ;;  %v14919_v24 = vld [vmem:[#allocation6 + $0x108] sm:$0xff]  }
 0x147   : > { %12982 = vmatmul.mubr.bf16.gmra.mrb[44].mxu0 %v15843_v27  ;;  %v14924_v27 = vld [vmem:[#allocation6 + $0x110] sm:$0xff]  }
 0x148   : > { %13001 = vmatprep.mubr.bf16.mxu0 %v1332_v12  ;;  %v1377_v12 = vrot.slane %v15851_v38, 1  ;;  %v14927_v38 = vld [vmem:[#allocation6 + $0x118] sm:$0xff]  }
 0x14a   : > { %v1378_v1 = vsel %vm1329_vm1, %v1375_v8, %v1377_v12  ;;  %v14952_v8 = vld [vmem:[#allocation6 + $0x148] sm:$0xff]  }
 0x14f   : > { %13002 = vmatmul.mubr.bf16.vlgmr.msra.gmra.mrb[0].mxu0 %v1334_v15  ;;  %v14918_v15 = vld [vmem:[%s15702_s12 + $0x24] sm:$0xff]  }
 0x150   : > { %13050 = vmatpush3.bf16.msra.mxu0 %v14906_v30  ;;  %13005 = vmatprep.mubr.bf16.mxu0 %v1336_v11  ;;  %v1362_v30 = vsel %vm1329_vm1, %v1359_v56, %v1361_v18  ;;  %v14920_v11 = vld [vmem:[%s15702_s12 + $0x2c] sm:$0xff]   ;;  %v14945_v18 = vld [vmem:[%s15702_s12 + $0xc4] sm:$0xff]  }
 0x151   : > { %13051 = vmatprep.subr.bf16.mxu0 %v14907_v16 }
 0x154   : > { %13052 = vmatpush3.bf16.msra.mxu0 %v14907_v16  ;;  %v14932_v16 = vld [vmem:[#allocation6 + $0x120] sm:$0xff]  }
 0x155   : > { %13053 = vmatprep.subr.bf16.mxu0 %v14908_v23 }
 0x157   : > { %13006 = vmatmul.mubr.bf16.gmra.mrb[4].mxu0 %v1338_v26  ;;  %v14925_v26 = vld [vmem:[%s15702_s12 + $0x4c] sm:$0xff]  }
 0x158   : > { %13009 = vmatprep.mubr.bf16.mxu0 %v1340_v28  ;;  %13054 = vmatpush3.bf16.msra.mxu0 %v14908_v23  ;;  %v14923_v23 = vld [vmem:[%s15702_s12 + $0x44] sm:$0xff]  }
 0x159   : > { %13055 = vmatprep.subr.bf16.mxu0 %v14909_v29  ;;  %v14943_v28 = vld [vmem:[#allocation6 + $0x138] sm:$0xff]  }
 0x15c   : > { %13056 = vmatpush3.bf16.msra.mxu0 %v14909_v29  ;;  %v15980_v29 = vld [vmem:[#allocation6 + $0x140] sm:$0xff]  }
 0x15d   : > { %13057 = vmatprep.subr.bf16.mxu0 %v14910_v35 }
 0x15f   : > { %13010 = vmatmul.mubr.bf16.gmra.mrb[8].mxu0 %v1342_v36  ;;  %v14931_v36 = vld [vmem:[%s15702_s12 + $0x74] sm:$0xff]  }
 0x160   : > { %13013 = vmatprep.mubr.bf16.mxu0 %v1344_v37  ;;  %13058 = vmatpush3.bf16.msra.mxu0 %v14910_v35  ;;  %v14930_v35 = vld [vmem:[%s15702_s12 + $0x6c] sm:$0xff]   ;;  %v14933_v37 = vld [vmem:[%s15702_s12 + $0x7c] sm:$0xff]  }
 0x161   : > { %13059 = vmatprep.subr.bf16.mxu0 %v14911_v39 }
 0x164   : > { %13060 = vmatpush3.bf16.msra.mxu0 %v14911_v39  ;;  %v14934_v39 = vld [vmem:[%s15702_s12 + $0x84] sm:$0xff]  }
 0x165   : > { %13061 = vmatprep.subr.bf16.mxu0 %v14912_v42 }
 0x167   : > { %13014 = vmatmul.mubr.bf16.gmra.mrb[12].mxu0 %v1346_v43  ;;  %v2254_v43 = vld [vmem:[%s15702_s12 + $0xc] sm:$0xf] }
 0x168   : > { %13017 = vmatprep.mubr.bf16.mxu0 %v1348_v44  ;;  %13062 = vmatpush3.bf16.msra.mxu0 %v14912_v42  ;;  %v14938_v42 = vld [vmem:[%s15702_s12 + $0x9c] sm:$0xff]   ;;  %v15995_v44 = vld [vmem:[%s15702_s12 + $0x10] sm:$0xf] }
 0x169   : > { %13063 = vmatprep.subr.bf16.mxu0 %v14913_v45  ;;  %v11749_v47 = vcombine.low %v2254_v43, %v15995_v44  ;;  %v16056_v43 = vld [vmem:[%s15702_s12 + $0x5c] sm:$0xff]  }
 0x16b   : > { %v2444_v53 = vshrl.u32 %v11749_v47, 16 }
 0x16c   : > { %13064 = vmatpush3.bf16.msra.mxu0 %v14913_v45  ;;  %v14939_v45 = vld [vmem:[%s15702_s12 + $0xa4] sm:$0xff]  }
 0x16d   : > { %13113 = vmatprep.subr.bf16.mxu0 %v14916_v48 }
 0x16f   : > { %13018 = vmatmul.mubr.bf16.gmra.mrb[16].mxu0 %v1350_v49  ;;  %v2446_v49 = vshll.u32 %v11749_v47, 16 }
 0x170   : > { %13021 = vmatprep.mubr.bf16.mxu0 %v1352_v50  ;;  %v14942_v50 = vld [vmem:[%s15702_s12 + $0xb4] sm:$0xff]  }
 0x177   : > { %13022 = vmatmul.mubr.bf16.gmra.mrb[20].mxu0 %v1354_v54  ;;  %v2448_v54 = vrot.slane %v2446_v49, 1  ;;  %v16059_v49 = vld [vmem:[%s15702_s12 + $0x64] sm:$0xff]  }
 0x178   : > { %13025 = vmatprep.mubr.bf16.mxu0 %v1356_v55 }
 0x179   : > { %v2449_v56 = vor.u32 %v2448_v54, %v2444_v53 }
 0x17f   : > { %13026 = vmatmul.mubr.bf16.gmra.mrb[24].mxu0 %v1358_v7 }
 0x180   : > { %13029 = vmatprep.mubr.bf16.mxu0 %v1360_v17  ;;  %v16010_v17 = vld [vmem:[%s15702_s12 + $0x24] sm:$0xff]  }
 0x181   : > { %v2467_v57 = vshll.u32 %v16010_v17, 16 }
 0x183   : > { %v2469_v62 = vrot.slane %v2467_v57, 1 }
 0x185   : > { %v2470_v0 = vsel %vm517_vm0, %v2465_v61, %v2469_v62 }
 0x187   : > { %13030 = vmatmul.mubr.bf16.gmra.mrb[28].mxu0 %v1362_v30 }
 0x188   : > { %13033 = vmatprep.mubr.bf16.mxu0 %v1364_v33 }
 0x18f   : > { %13034 = vmatmul.mubr.bf16.gmra.mrb[32].mxu0 %v1366_v59  ;;  %v16019_v59 = vld [vmem:[%s15702_s12 + $0x2c] sm:$0xff]  }
 0x190   : > { %13037 = vmatprep.mubr.bf16.mxu0 %v1368_v60  ;;  %v2475_v3 = vshll.u32 %v16019_v59, 16 }
 0x192   : > { %v2477_v12 = vrot.slane %v2475_v3, 1  ;;  %v2535_v3 = vshrl.u32 %v16059_v49, 16 }
 0x197   : > { %13038 = vmatmul.mubr.bf16.gmra.mrb[36].mxu0 %v1370_v4 }
 0x198   : > { %13041 = vmatprep.mubr.bf16.mxu0 %v1372_v5  ;;  %v2471_v5 = vshrl.u32 %v16010_v17, 16 }
 0x19f   : > { %13042 = vmatmul.mubr.bf16.gmra.mrb[40].mxu0 %v1374_v9  ;;  %v2479_v9 = vshrl.u32 %v16019_v59, 16 }
 0x1a0   : > { %13045 = vmatprep.mubr.bf16.mxu0 %v1376_v10  ;;  %v2483_v10 = vshll.u32 %v16022_v63, 16 }
 0x1a7   : > { %13046 = vmatmul.mubr.bf16.gmra.mrb[44].mxu0 %v1378_v1  ;;  %v16031_v1 = vld [vmem:[%s15702_s12 + $0x3c] sm:$0xff]  }
 0x1a8   : > { %13065 = vmatprep.mubr.bf16.mxu0 %v14914_v2  ;;  %v2473_v2 = vor.u32 %v2471_v5, %v2469_v62 }
 0x1af   : > { %13066 = vmatmul.mubr.bf16.vlgmr.msra.gmra.mrb[0].mxu0 %v14915_v13  ;;  %v2481_v13 = vor.u32 %v2479_v9, %v2477_v12  ;;  %v16083_v9 = vld [vmem:[%s15702_s12 + $0x7c] sm:$0xff]  }
 0x1b0   : > { %13114 = vmatpush3.bf16.msra.mxu0 %v14916_v48  ;;  %13069 = vmatprep.mubr.bf16.mxu0 %v14917_v14  ;;  %v16001_v48 = vld [vmem:[%s15702_s12 + $0x14] sm:$0xff]   ;;  %v2485_v14 = vrot.slane %v2483_v10, 1 }
 0x1b1   : > { %13115 = vmatprep.subr.bf16.mxu0 %v14919_v24  ;;  %v2451_v55 = vshll.u32 %v16001_v48, 16  ;;  %v2455_v30 = vshrl.u32 %v16001_v48, 16 }
 0x1b3   : > { %v2453_v7 = vrot.slane %v2451_v55, 1 }
 0x1b4   : > { %13116 = vmatpush3.bf16.msra.mxu0 %v14919_v24  ;;  %v16035_v24 = vld [vmem:[%s15702_s12 + $0x44] sm:$0xff]  }
 0x1b5   : > { %13117 = vmatprep.subr.bf16.mxu0 %v14924_v27  ;;  %v2454_v33 = vsel %vm517_vm0, %v2449_v56, %v2453_v7  ;;  %v2457_v60 = vor.u32 %v2455_v30, %v2453_v7  ;;  %v2527_v56 = vshrl.u32 %v16056_v43, 16  ;;  %v2531_v7 = vshll.u32 %v16059_v49, 16  ;;  %v16068_v30 = vld [vmem:[%s15702_s12 + $0x6c] sm:$0xff]  }
 0x1b6   : > { %v2539_v61 = vshll.u32 %v16068_v30, 16  ;;  %v2543_v5 = vshrl.u32 %v16068_v30, 16 }
 0x1b7   : > { %13070 = vmatmul.mubr.bf16.gmra.mrb[4].mxu0 %v14918_v15  ;;  %v2462_v4 = vsel %vm517_vm0, %v2457_v60, %v2461_v58  ;;  %v2491_v15 = vshll.u32 %v16031_v1, 16  ;;  %v2533_v57 = vrot.slane %v2531_v7, 1  ;;  %v16071_v58 = vld [vmem:[%s15702_s12 + $0x74] sm:$0xff]   ;;  %v16073_v60 = vld [vmem:[#allocation6 + $0x180] sm:$0xff]  }
 0x1b8   : > { %13073 = vmatprep.mubr.bf16.mxu0 %v14920_v11  ;;  %13118 = vmatpush3.bf16.msra.mxu0 %v14924_v27  ;;  %v14957_v27 = vld [vmem:[#allocation6 + $0x150] sm:$0xff]   ;;  %v2478_v11 = vsel %vm517_vm0, %v2473_v2, %v2477_v12  ;;  %v16119_v7 = vld [vmem:[%s15702_s12 + $0xac] sm:$0xff]  }
 0x1b9   : > { %13119 = vmatprep.subr.bf16.mxu0 %v14927_v38  ;;  %v2537_v10 = vor.u32 %v2535_v3, %v2533_v57 }
 0x1bc   : > { %13120 = vmatpush3.bf16.msra.mxu0 %v14927_v38  ;;  %v2487_v38 = vshrl.u32 %v16022_v63, 16 }
 0x1bd   : > { %13121 = vmatprep.subr.bf16.mxu0 %v14932_v16 }
 0x1bf   : > { %13074 = vmatmul.mubr.bf16.gmra.mrb[8].mxu0 %v14921_v19  ;;  %v2495_v19 = vshrl.u32 %v16031_v1, 16 }
 0x1c0   : > { %13077 = vmatprep.mubr.bf16.mxu0 %v14922_v20  ;;  %13122 = vmatpush3.bf16.msra.mxu0 %v14932_v16  ;;  %v2486_v16 = vsel %vm517_vm0, %v2481_v13, %v2485_v14  ;;  %v2499_v20 = vshll.u32 %v16035_v24, 16  ;;  %v16086_v13 = vld [vmem:[%s15702_s12 + $0x84] sm:$0xff]  }
 0x1c1   : > { %13123 = vmatprep.subr.bf16.mxu0 %v14935_v21 }
 0x1c4   : > { %13124 = vmatpush3.bf16.msra.mxu0 %v14935_v21  ;;  %v14960_v21 = vld [vmem:[#allocation6 + $0x158] sm:$0xff]  }
 0x1c5   : > { %13125 = vmatprep.subr.bf16.mxu0 %v14940_v22 }
 0x1c7   : > { %13078 = vmatmul.mubr.bf16.gmra.mrb[12].mxu0 %v14923_v23  ;;  %v16044_v23 = vld [vmem:[%s15702_s12 + $0x4c] sm:$0xff]  }
 0x1c8   : > { %13081 = vmatprep.mubr.bf16.mxu0 %v14925_v26  ;;  %13126 = vmatpush3.bf16.msra.mxu0 %v14940_v22  ;;  %v2493_v22 = vrot.slane %v2491_v15, 1  ;;  %v2489_v26 = vor.u32 %v2487_v38, %v2485_v14  ;;  %v2555_v14 = vshll.u32 %v16083_v9, 16  ;;  %v2551_v15 = vshrl.u32 %v16071_v58, 16 }
 0x1c9   : > { %13127 = vmatprep.subr.bf16.mxu0 %v14943_v28  ;;  %v2559_v38 = vshrl.u32 %v16083_v9, 16 }
 0x1cc   : > { %13128 = vmatpush3.bf16.msra.mxu0 %v14943_v28  ;;  %v2497_v28 = vor.u32 %v2495_v19, %v2493_v22  ;;  %v2557_v19 = vrot.slane %v2555_v14, 1  ;;  %v16134_v14 = vld [vmem:[%s15702_s12 + $0xc4] sm:$0xff]  }
 0x1cd   : > { %13177 = vmatprep.subr.bf16.mxu0 %v15980_v29 }
 0x1cf   : > { %13082 = vmatmul.mubr.bf16.gmra.mrb[16].mxu0 %v14926_v31  ;;  %v16047_v31 = vld [vmem:[%s15702_s12 + $0x54] sm:$0xff]  }
 0x1d0   : > { %13085 = vmatprep.mubr.bf16.mxu0 %v14928_v32  ;;  %v14965_v32 = vld [vmem:[#allocation6 + $0x160] sm:$0xff]   ;;  %v2519_v54 = vshrl.u32 %v16047_v31, 16 }
 0x1d7   : > { %13086 = vmatmul.mubr.bf16.gmra.mrb[20].mxu0 %v14929_v34  ;;  %v2507_v34 = vshll.u32 %v16044_v23, 16 }
 0x1d8   : > { %13089 = vmatprep.mubr.bf16.mxu0 %v14930_v35  ;;  %v2494_v35 = vsel %vm517_vm0, %v2489_v26, %v2493_v22  ;;  %v2561_v22 = vor.u32 %v2559_v38, %v2557_v19 }
 0x1df   : > { %13090 = vmatmul.mubr.bf16.gmra.mrb[24].mxu0 %v14931_v36  ;;  %v2503_v36 = vshrl.u32 %v16035_v24, 16 }
 0x1e0   : > { %13093 = vmatprep.mubr.bf16.mxu0 %v14933_v37 }
 0x1e7   : > { %13094 = vmatmul.mubr.bf16.gmra.mrb[28].mxu0 %v14934_v39  ;;  %v2511_v39 = vshrl.u32 %v16044_v23, 16 }
 0x1e8   : > { %13097 = vmatprep.mubr.bf16.mxu0 %v14936_v40  ;;  %v2515_v40 = vshll.u32 %v16047_v31, 16 }
 0x1ea   : > { %v2517_v47 = vrot.slane %v2515_v40, 1  ;;  %v16107_v40 = vld [vmem:[%s15702_s12 + $0x9c] sm:$0xff]  }
 0x1ef   : > { %13098 = vmatmul.mubr.bf16.gmra.mrb[32].mxu0 %v14937_v41  ;;  %v14968_v41 = vld [vmem:[#allocation6 + $0x168] sm:$0xff]  }
 0x1f0   : > { %13101 = vmatprep.mubr.bf16.mxu0 %v14938_v42  ;;  %v2509_v42 = vrot.slane %v2507_v34, 1  ;;  %v2567_v34 = vshrl.u32 %v16086_v13, 16 }
 0x1f7   : > { %13102 = vmatmul.mubr.bf16.gmra.mrb[36].mxu0 %v14939_v45 }
 0x1f8   : > { %13105 = vmatprep.mubr.bf16.mxu0 %v14941_v46  ;;  %v2513_v46 = vor.u32 %v2511_v39, %v2509_v42 }
 0x1fa   : > { %v2518_v55 = vsel %vm517_vm0, %v2513_v46, %v2517_v47  ;;  %v16110_v46 = vld [vmem:[%s15702_s12 + $0xa4] sm:$0xff]  }
 0x1ff   : > { %13106 = vmatmul.mubr.bf16.gmra.mrb[40].mxu0 %v14942_v50  ;;  %v14973_v50 = vld [vmem:[#allocation6 + $0x170] sm:$0xff]  }
 0x200   : > { %13109 = vmatprep.mubr.bf16.mxu0 %v14944_v51  ;;  %v2523_v51 = vshll.u32 %v16056_v43, 16 }
 0x202   : > { %v2525_v25 = vrot.slane %v2523_v51, 1 }
 0x204   : > { %v2529_v52 = vor.u32 %v2527_v56, %v2525_v25 }
 0x207   : > { %13110 = vmatmul.mubr.bf16.gmra.mrb[44].mxu0 %v14945_v18  ;;  %v14976_v18 = vld [vmem:[#allocation6 + $0x178] sm:$0xff]  }
 0x208   : > { %13129 = vmatprep.mubr.bf16.mxu0 %v2454_v33  ;;  %v2521_v33 = vor.u32 %v2519_v54, %v2517_v47  ;;  %v2587_v47 = vshll.u32 %v16107_v40, 16  ;;  %v2591_v54 = vshrl.u32 %v16107_v40, 16 }
 0x20a   : > { %v2526_v62 = vsel %vm517_vm0, %v2521_v33, %v2525_v25  ;;  %v2589_v56 = vrot.slane %v2587_v47, 1 }
 0x20c   : > { %v2593_v25 = vor.u32 %v2591_v54, %v2589_v56  ;;  %v3008_v54 = vrot.slane %v16007_v6, 1 }
 0x20f   : > { %13130 = vmatmul.mubr.bf16.vlgmr.msra.gmra.mrb[0].mxu0 %v2462_v4  ;;  %v2534_v4 = vsel %vm517_vm0, %v2529_v52, %v2533_v57  ;;  %v16122_v52 = vld [vmem:[%s15702_s12 + $0xb4] sm:$0xff]   ;;  %v2603_v57 = vshll.u32 %v16119_v7, 16 }
 0x210   : > { %13178 = vmatpush3.bf16.msra.mxu0 %v15980_v29  ;;  %13133 = vmatprep.mubr.bf16.mxu0 %v2470_v0  ;;  %v2501_v29 = vrot.slane %v2499_v20, 1  ;;  %v2547_v0 = vshll.u32 %v16071_v58, 16  ;;  %v16095_v20 = vld [vmem:[%s15702_s12 + $0x8c] sm:$0xff]  }
 0x211   : > { %13179 = vmatprep.subr.bf16.mxu0 %v14952_v8 }
 0x212   : > { %v2502_v37 = vsel %vm517_vm0, %v2497_v28, %v2501_v29  ;;  %v2505_v45 = vor.u32 %v2503_v36, %v2501_v29  ;;  %v2549_v2 = vrot.slane %v2547_v0, 1  ;;  %v16098_v28 = vld [vmem:[%s15702_s12 + $0x94] sm:$0xff]   ;;  %v2571_v29 = vshll.u32 %v16095_v20, 16 }
 0x213   : > { %v2575_v36 = vshrl.u32 %v16095_v20, 16  ;;  %v2583_v51 = vshrl.u32 %v16098_v28, 16  ;;  %v2605_v0 = vrot.slane %v2603_v57, 1 }
 0x214   : > { %13180 = vmatpush3.bf16.msra.mxu0 %v14952_v8  ;;  %v2510_v53 = vsel %vm517_vm0, %v2505_v45, %v2509_v42  ;;  %v2541_v8 = vrot.slane %v2539_v61, 1  ;;  %v2573_v39 = vrot.slane %v2571_v29, 1 }
 0x215   : > { %13181 = vmatprep.subr.bf16.mxu0 %v14957_v27 }
 0x216   : > { %v2545_v12 = vor.u32 %v2543_v5, %v2541_v8  ;;  %v2577_v42 = vor.u32 %v2575_v36, %v2573_v39  ;;  %v2611_v5 = vshll.u32 %v16122_v52, 16  ;;  %v2631_v36 = vshrl.u32 %v16134_v14, 16 }
 0x217   : > { %13134 = vmatmul.mubr.bf16.gmra.mrb[4].mxu0 %v2478_v11 }
 0x218   : > { %13137 = vmatprep.mubr.bf16.mxu0 %v2486_v16  ;;  %13182 = vmatpush3.bf16.msra.mxu0 %v14957_v27  ;;  %v2542_v27 = vsel %vm517_vm0, %v2537_v10, %v2541_v8  ;;  %v2550_v11 = vsel %vm517_vm0, %v2545_v12, %v2549_v2  ;;  %v2563_v16 = vshll.u32 %v16086_v13, 16  ;;  %v16131_v8 = vld [vmem:[%s15702_s12 + $0xbc] sm:$0xff]  }
 0x219   : > { %13183 = vmatprep.subr.bf16.mxu0 %v14960_v21 }
 0x21a   : > { %v2565_v26 = vrot.slane %v2563_v16, 1  ;;  %v2623_v16 = vshrl.u32 %v16131_v8, 16 }
 0x21c   : > { %13184 = vmatpush3.bf16.msra.mxu0 %v14960_v21  ;;  %v2553_v21 = vor.u32 %v2551_v15, %v2549_v2  ;;  %v2613_v2 = vrot.slane %v2611_v5, 1  ;;  %v3022_v5 = vrot.slane %v16047_v31, 1 }
 0x21d   : > { %13185 = vmatprep.subr.bf16.mxu0 %v14965_v32 }
 0x21f   : > { %13138 = vmatmul.mubr.bf16.gmra.mrb[8].mxu0 %v2494_v35  ;;  %v2566_v35 = vsel %vm517_vm0, %v2561_v22, %v2565_v26 }
 0x220   : > { %13141 = vmatprep.mubr.bf16.mxu0 %v2502_v37  ;;  %13186 = vmatpush3.bf16.msra.mxu0 %v14965_v32  ;;  %v2558_v32 = vsel %vm517_vm0, %v2553_v21, %v2557_v19  ;;  %v2579_v37 = vshll.u32 %v16098_v28, 16  ;;  %v2627_v19 = vshll.u32 %v16134_v14, 16 }
 0x221   : > { %13187 = vmatprep.subr.bf16.mxu0 %v14968_v41 }
 0x222   : > { %v2581_v45 = vrot.slane %v2579_v37, 1 }
 0x224   : > { %13188 = vmatpush3.bf16.msra.mxu0 %v14968_v41  ;;  %v2569_v41 = vor.u32 %v2567_v34, %v2565_v26  ;;  %v16143_v26 = vld [vmem:[%s15702_s12 + $0xcc] ss:$0 sps:$4 sm:$0x11]   ;;  %v2984_v34 = vld [vmem:[%s15702_s12 + $0xc] sm:$0xe] }
 0x225   : > { %13189 = vmatprep.subr.bf16.mxu0 %v14973_v50  ;;  %v2635_v37 = vshll.u32 %v16143_v26, 16 }
 0x227   : > { %13142 = vmatmul.mubr.bf16.gmra.mrb[12].mxu0 %v2510_v53  ;;  %v2582_v53 = vsel %vm517_vm0, %v2577_v42, %v2581_v45 }
 0x228   : > { %13145 = vmatprep.mubr.bf16.mxu0 %v2518_v55  ;;  %13190 = vmatpush3.bf16.msra.mxu0 %v14973_v50  ;;  %v2574_v50 = vsel %vm517_vm0, %v2569_v41, %v2573_v39  ;;  %v2595_v55 = vshll.u32 %v16110_v46, 16  ;;  %v11782_v41 = vcombine.low %v2984_v34, %v15995_v44 }
 0x229   : > { %13191 = vmatprep.subr.bf16.mxu0 %v14976_v18 }
 0x22a   : > { %v2597_v33 = vrot.slane %v2595_v55, 1  ;;  %v3005_v47 = vrot.slane %v11782_v41, 1  ;;  %v3010_v55 = vrot.slane %v16010_v17, 1  ;;  %v14983_v17 = vld [vmem:[#allocation6 + $0x198] sm:$0xff]  }
 0x22b   : > { %v14988_v41 = vld [vmem:[%s15702_s12 + $0x18] sm:$0xff]  }
 0x22c   : > { %13192 = vmatpush3.bf16.msra.mxu0 %v14976_v18  ;;  %v2585_v18 = vor.u32 %v2583_v51, %v2581_v45  ;;  %v2598_v3 = vsel %vm517_vm0, %v2593_v25, %v2597_v33  ;;  %v2637_v45 = vrot.slane %v2635_v37, 1  ;;  %v3011_v44 = vsel %vm1329_vm1, %v3008_v54, %v3010_v55 }
 0x22d   : > { %13241 = vmatprep.subr.bf16.mxu0 %v16073_v60  ;;  %v3014_v25 = vrot.slane %v16022_v63, 1 }
 0x22e   : > { %v2590_v61 = vsel %vm517_vm0, %v2585_v18, %v2589_v56  ;;  %v14981_v18 = vld [vmem:[#allocation6 + $0x188] sm:$0xff]  }
 0x22f   : > { %13146 = vmatmul.mubr.bf16.gmra.mrb[16].mxu0 %v2526_v62  ;;  %v2599_v62 = vshrl.u32 %v16110_v46, 16 }
 0x230   : > { %13149 = vmatprep.mubr.bf16.mxu0 %v2534_v4  ;;  %v2607_v4 = vshrl.u32 %v16119_v7, 16 }
 0x231   : > { %v2601_v10 = vor.u32 %v2599_v62, %v2597_v33  ;;  %v14982_v33 = vld [vmem:[#allocation6 + $0x190] sm:$0xff]  }
 0x232   : > { %v2609_v12 = vor.u32 %v2607_v4, %v2605_v0  ;;  %v3020_v4 = vrot.slane %v16044_v23, 1  ;;  %v14990_v23 = vld [vmem:[#allocation6 + $0x1c0] sm:$0xff]  }
 0x233   : > { %v2606_v15 = vsel %vm517_vm0, %v2601_v10, %v2605_v0  ;;  %v14987_v10 = vld [vmem:[#allocation6 + $0x1b8] sm:$0xff]  }
 0x234   : > { %v2614_v38 = vsel %vm517_vm0, %v2609_v12, %v2613_v2  ;;  %v3023_v0 = vsel %vm1329_vm1, %v3020_v4, %v3022_v5  ;;  %v3024_v12 = vrot.slane %v16056_v43, 1 }
 0x236   : > { %v3025_v31 = vsel %vm1329_vm1, %v3022_v5, %v3024_v12  ;;  %v15012_v5 = vld [vmem:[%s15702_s12 + $0xa8] sm:$0xff]  }
 0x237   : > { %13150 = vmatmul.mubr.bf16.gmra.mrb[20].mxu0 %v2542_v27  ;;  %v2619_v27 = vshll.u32 %v16131_v8, 16 }
 0x238   : > { %13153 = vmatprep.mubr.bf16.mxu0 %v2550_v11  ;;  %v2615_v11 = vshrl.u32 %v16122_v52, 16 }
 0x239   : > { %v2621_v21 = vrot.slane %v2619_v27, 1 }
 0x23a   : > { %v2617_v22 = vor.u32 %v2615_v11, %v2613_v2  ;;  %v3026_v2 = vrot.slane %v16059_v49, 1  ;;  %v3030_v11 = vrot.slane %v16071_v58, 1  ;;  %v3032_v49 = vrot.slane %v16083_v9, 1 }
 0x23b   : > { %v2625_v29 = vor.u32 %v2623_v16, %v2621_v21  ;;  %v3034_v16 = vrot.slane %v16086_v13, 1  ;;  %v3038_v58 = vrot.slane %v16098_v28, 1  ;;  %v3040_v9 = vrot.slane %v16107_v40, 1 }
 0x23c   : > { %v3027_v27 = vsel %vm1329_vm1, %v3024_v12, %v3026_v2  ;;  %v3042_v13 = vrot.slane %v16110_v46, 1  ;;  %v3046_v28 = vrot.slane %v16122_v52, 1  ;;  %v3048_v40 = vrot.slane %v16131_v8, 1  ;;  %v14993_v8 = vld [vmem:[#allocation6 + $0x1c8] sm:$0xff]   ;;  %v16237_v12 = vld [vmem:[%s15702_s12 + $0x1c] sm:$0xf] }
 0x23d   : > { %v3050_v46 = vrot.slane %v16134_v14, 1  ;;  %v14998_v14 = vld [vmem:[#allocation6 + $0x1d0] sm:$0xff]  }
 0x23e   : > { %v3043_v34 = vsel %vm1329_vm1, %v3040_v9, %v3042_v13  ;;  %v3049_v37 = vsel %vm1329_vm1, %v3046_v28, %v3048_v40 }
 0x23f   : > { %13154 = vmatmul.mubr.bf16.gmra.mrb[24].mxu0 %v2558_v32  ;;  %v2629_v32 = vrot.slane %v2627_v19, 1  ;;  %v3033_v19 = vsel %vm1329_vm1, %v3030_v11, %v3032_v49 }
 0x240   : > { %13157 = vmatprep.mubr.bf16.mxu0 %v2566_v35  ;;  %v2622_v35 = vsel %vm517_vm0, %v2617_v22, %v2621_v21  ;;  %v3035_v21 = vsel %vm1329_vm1, %v3032_v49, %v3034_v16  ;;  %v5235_v49 = vld [vmem:[%s17832_s1 + $0x38] sm:$0xff] }
 0x241   : > { %v2630_v39 = vsel %vm517_vm0, %v2625_v29, %v2629_v32  ;;  %v2633_v42 = vor.u32 %v2631_v36, %v2629_v32  ;;  %v3041_v32 = vsel %vm1329_vm1, %v3038_v58, %v3040_v9  ;;  %v5237_v9 = vld [vmem:[%s17832_s1 + $0x48] sm:$0xff] }
 0x243   : > { %v2638_v51 = vsel %vm517_vm0, %v2633_v42, %v2637_v45  ;;  %v14989_v42 = vld [vmem:[%s15702_s12 + $0x20] sm:$0xff]   ;;  %v14991_v45 = vld [vmem:[%s15702_s12 + $0x28] sm:$0xff]  }
 0x247   : > { %13158 = vmatmul.mubr.bf16.gmra.mrb[28].mxu0 %v2574_v50  ;;  %v3006_v50 = vrot.slane %v16001_v48, 1  ;;  %v3012_v48 = vrot.slane %v16019_v59, 1  ;;  %v14984_v59 = vld [vmem:[#allocation6 + $0x1a0] sm:$0xff]  }
 0x248   : > { %13161 = vmatprep.mubr.bf16.mxu0 %v2582_v53 }
 0x249   : > { %v3007_v53 = vsel %vm1329_vm1, %v3005_v47, %v3006_v50  ;;  %v3009_v56 = vsel %vm1329_vm1, %v3006_v50, %v3008_v54  ;;  %v3013_v57 = vsel %vm1329_vm1, %v3010_v55, %v3012_v48  ;;  %v3015_v6 = vsel %vm1329_vm1, %v3012_v48, %v3014_v25  ;;  %v14992_v47 = vld [vmem:[%s15702_s12 + $0x30] sm:$0xff]   ;;  %v14994_v50 = vld [vmem:[%s15702_s12 + $0x38] sm:$0xff]   ;;  %v14996_v54 = vld [vmem:[%s15702_s12 + $0x48] sm:$0xff]  }
 0x24a   : > { %v15009_v55 = vld [vmem:[#allocation6 + $0x1e8] sm:$0xff]   ;;  %v15017_v48 = vld [vmem:[#allocation6 + $0x1f8] sm:$0xff]  }
 0x24f   : > { %13162 = vmatmul.mubr.bf16.gmra.mrb[32].mxu0 %v2590_v61  ;;  %v3016_v61 = vrot.slane %v16031_v1, 1  ;;  %v14986_v1 = vld [vmem:[#allocation6 + $0x1b0] sm:$0xff]  }
 0x250   : > { %13165 = vmatprep.mubr.bf16.mxu0 %v2598_v3  ;;  %v14985_v3 = vld [vmem:[#allocation6 + $0x1a8] sm:$0xff]  }
 0x251   : > { %v3017_v62 = vsel %vm1329_vm1, %v3014_v25, %v3016_v61  ;;  %v16210_v25 = vld [vmem:[#allocation6 + $0x200] sm:$0xff]  }
 0x257   : > { %13166 = vmatmul.mubr.bf16.gmra.mrb[36].mxu0 %v2606_v15  ;;  %v3028_v15 = vrot.slane %v16068_v30, 1  ;;  %v3036_v30 = vrot.slane %v16095_v20, 1  ;;  %v3044_v20 = vrot.slane %v16119_v7, 1  ;;  %v3052_v7 = vrot.slane %v16143_v26, 1  ;;  %v15001_v26 = vld [vmem:[#allocation6 + $0x1d8] sm:$0xff]  }
 0x258   : > { %13169 = vmatprep.mubr.bf16.mxu0 %v2614_v38 }
 0x259   : > { %v3029_v38 = vsel %vm1329_vm1, %v3026_v2, %v3028_v15  ;;  %v3031_v43 = vsel %vm1329_vm1, %v3028_v15, %v3030_v11  ;;  %v3037_v22 = vsel %vm1329_vm1, %v3034_v16, %v3036_v30  ;;  %v3039_v29 = vsel %vm1329_vm1, %v3036_v30, %v3038_v58  ;;  %v5232_v2 = vld [vmem:[%s17832_s1 + $0x20] sm:$0xff]  ;;  %v5233_v15 = vld [vmem:[%s17832_s1 + $0x28] sm:$0xff]  ;;  %v5234_v11 = vld [vmem:[%s17832_s1 + $0x30] sm:$0xff] }
 0x25a   : > { %v3047_v36 = vsel %vm1329_vm1, %v3044_v20, %v3046_v28  ;;  %v3053_v52 = vsel %vm1329_vm1, %v3050_v46, %v3052_v7  ;;  %v5236_v16 = vld [vmem:[%s17832_s1 + $0x40] sm:$0xff]  ;;  %v5239_v28 = vld [vmem:[%s17832_s1 + $0x58] sm:$0xff] }
 0x25f   : > { %13170 = vmatmul.mubr.bf16.gmra.mrb[40].mxu0 %v2622_v35  ;;  %v3045_v35 = vsel %vm1329_vm1, %v3042_v13, %v3044_v20  ;;  %v5238_v13 = vld [vmem:[%s17832_s1 + $0x50] sm:$0xff] }
 0x260   : > { %13173 = vmatprep.mubr.bf16.mxu0 %v2630_v39  ;;  %v3051_v39 = vsel %vm1329_vm1, %v3048_v40, %v3050_v46  ;;  %v16273_v20 = vld [vmem:[%s15702_s12 + $0x30] sm:$0xff]  }
 0x261   : > { %v4142_v7 = vshll.u32 %v16273_v20, 16 }
 0x267   : > { %13174 = vmatmul.mubr.bf16.gmra.mrb[44].mxu0 %v2638_v51  ;;  %v15006_v51 = vld [vmem:[#allocation6 + $0x1e0] sm:$0xff]  }
 0x268   : > { %13193 = vmatprep.mubr.bf16.mxu0 %v3007_v53  ;;  %v14995_v53 = vld [vmem:[%s15702_s12 + $0x40] sm:$0xff]  }
 0x26f   : > { %13194 = vmatmul.mubr.bf16.vlgmr.msra.gmra.mrb[0].mxu0 %v3009_v56  ;;  %v15014_v56 = vld [vmem:[#allocation6 + $0x1f0] sm:$0xff]  }
 0x270   : > { %13242 = vmatpush3.bf16.msra.mxu0 %v16073_v60  ;;  %13197 = vmatprep.mubr.bf16.mxu0 %v3011_v44  ;;  %v3018_v60 = vrot.slane %v16035_v24, 1  ;;  %v14997_v44 = vld [vmem:[%s15702_s12 + $0x50] sm:$0xff]  }
 0x271   : > { %13243 = vmatprep.subr.bf16.mxu0 %v14981_v18 }
 0x272   : > { %v3019_v63 = vsel %vm1329_vm1, %v3016_v61, %v3018_v60  ;;  %v3021_v24 = vsel %vm1329_vm1, %v3018_v60, %v3020_v4  ;;  %v15005_v61 = vld [vmem:[%s15702_s12 + $0x80] sm:$0xff]   ;;  %v15007_v60 = vld [vmem:[%s15702_s12 + $0x88] sm:$0xff]  }
 0x273   : > { %v15011_v4 = vld [vmem:[%s15702_s12 + $0xa0] sm:$0xff]  }
 0x274   : > { %13244 = vmatpush3.bf16.msra.mxu0 %v14981_v18  ;;  %v14999_v18 = vld [vmem:[%s15702_s12 + $0x58] sm:$0xff]  }
 0x275   : > { %13245 = vmatprep.subr.bf16.mxu0 %v14982_v33 }
 0x277   : > { %13198 = vmatmul.mubr.bf16.gmra.mrb[4].mxu0 %v3013_v57  ;;  %v15002_v57 = vld [vmem:[%s15702_s12 + $0x68] sm:$0xff]  }
 0x278   : > { %13201 = vmatprep.mubr.bf16.mxu0 %v3015_v6  ;;  %13246 = vmatpush3.bf16.msra.mxu0 %v14982_v33  ;;  %v15000_v33 = vld [vmem:[%s15702_s12 + $0x60] sm:$0xff]   ;;  %v15003_v6 = vld [vmem:[%s15702_s12 + $0x70] sm:$0xff]  }
 0x279   : > { %13247 = vmatprep.subr.bf16.mxu0 %v14983_v17 }
 0x27c   : > { %13248 = vmatpush3.bf16.msra.mxu0 %v14983_v17  ;;  %v15004_v17 = vld [vmem:[%s15702_s12 + $0x78] sm:$0xff]  }
 0x27d   : > { %13249 = vmatprep.subr.bf16.mxu0 %v14984_v59 }
 0x27f   : > { %13202 = vmatmul.mubr.bf16.gmra.mrb[8].mxu0 %v3017_v62  ;;  %v15010_v62 = vld [vmem:[%s15702_s12 + $0x98] sm:$0xff]  }
 0x280   : > { %13205 = vmatprep.mubr.bf16.mxu0 %v3019_v63  ;;  %13250 = vmatpush3.bf16.msra.mxu0 %v14984_v59  ;;  %v15008_v59 = vld [vmem:[%s15702_s12 + $0x90] sm:$0xff]   ;;  %v5228_v63 = vld [vmem:[%s17832_s1] sm:$0xff] }
 0x281   : > { %13251 = vmatprep.subr.bf16.mxu0 %v14985_v3 }
 0x284   : > { %13252 = vmatpush3.bf16.msra.mxu0 %v14985_v3  ;;  %v15478_v3 = vmov 0  }
 0x285   : > { %13253 = vmatprep.subr.bf16.mxu0 %v14986_v1  ;;  %14854 = vset.pattern.permute.xlu0 %v15478_v3  ;;  %300 = vst [vmem:[#allocation2] sm:$0xf] %v15478_v3  ;;  %301 = vst [vmem:[#allocation2 + $0x4] sm:$0xf] %v15478_v3 }
 0x286   : > { %302 = vst [vmem:[#allocation2 + $0x8] sm:$0xf] %v15478_v3  ;;  %303 = vst [vmem:[#allocation2 + $0xc] sm:$0xf] %v15478_v3  ;;  %5278 = vperm.xlu0 %14854, %v5228_v63   ;;  %14855 = vset.pattern.permute.xlu1 %v15478_v3  ;;  %v15031_v63 = vld [vmem:[#allocation6 + $0x210] sm:$0xff]  }
 0x287   : > { %13206 = vmatmul.mubr.bf16.gmra.mrb[12].mxu0 %v3021_v24  ;;  %304 = vst [vmem:[#allocation2 + $0x10] sm:$0xf] %v15478_v3  ;;  %305 = vst [vmem:[#allocation2 + $0x14] sm:$0xf] %v15478_v3  ;;  %v5229_v24 = vld [vmem:[%s17832_s1 + $0x8] sm:$0xff] }
 0x288   : > { %13209 = vmatprep.mubr.bf16.mxu0 %v3023_v0  ;;  %13254 = vmatpush3.bf16.msra.mxu0 %v14986_v1  ;;  %306 = vst [vmem:[#allocation2 + $0xcc] sm:$0xf] %v15478_v3  ;;  %307 = vst [vmem:[#allocation2 + $0xd0] sm:$0xf] %v15478_v3  ;;  %v5230_v1 = vld [vmem:[%s17832_s1 + $0x10] sm:$0xff] }
 0x289   : > { %13255 = vmatprep.subr.bf16.mxu0 %v14987_v10  ;;  %308 = vst [vmem:[#allocation2 + $0xd4] sm:$0xf] %v15478_v3  ;;  %309 = vst [vmem:[#allocation2 + $0xd8] sm:$0xf] %v15478_v3  ;;  %v3929_v0 = vld [vmem:[%s15702_s12 + $0x18] sm:$0xf]  ;;  %5288 = vperm.xlu1 %14855, %v5230_v1  }
 0x28a   : > { %5283 = vperm.xlu0 %14854, %v5229_v24   ;;  %v5247_v3 = vld [vmem:[%s17832_s1 + $0x98] sm:$0xff] }
 0x28c   : > { %13256 = vmatpush3.bf16.msra.mxu0 %v14987_v10  ;;  %v5231_v10 = vld [vmem:[%s17832_s1 + $0x18] sm:$0xff] }
 0x28d   : > { %13305 = vmatprep.subr.bf16.mxu0 %v14990_v23  ;;  %5293 = vperm.xlu1 %14855, %v5231_v10  }
 0x28e   : > { %5298 = vperm.xlu0 %14854, %v5232_v2   ;;  %v15034_v2 = vld [vmem:[#allocation6 + $0x218] sm:$0xff]  }
 0x28f   : > { %13210 = vmatmul.mubr.bf16.gmra.mrb[16].mxu0 %v3025_v31  ;;  %v15015_v31 = vld [vmem:[%s15702_s12 + $0xb8] sm:$0xff]  }
 0x290   : > { %13213 = vmatprep.mubr.bf16.mxu0 %v3027_v27  ;;  %v11823_v27 = vcombine.low %v3929_v0, %v16237_v12 }
 0x291   : > { %5303 = vperm.xlu1 %14855, %v5233_v15   ;;  %v5250_v15 = vld [vmem:[%s17832_s1 + $0xb0] sm:$0xff] }
 0x292   : > { %5308 = vperm.xlu0 %14854, %v5234_v11   ;;  %v4119_v30 = vshrl.u32 %v11823_v27, 16 }
 0x295   : > { %5313 = vperm.xlu1 %14855, %v5235_v49  }
 0x296   : > { %5318 = vperm.xlu0 %14854, %v5236_v16   ;;  %v16346_v16 = vld [vmem:[%s15702_s12 + $0x60] sm:$0xff]  }
 0x297   : > { %13214 = vmatmul.mubr.bf16.gmra.mrb[20].mxu0 %v3029_v38  ;;  %v16252_v38 = vld [vmem:[%s15702_s12 + $0x20] sm:$0xff]  }
 0x298   : > { %13217 = vmatprep.mubr.bf16.mxu0 %v3031_v43  ;;  %v4121_v43 = vshll.u32 %v11823_v27, 16  ;;  %v4130_v46 = vshrl.u32 %v16252_v38, 16  ;;  %v5249_v27 = vld [vmem:[%s17832_s1 + $0xa8] sm:$0xff] }
 0x299   : > { %5323 = vperm.xlu1 %14855, %v5237_v9  }
 0x29a   : > { %v4123_v58 = vrot.slane %v4121_v43, 1  ;;  %5328 = vperm.xlu0 %14854, %v5238_v13  }
 0x29d   : > { %5333 = vperm.xlu1 %14855, %v5239_v28   ;;  %v15042_v28 = vld [vmem:[#allocation6 + $0x228] sm:$0xff]  }
 0x29f   : > { %13218 = vmatmul.mubr.bf16.gmra.mrb[24].mxu0 %v3033_v19  ;;  %v15016_v19 = vld [vmem:[%s15702_s12 + $0xc0] sm:$0xff]  }
 0x2a0   : > { %13221 = vmatprep.mubr.bf16.mxu0 %v3035_v21  ;;  %v15018_v21 = vld [vmem:[%s15702_s12 + $0xc8] sm:$0xff]  }
 0x2a7   : > { %13222 = vmatmul.mubr.bf16.gmra.mrb[28].mxu0 %v3037_v22  ;;  %v4126_v22 = vshll.u32 %v16252_v38, 16 }
 0x2a8   : > { %13225 = vmatprep.mubr.bf16.mxu0 %v3039_v29  ;;  %v16264_v29 = vld [vmem:[%s15702_s12 + $0x28] sm:$0xff]  }
 0x2a9   : > { %v4134_v40 = vshll.u32 %v16264_v29, 16 }
 0x2af   : > { %13226 = vmatmul.mubr.bf16.gmra.mrb[32].mxu0 %v3041_v32  ;;  %v4124_v32 = vor.u32 %v4123_v58, %v4119_v30  ;;  %v5252_v58 = vld [vmem:[%s17832_s1 + $0xc0] sm:$0xff] }
 0x2b0   : > { %13229 = vmatprep.mubr.bf16.mxu0 %v3043_v34  ;;  %v4128_v34 = vrot.slane %v4126_v22, 1 }
 0x2b7   : > { %13230 = vmatmul.mubr.bf16.gmra.mrb[36].mxu0 %v3045_v35  ;;  %v5240_v35 = vld [vmem:[%s17832_s1 + $0x60] sm:$0xff] }
 0x2b8   : > { %13233 = vmatprep.mubr.bf16.mxu0 %v3047_v36  ;;  %v15019_v36 = vld [vmem:[%s15702_s12 + $0xd0] sm:$0xff]   ;;  %5338 = vperm.xlu0 %14854, %v5240_v35  }
 0x2bf   : > { %13234 = vmatmul.mubr.bf16.gmra.mrb[40].mxu0 %v3049_v37  ;;  %v4129_v37 = vsel %vm517_vm0, %v4124_v32, %v4128_v34 }
 0x2c0   : > { %13237 = vmatprep.mubr.bf16.mxu0 %v3051_v39  ;;  %v4138_v39 = vshrl.u32 %v16264_v29, 16 }
 0x2c7   : > { %13238 = vmatmul.mubr.bf16.gmra.mrb[44].mxu0 %v3053_v52  ;;  %v4136_v52 = vrot.slane %v4134_v40, 1  ;;  %v5253_v40 = vld [vmem:[%s17832_s1 + $0xc8] sm:$0xff] }
 0x2c8   : > { %13257 = vmatprep.mubr.bf16.mxu0 %v14988_v41  ;;  %v16288_v41 = vld [vmem:[%s15702_s12 + $0x38] sm:$0xff]  }
 0x2cf   : > { %13258 = vmatmul.mubr.bf16.vlgmr.msra.gmra.mrb[0].mxu0 %v14989_v42  ;;  %v5241_v42 = vld [vmem:[%s17832_s1 + $0x68] sm:$0xff] }
 0x2d0   : > { %13306 = vmatpush3.bf16.msra.mxu0 %v14990_v23  ;;  %13261 = vmatprep.mubr.bf16.mxu0 %v14991_v45  ;;  %v15013_v23 = vld [vmem:[%s15702_s12 + $0xb0] sm:$0xff]  }
 0x2d1   : > { %13307 = vmatprep.subr.bf16.mxu0 %v14993_v8  ;;  %v5242_v45 = vld [vmem:[%s17832_s1 + $0x70] sm:$0xff]  ;;  %5343 = vperm.xlu1 %14855, %v5241_v42   ;;  %v15047_v42 = vld [vmem:[#allocation6 + $0x230] sm:$0xff]  }
 0x2d2   : > { %5348 = vperm.xlu0 %14854, %v5242_v45   ;;  %v5255_v45 = vld [vmem:[%s17832_s1 + $0xd8] sm:$0xff] }
 0x2d4   : > { %13308 = vmatpush3.bf16.msra.mxu0 %v14993_v8  ;;  %v4132_v8 = vor.u32 %v4130_v46, %v4128_v34  ;;  %v4190_v34 = vshll.u32 %v16346_v16, 16  ;;  %v5254_v46 = vld [vmem:[%s17832_s1 + $0xd0] sm:$0xff] }
 0x2d5   : > { %13309 = vmatprep.subr.bf16.mxu0 %v14998_v14 }
 0x2d7   : > { %13262 = vmatmul.mubr.bf16.gmra.mrb[4].mxu0 %v14992_v47  ;;  %v4144_v47 = vrot.slane %v4142_v7, 1  ;;  %v4192_v7 = vrot.slane %v4190_v34, 1  ;;  %v5265_v34 = vld [vmem:[%s17832_s1 + $0x128] sm:$0xff] }
 0x2d8   : > { %13265 = vmatprep.mubr.bf16.mxu0 %v14994_v50  ;;  %13310 = vmatpush3.bf16.msra.mxu0 %v14998_v14  ;;  %v4140_v14 = vor.u32 %v4138_v39, %v4136_v52  ;;  %v16297_v50 = vld [vmem:[%s15702_s12 + $0x40] sm:$0xff]  }
 0x2d9   : > { %13311 = vmatprep.subr.bf16.mxu0 %v15001_v26  ;;  %v4162_v1 = vshrl.u32 %v16297_v50, 16 }
 0x2dc   : > { %13312 = vmatpush3.bf16.msra.mxu0 %v15001_v26  ;;  %v5243_v26 = vld [vmem:[%s17832_s1 + $0x78] sm:$0xff] }
 0x2dd   : > { %13313 = vmatprep.subr.bf16.mxu0 %v15006_v51  ;;  %5353 = vperm.xlu1 %14855, %v5243_v26   ;;  %v4194_v26 = vshrl.u32 %v16346_v16, 16 }
 0x2df   : > { %13266 = vmatmul.mubr.bf16.gmra.mrb[8].mxu0 %v14995_v53  ;;  %v4150_v53 = vshll.u32 %v16288_v41, 16 }
 0x2e0   : > { %13269 = vmatprep.mubr.bf16.mxu0 %v14996_v54  ;;  %13314 = vmatpush3.bf16.msra.mxu0 %v15006_v51  ;;  %v5244_v51 = vld [vmem:[%s17832_s1 + $0x80] sm:$0xff]  ;;  %v4137_v54 = vsel %vm517_vm0, %v4132_v8, %v4136_v52  ;;  %v16370_v52 = vld [vmem:[%s15702_s12 + $0x70] sm:$0xff]  }
 0x2e1   : > { %13315 = vmatprep.subr.bf16.mxu0 %v15009_v55  ;;  %5358 = vperm.xlu0 %14854, %v5244_v51  }
 0x2e4   : > { %13316 = vmatpush3.bf16.msra.mxu0 %v15009_v55  ;;  %v4146_v55 = vshrl.u32 %v16273_v20, 16 }
 0x2e5   : > { %13317 = vmatprep.subr.bf16.mxu0 %v15014_v56 }
 0x2e7   : > { %13270 = vmatmul.mubr.bf16.gmra.mrb[12].mxu0 %v14997_v44  ;;  %v15026_v44 = vld [vmem:[#allocation6 + $0x208] sm:$0xff]  }
 0x2e8   : > { %13273 = vmatprep.mubr.bf16.mxu0 %v14999_v18  ;;  %13318 = vmatpush3.bf16.msra.mxu0 %v15014_v56  ;;  %v4145_v56 = vsel %vm517_vm0, %v4140_v14, %v4144_v47  ;;  %v4154_v18 = vshrl.u32 %v16288_v41, 16  ;;  %v5256_v14 = vld [vmem:[%s17832_s1 + $0xe0] sm:$0xff] }
 0x2e9   : > { %13319 = vmatprep.subr.bf16.mxu0 %v15017_v48 }
 0x2ec   : > { %13320 = vmatpush3.bf16.msra.mxu0 %v15017_v48  ;;  %v4158_v48 = vshll.u32 %v16297_v50, 16 }
 0x2ed   : > { %13369 = vmatprep.subr.bf16.mxu0 %v16210_v25 }
 0x2ef   : > { %13274 = vmatmul.mubr.bf16.gmra.mrb[16].mxu0 %v15000_v33  ;;  %v4152_v33 = vrot.slane %v4150_v53, 1 }
 0x2f0   : > { %13277 = vmatprep.mubr.bf16.mxu0 %v15002_v57  ;;  %v16312_v57 = vld [vmem:[%s15702_s12 + $0x48] sm:$0xff]  }
 0x2f1   : > { %v4170_v0 = vshrl.u32 %v16312_v57, 16 }
 0x2f7   : > { %13278 = vmatmul.mubr.bf16.gmra.mrb[20].mxu0 %v15003_v6  ;;  %v5245_v6 = vld [vmem:[%s17832_s1 + $0x88] sm:$0xff] }
 0x2f8   : > { %13281 = vmatprep.mubr.bf16.mxu0 %v15004_v17  ;;  %v5246_v17 = vld [vmem:[%s17832_s1 + $0x90] sm:$0xff]  ;;  %5363 = vperm.xlu1 %14855, %v5245_v6  }
 0x2f9   : > { %5368 = vperm.xlu0 %14854, %v5246_v17  }
 0x2fc   : > { %5373 = vperm.xlu1 %14855, %v5247_v3  }
 0x2ff   : > { %13282 = vmatmul.mubr.bf16.gmra.mrb[24].mxu0 %v15005_v61  ;;  %v4148_v61 = vor.u32 %v4146_v55, %v4144_v47  ;;  %v15050_v55 = vld [vmem:[#allocation6 + $0x238] sm:$0xff]  }
 0x300   : > { %13285 = vmatprep.mubr.bf16.mxu0 %v15007_v60  ;;  %v4156_v60 = vor.u32 %v4154_v18, %v4152_v33  ;;  %5383 = vperm.xlu1 %14855, %v5249_v27   ;;  %v5257_v18 = vld [vmem:[%s17832_s1 + $0xe8] sm:$0xff] }
 0x307   : > { %13286 = vmatmul.mubr.bf16.gmra.mrb[28].mxu0 %v15008_v59  ;;  %v4160_v59 = vrot.slane %v4158_v48, 1  ;;  %v5258_v48 = vld [vmem:[%s17832_s1 + $0xf0] sm:$0xff] }
 0x308   : > { %13289 = vmatprep.mubr.bf16.mxu0 %v15010_v62  ;;  %v16322_v62 = vld [vmem:[%s15702_s12 + $0x50] sm:$0xff]  }
 0x309   : > { %v4161_v24 = vsel %vm517_vm0, %v4156_v60, %v4160_v59  ;;  %v4174_v10 = vshll.u32 %v16322_v62, 16  ;;  %v4164_v11 = vor.u32 %v4162_v1, %v4160_v59  ;;  %v4178_v9 = vshrl.u32 %v16322_v62, 16  ;;  %v5259_v60 = vld [vmem:[%s17832_s1 + $0xf8] sm:$0xff] }
 0x30b   : > { %v4176_v49 = vrot.slane %v4174_v10, 1  ;;  %v5261_v10 = vld [vmem:[%s17832_s1 + $0x108] sm:$0xff] }
 0x30f   : > { %13290 = vmatmul.mubr.bf16.gmra.mrb[32].mxu0 %v15011_v4  ;;  %v4166_v4 = vshll.u32 %v16312_v57, 16 }
 0x310   : > { %13293 = vmatprep.mubr.bf16.mxu0 %v15012_v5  ;;  %v4153_v5 = vsel %vm517_vm0, %v4148_v61, %v4152_v33  ;;  %v4196_v33 = vor.u32 %v4194_v26, %v4192_v7  ;;  %v16394_v61 = vld [vmem:[%s15702_s12 + $0x80] sm:$0xff]  }
 0x311   : > { %v4222_v1 = vshll.u32 %v16394_v61, 16 }
 0x317   : > { %13294 = vmatmul.mubr.bf16.gmra.mrb[36].mxu0 %v15013_v23  ;;  %v4168_v23 = vrot.slane %v4166_v4, 1  ;;  %v4210_v4 = vshrl.u32 %v16370_v52, 16 }
 0x318   : > { %13297 = vmatprep.mubr.bf16.mxu0 %v15015_v31  ;;  %v16337_v31 = vld [vmem:[%s15702_s12 + $0x58] sm:$0xff]  }
 0x319   : > { %v4172_v43 = vor.u32 %v4170_v0, %v4168_v23  ;;  %v4182_v30 = vshll.u32 %v16337_v31, 16  ;;  %v4169_v22 = vsel %vm517_vm0, %v4164_v11, %v4168_v23  ;;  %v4186_v32 = vshrl.u32 %v16337_v31, 16  ;;  %v16409_v0 = vld [vmem:[%s15702_s12 + $0x88] sm:$0xff]   ;;  %v16418_v11 = vld [vmem:[%s15702_s12 + $0x90] sm:$0xff]  }
 0x31b   : > { %v4177_v13 = vsel %vm517_vm0, %v4172_v43, %v4176_v49  ;;  %v4184_v35 = vrot.slane %v4182_v30, 1  ;;  %v5263_v43 = vld [vmem:[%s17832_s1 + $0x118] sm:$0xff]  ;;  %v4226_v30 = vshrl.u32 %v16394_v61, 16 }
 0x31d   : > { %v4188_v39 = vor.u32 %v4186_v32, %v4184_v35  ;;  %v16433_v32 = vld [vmem:[%s15702_s12 + $0x98] sm:$0xff]  }
 0x31f   : > { %13298 = vmatmul.mubr.bf16.gmra.mrb[40].mxu0 %v15016_v19  ;;  %v15039_v19 = vld [vmem:[#allocation6 + $0x220] sm:$0xff]   ;;  %v4193_v51 = vsel %vm517_vm0, %v4188_v39, %v4192_v7  ;;  %v5267_v39 = vld [vmem:[%s17832_s1 + $0x138] sm:$0xff]  ;;  %v4246_v7 = vshll.u32 %v16433_v32, 16 }
 0x320   : > { %13301 = vmatprep.mubr.bf16.mxu0 %v15018_v21  ;;  %v5251_v21 = vld [vmem:[%s17832_s1 + $0xb8] sm:$0xff] }
 0x321   : > { %5393 = vperm.xlu1 %14855, %v5251_v21  }
 0x325   : > { %5403 = vperm.xlu1 %14855, %v5253_v40  }
 0x327   : > { %13302 = vmatmul.mubr.bf16.gmra.mrb[44].mxu0 %v15019_v36  ;;  %v16361_v36 = vld [vmem:[%s15702_s12 + $0x68] sm:$0xff]  }
 0x328   : > { %13321 = vmatprep.mubr.bf16.mxu0 %v4129_v37  ;;  %v4180_v37 = vor.u32 %v4178_v9, %v4176_v49  ;;  %v4198_v8 = vshll.u32 %v16361_v36, 16  ;;  %v4202_v53 = vshrl.u32 %v16361_v36, 16  ;;  %v4230_v49 = vshll.u32 %v16409_v0, 16 }
 0x329   : > { %5413 = vperm.xlu1 %14855, %v5255_v45   ;;  %v4238_v9 = vshll.u32 %v16418_v11, 16 }
 0x32a   : > { %v4185_v47 = vsel %vm517_vm0, %v4180_v37, %v4184_v35  ;;  %v16442_v37 = vld [vmem:[%s15702_s12 + $0xa0] sm:$0xff]  }
 0x32b   : > { %v4254_v26 = vshll.u32 %v16442_v37, 16 }
 0x32d   : > { %5423 = vperm.xlu1 %14855, %v5257_v18  }
 0x32f   : > { %13322 = vmatmul.mubr.bf16.vlgmr.msra.gmra.mrb[0].mxu0 %v4137_v54  ;;  %v4206_v54 = vshll.u32 %v16370_v52, 16 }
 0x330   : > { %13370 = vmatpush3.bf16.msra.mxu0 %v16210_v25  ;;  %13325 = vmatprep.mubr.bf16.mxu0 %v4145_v56  ;;  %v5248_v25 = vld [vmem:[%s17832_s1 + $0xa0] sm:$0xff]  ;;  %v4200_v56 = vrot.slane %v4198_v8, 1  ;;  %v4242_v8 = vshrl.u32 %v16418_v11, 16 }
 0x331   : > { %13371 = vmatprep.subr.bf16.mxu0 %v15026_v44  ;;  %5378 = vperm.xlu0 %14854, %v5248_v25   ;;  %v4208_v17 = vrot.slane %v4206_v54, 1  ;;  %v5269_v54 = vld [vmem:[%s17832_s1 + $0x148] sm:$0xff] }
 0x332   : > { %v4204_v6 = vor.u32 %v4202_v53, %v4200_v56  ;;  %v4201_v3 = vsel %vm517_vm0, %v4196_v33, %v4200_v56  ;;  %5433 = vperm.xlu1 %14855, %v5259_v60   ;;  %v16457_v53 = vld [vmem:[%s15702_s12 + $0xa8] sm:$0xff]   ;;  %v16466_v33 = vld [vmem:[%s15702_s12 + $0xb0] sm:$0xff]   ;;  %v5272_v60 = vld [vmem:[%s17832_s1 + $0x160] sm:$0xff] }
 0x333   : > { %v4212_v23 = vor.u32 %v4210_v4, %v4208_v17  ;;  %v4266_v4 = vshrl.u32 %v16457_v53, 16 }
 0x334   : > { %13372 = vmatpush3.bf16.msra.mxu0 %v15026_v44  ;;  %v16385_v44 = vld [vmem:[%s15702_s12 + $0x78] sm:$0xff]   ;;  %v4209_v25 = vsel %vm517_vm0, %v4204_v6, %v4208_v17  ;;  %v4262_v17 = vshll.u32 %v16457_v53, 16 }
 0x335   : > { %13373 = vmatprep.subr.bf16.mxu0 %v15031_v63  ;;  %5388 = vperm.xlu0 %14854, %v5250_v15   ;;  %v4214_v59 = vshll.u32 %v16385_v44, 16  ;;  %v4224_v15 = vrot.slane %v4222_v1, 1  ;;  %v5271_v6 = vld [vmem:[%s17832_s1 + $0x158] sm:$0xff] }
 0x336   : > { %5443 = vperm.xlu1 %14855, %v5261_v10   ;;  %v16481_v1 = vld [vmem:[%s15702_s12 + $0xb8] sm:$0xff]   ;;  %v5274_v10 = vld [vmem:[%s17832_s1 + $0x170] sm:$0xff] }
 0x337   : > { %13326 = vmatmul.mubr.bf16.gmra.mrb[4].mxu0 %v4153_v5  ;;  %v4218_v5 = vshrl.u32 %v16385_v44, 16  ;;  %v4228_v35 = vor.u32 %v4226_v30, %v4224_v15 }
 0x338   : > { %13329 = vmatprep.mubr.bf16.mxu0 %v4161_v24  ;;  %13374 = vmatpush3.bf16.msra.mxu0 %v15031_v63  ;;  %v5260_v63 = vld [vmem:[%s17832_s1 + $0x100] sm:$0xff]  ;;  %v4216_v24 = vrot.slane %v4214_v59, 1 }
 0x339   : > { %13375 = vmatprep.subr.bf16.mxu0 %v15034_v2  ;;  %5398 = vperm.xlu0 %14854, %v5252_v58  }
 0x33a   : > { %v4220_v27 = vor.u32 %v4218_v5, %v4216_v24  ;;  %v4217_v21 = vsel %vm517_vm0, %v4212_v23, %v4216_v24  ;;  %5453 = vperm.xlu1 %14855, %v5263_v43   ;;  %v4264_v5 = vrot.slane %v4262_v17, 1  ;;  %v5273_v24 = vld [vmem:[%s17832_s1 + $0x168] sm:$0xff]  ;;  %v5275_v43 = vld [vmem:[%s17832_s1 + $0x178] sm:$0xff] }
 0x33c   : > { %13376 = vmatpush3.bf16.msra.mxu0 %v15034_v2  ;;  %v5262_v2 = vld [vmem:[%s17832_s1 + $0x110] sm:$0xff]  ;;  %v4225_v58 = vsel %vm517_vm0, %v4220_v27, %v4224_v15  ;;  %v4268_v23 = vor.u32 %v4266_v4, %v4264_v5  ;;  %v16490_v15 = vld [vmem:[%s15702_s12 + $0xc0] sm:$0xff]  }
 0x33d   : > { %13377 = vmatprep.subr.bf16.mxu0 %v15039_v19  ;;  %5408 = vperm.xlu0 %14854, %v5254_v46   ;;  %v4240_v46 = vrot.slane %v4238_v9, 1 }
 0x33e   : > { %5463 = vperm.xlu1 %14855, %v5265_v34  }
 0x33f   : > { %13330 = vmatmul.mubr.bf16.gmra.mrb[8].mxu0 %v4169_v22  ;;  %v4234_v22 = vshrl.u32 %v16409_v0, 16  ;;  %v4244_v56 = vor.u32 %v4242_v8, %v4240_v46 }
 0x340   : > { %13333 = vmatprep.mubr.bf16.mxu0 %v4177_v13  ;;  %13378 = vmatpush3.bf16.msra.mxu0 %v15039_v19  ;;  %v5264_v19 = vld [vmem:[%s17832_s1 + $0x120] sm:$0xff]  ;;  %v4232_v13 = vrot.slane %v4230_v49, 1  ;;  %v4278_v49 = vshll.u32 %v16481_v1, 16 }
 0x341   : > { %13379 = vmatprep.subr.bf16.mxu0 %v15042_v28  ;;  %5418 = vperm.xlu0 %14854, %v5256_v14  }
 0x342   : > { %v4236_v40 = vor.u32 %v4234_v22, %v4232_v13  ;;  %v4233_v45 = vsel %vm517_vm0, %v4228_v35, %v4232_v13  ;;  %5473 = vperm.xlu1 %14855, %v5267_v39   ;;  %v4286_v22 = vshll.u32 %v16490_v15, 16  ;;  %v4280_v9 = vrot.slane %v4278_v49, 1  ;;  %v16502_v13 = vld [vmem:[%s15702_s12 + $0xc8] sm:$0xff]  }
 0x344   : > { %13380 = vmatpush3.bf16.msra.mxu0 %v15042_v28  ;;  %v5266_v28 = vld [vmem:[%s17832_s1 + $0x130] sm:$0xff]  ;;  %v4241_v14 = vsel %vm517_vm0, %v4236_v40, %v4240_v46  ;;  %v4288_v35 = vrot.slane %v4286_v22, 1  ;;  %v4294_v46 = vshll.u32 %v16502_v13, 16 }
 0x345   : > { %13381 = vmatprep.subr.bf16.mxu0 %v15047_v42  ;;  %5428 = vperm.xlu0 %14854, %v5258_v48   ;;  %v4256_v48 = vrot.slane %v4254_v26, 1  ;;  %v16505_v40 = vld [vmem:[%s15702_s12 + $0xd0] sm:$0xff]   ;;  %v16514_v26 = vld [vmem:[%s15702_s12 + $0xd8] ss:$0 sps:$4 sm:$0x11]  }
 0x346   : > { %5483 = vperm.xlu1 %14855, %v5269_v54   ;;  %v4302_v8 = vshll.u32 %v16505_v40, 16 }
 0x347   : > { %13334 = vmatmul.mubr.bf16.gmra.mrb[12].mxu0 %v4185_v47  ;;  %v4250_v47 = vshrl.u32 %v16433_v32, 16 }
 0x348   : > { %13337 = vmatprep.mubr.bf16.mxu0 %v4193_v51  ;;  %13382 = vmatpush3.bf16.msra.mxu0 %v15047_v42  ;;  %v5268_v42 = vld [vmem:[%s17832_s1 + $0x140] sm:$0xff]  ;;  %v4248_v51 = vrot.slane %v4246_v7, 1  ;;  %v4290_v7 = vshrl.u32 %v16490_v15, 16  ;;  %v4304_v54 = vrot.slane %v4302_v8, 1 }
 0x349   : > { %13383 = vmatprep.subr.bf16.mxu0 %v15050_v55  ;;  %5438 = vperm.xlu0 %14854, %v5260_v63   ;;  %v4258_v63 = vshrl.u32 %v16442_v37, 16 }
 0x34a   : > { %v4252_v18 = vor.u32 %v4250_v47, %v4248_v51  ;;  %v4249_v59 = vsel %vm517_vm0, %v4244_v56, %v4248_v51  ;;  %5493 = vperm.xlu1 %14855, %v5271_v6   ;;  %v4292_v47 = vor.u32 %v4290_v7, %v4288_v35 }
 0x34c   : > { %13384 = vmatpush3.bf16.msra.mxu0 %v15050_v55  ;;  %v5270_v55 = vld [vmem:[%s17832_s1 + $0x150] sm:$0xff] }
 0x34d   : > { %5448 = vperm.xlu0 %14854, %v5262_v2   ;;  %v4260_v2 = vor.u32 %v4258_v63, %v4256_v48 }
 0x34e   : > { %5503 = vperm.xlu1 %14855, %v5273_v24   ;;  %v4685_v24 = vrot.slane %v16273_v20, 1  ;;  %v4693_v20 = vrot.slane %v16322_v62, 1  ;;  %v4701_v62 = vrot.slane %v16370_v52, 1  ;;  %v4709_v52 = vrot.slane %v16418_v11, 1 }
 0x34f   : > { %13338 = vmatmul.mubr.bf16.gmra.mrb[16].mxu0 %v4201_v3  ;;  %v4257_v3 = vsel %vm517_vm0, %v4252_v18, %v4256_v48  ;;  %v4306_v18 = vshrl.u32 %v16505_v40, 16  ;;  %v4310_v48 = vshll.u32 %v16514_v26, 16  ;;  %v4717_v11 = vrot.slane %v16466_v33, 1 }
 0x350   : > { %13341 = vmatprep.mubr.bf16.mxu0 %v4209_v25  ;;  %v4270_v25 = vshll.u32 %v16466_v33, 16 }
 0x351   : > { %5458 = vperm.xlu0 %14854, %v5264_v19   ;;  %v4265_v19 = vsel %vm517_vm0, %v4260_v2, %v4264_v5  ;;  %v4683_v5 = vrot.slane %v16264_v29, 1  ;;  %v4687_v2 = vrot.slane %v16288_v41, 1  ;;  %v4691_v29 = vrot.slane %v16312_v57, 1 }
 0x352   : > { %v4272_v27 = vrot.slane %v4270_v25, 1  ;;  %5513 = vperm.xlu1 %14855, %v5275_v43   ;;  %v4695_v41 = vrot.slane %v16337_v31, 1  ;;  %v4699_v57 = vrot.slane %v16361_v36, 1  ;;  %v4703_v31 = vrot.slane %v16385_v44, 1 }
 0x353   : > { %v4694_v49 = vsel %vm1329_vm1, %v4691_v29, %v4693_v20  ;;  %v4707_v36 = vrot.slane %v16409_v0, 1  ;;  %v4711_v44 = vrot.slane %v16433_v32, 1  ;;  %v4715_v0 = vrot.slane %v16457_v53, 1 }
 0x354   : > { %v4273_v30 = vsel %vm517_vm0, %v4268_v23, %v4272_v27  ;;  %v4688_v23 = vsel %vm1329_vm1, %v4685_v24, %v4687_v2  ;;  %v4704_v22 = vsel %vm1329_vm1, %v4701_v62, %v4703_v31  ;;  %v4719_v32 = vrot.slane %v16481_v1, 1 }
 0x355   : > { %5468 = vperm.xlu0 %14854, %v5266_v28   ;;  %v4718_v7 = vsel %vm1329_vm1, %v4715_v0, %v4717_v11  ;;  %v4723_v53 = vrot.slane %v16502_v13, 1 }
 0x357   : > { %13342 = vmatmul.mubr.bf16.gmra.mrb[20].mxu0 %v4217_v21  ;;  %v4274_v21 = vshrl.u32 %v16466_v33, 16  ;;  %v4725_v33 = vrot.slane %v16505_v40, 1  ;;  %v15057_v40 = vld [vmem:[#allocation8 + $0x58] sm:$0xff]  }
 0x358   : > { %13345 = vmatprep.mubr.bf16.mxu0 %v4225_v58  ;;  %v4282_v58 = vshrl.u32 %v16481_v1, 16  ;;  %v4727_v1 = vrot.slane %v16514_v26, 1  ;;  %v15060_v26 = vld [vmem:[#allocation8 + $0x70] sm:$0xff]  }
 0x359   : > { %5478 = vperm.xlu0 %14854, %v5268_v42   ;;  %v4276_v34 = vor.u32 %v4274_v21, %v4272_v27 }
 0x35a   : > { %v4284_v28 = vor.u32 %v4282_v58, %v4280_v9  ;;  %v4702_v58 = vsel %vm1329_vm1, %v4699_v57, %v4701_v62 }
 0x35b   : > { %v4281_v39 = vsel %vm517_vm0, %v4276_v34, %v4280_v9 }
 0x35c   : > { %v4289_v42 = vsel %vm517_vm0, %v4284_v28, %v4288_v35  ;;  %v4710_v28 = vsel %vm1329_vm1, %v4707_v36, %v4709_v52  ;;  %v4712_v35 = vsel %vm1329_vm1, %v4709_v52, %v4711_v44 }
 0x35d   : > { %5488 = vperm.xlu0 %14854, %v5270_v55   ;;  %v4659_v55 = vld [vmem:[%s15702_s12 + $0x18] sm:$0xe] }
 0x35e   : > { %v11856_v17 = vcombine.low %v4659_v55, %v16237_v12  ;;  %v4686_v12 = vsel %vm1329_vm1, %v4683_v5, %v4685_v24  ;;  %v15059_v55 = vld [vmem:[#allocation8 + $0x68] sm:$0xff]  }
 0x35f   : > { %13346 = vmatmul.mubr.bf16.gmra.mrb[24].mxu0 %v4233_v45  ;;  %v4298_v45 = vshrl.u32 %v16502_v13, 16  ;;  %v15056_v13 = vld [vmem:[#allocation8 + $0x50] sm:$0xff]  }
 0x360   : > { %13349 = vmatprep.mubr.bf16.mxu0 %v4241_v14  ;;  %v4296_v14 = vrot.slane %v4294_v46, 1  ;;  %v4680_v63 = vrot.slane %v11856_v17, 1  ;;  %v6249_v17 = vld [vmem:[#allocation2] sm:$0xf] }
 0x361   : > { %5498 = vperm.xlu0 %14854, %v5272_v60   ;;  %v4308_v60 = vor.u32 %v4306_v18, %v4304_v54  ;;  %v16571_v18 = vld [vmem:[#allocation8] sm:$0xff]  }
 0x362   : > { %v4300_v51 = vor.u32 %v4298_v45, %v4296_v14  ;;  %v4297_v56 = vsel %vm517_vm0, %v4292_v47, %v4296_v14  ;;  %v4726_v14 = vsel %vm1329_vm1, %v4723_v53, %v4725_v33  ;;  %v15054_v47 = vld [vmem:[#allocation8 + $0x40] sm:$0xff]  }
 0x363   : > { %13433 = vmatprep.subr.bf16.mxu1 %v15054_v47 }
 0x364   : > { %v4305_v6 = vsel %vm517_vm0, %v4300_v51, %v4304_v54  ;;  %13434 = vmatpush3.bf16.msra.mxu1 %v15054_v47  ;;  %v15055_v51 = vld [vmem:[#allocation8 + $0x48] sm:$0xff]   ;;  %v15058_v54 = vld [vmem:[#allocation8 + $0x60] sm:$0xff]  }
 0x365   : > { %5508 = vperm.xlu0 %14854, %v5274_v10   ;;  %13435 = vmatprep.subr.bf16.mxu1 %v15055_v51 }
 0x367   : > { %13350 = vmatmul.mubr.bf16.gmra.mrb[28].mxu0 %v4249_v59  ;;  %v4312_v59 = vrot.slane %v4310_v48, 1  ;;  %v5279_v48 = vpop.permute.xlu0 %5278 }
 0x368   : > { %13353 = vmatprep.mubr.bf16.mxu0 %v4257_v3  ;;  %v4681_v3 = vrot.slane %v16252_v38, 1  ;;  %v4689_v38 = vrot.slane %v16297_v50, 1  ;;  %v4697_v50 = vrot.slane %v16346_v16, 1  ;;  %v4705_v16 = vrot.slane %v16394_v61, 1  ;;  %13436 = vmatpush3.bf16.msra.mxu1 %v15055_v51 }
 0x369   : > { %v4313_v4 = vsel %vm517_vm0, %v4308_v60, %v4312_v59  ;;  %v4713_v61 = vrot.slane %v16442_v37, 1  ;;  %v4721_v37 = vrot.slane %v16490_v15, 1  ;;  %v4728_v15 = vsel %vm1329_vm1, %v4725_v33, %v4727_v1  ;;  %13437 = vmatprep.subr.bf16.mxu1 %v15056_v13  ;;  %v6250_v60 = vld [vmem:[#allocation2 + $0x4] sm:$0xf] }
 0x36a   : > { %v4682_v25 = vsel %vm1329_vm1, %v4680_v63, %v4681_v3  ;;  %v4684_v10 = vsel %vm1329_vm1, %v4681_v3, %v4683_v5  ;;  %v4690_v27 = vsel %vm1329_vm1, %v4687_v2, %v4689_v38  ;;  %v4692_v43 = vsel %vm1329_vm1, %v4689_v38, %v4691_v29  ;;  %v16577_v63 = vld [vmem:[%s17834_s3] ss:$0 sm:$0xff] }
 0x36b   : > { %v4698_v21 = vsel %vm1329_vm1, %v4695_v41, %v4697_v50  ;;  %v4706_v9 = vsel %vm1329_vm1, %v4703_v31, %v4705_v16  ;;  %v4708_v34 = vsel %vm1329_vm1, %v4705_v16, %v4707_v36  ;;  %v4714_v46 = vsel %vm1329_vm1, %v4711_v44, %v4713_v61  ;;  %v5284_v59 = vpop.permute.xlu0 %5283 }
 0x36c   : > { %v4722_v45 = vsel %vm1329_vm1, %v4719_v32, %v4721_v37  ;;  %v4724_v8 = vsel %vm1329_vm1, %v4721_v37, %v4723_v53  ;;  %13438 = vmatpush3.bf16.msra.mxu1 %v15056_v13  ;;  %v16579_v3 = vcombine.low %v6249_v17, %v6250_v60 }
 0x36d   : > { %13439 = vmatprep.subr.bf16.mxu1 %v15057_v40 }
 0x36f   : > { %13354 = vmatmul.mubr.bf16.gmra.mrb[32].mxu0 %v4265_v19  ;;  %v4696_v19 = vsel %vm1329_vm1, %v4693_v20, %v4695_v41  ;;  %v5299_v38 = vpop.permute.xlu0 %5298  ;;  %v6457_v20 = vshll.u32 %v16579_v3, 16 }
 0x370   : > { %13357 = vmatprep.mubr.bf16.mxu0 %v4273_v30  ;;  %v4700_v30 = vsel %vm1329_vm1, %v4697_v50, %v4699_v57  ;;  %13440 = vmatpush3.bf16.msra.mxu1 %v15057_v40 }
 0x371   : > { %13441 = vmatprep.subr.bf16.mxu1 %v15058_v54 }
 0x373   : > { %v5309_v36 = vpop.permute.xlu0 %5308 }
 0x374   : > { %13442 = vmatpush3.bf16.msra.mxu1 %v15058_v54 }
 0x375   : > { %13443 = vmatprep.subr.bf16.mxu1 %v15059_v55 }
 0x377   : > { %13358 = vmatmul.mubr.bf16.gmra.mrb[36].mxu0 %v4281_v39  ;;  %v4716_v39 = vsel %vm1329_vm1, %v4713_v61, %v4715_v0 }
 0x378   : > { %13361 = vmatprep.mubr.bf16.mxu0 %v4289_v42  ;;  %v4720_v42 = vsel %vm1329_vm1, %v4717_v11, %v4719_v32  ;;  %13444 = vmatpush3.bf16.msra.mxu1 %v15059_v55  ;;  %v16604_v55 = vpop.permute.xlu0 %5318 }
 0x379   : > { %13445 = vmatprep.subr.bf16.mxu1 %v15060_v26 }
 0x37c   : > { %13446 = vmatpush3.bf16.msra.mxu1 %v15060_v26 }
 0x37f   : > { %13362 = vmatmul.mubr.bf16.gmra.mrb[40].mxu0 %v4297_v56  ;;  %v15061_v56 = vld [vmem:[#allocation8 + $0x78] sm:$0xff]  }
 0x380   : > { %13365 = vmatprep.mubr.bf16.mxu0 %v4305_v6  ;;  %13447 = vmatprep.subr.bf16.mxu1 %v15061_v56  ;;  %v5289_v6 = vpop.permute.xlu1 %5288 }
 0x381   : > { %13448 = vmatpush3.bf16.msra.mxu1 %v15061_v56 }
 0x382   : > { %13497 = vmatprep.subr.bf16.mxu1 %v16571_v18 }
 0x387   : > { %13366 = vmatmul.mubr.bf16.gmra.mrb[44].mxu0 %v4313_v4 }
 0x388   : > { %13385 = vmatprep.mubr.bf16.mxu0 %v4682_v25  ;;  %v16584_v25 = vld [vmem:[%s17834_s3 + $0x1] ss:$0 sm:$0xff] }
 0x38f   : > { %13386 = vmatmul.mubr.bf16.vlgmr.msra.gmra.mrb[0].mxu0 %v4684_v10  ;;  %v5294_v10 = vpop.permute.xlu1 %5293 }
 0x390   : > { %13389 = vmatprep.mubr.bf16.mxu0 %v4686_v12 }
 0x393   : > { %v16596_v31 = vpop.permute.xlu1 %5303 }
 0x397   : > { %13390 = vmatmul.mubr.bf16.gmra.mrb[4].mxu0 %v4688_v23 }
 0x398   : > { %13393 = vmatprep.mubr.bf16.mxu0 %v4690_v27 }
 0x39f   : > { %13394 = vmatmul.mubr.bf16.gmra.mrb[8].mxu0 %v4692_v43 }
 0x3a0   : > { %13397 = vmatprep.mubr.bf16.mxu0 %v4694_v49 }
 0x3a7   : > { %13398 = vmatmul.mubr.bf16.gmra.mrb[12].mxu0 %v4696_v19 }
 0x3a8   : > { %13401 = vmatprep.mubr.bf16.mxu0 %v4698_v21 }
 0x3af   : > { %13402 = vmatmul.mubr.bf16.gmra.mrb[16].mxu0 %v4700_v30  ;;  %v6455_v30 = vshrl.u32 %v16579_v3, 16 }
 0x3b0   : > { %13405 = vmatprep.mubr.bf16.mxu0 %v4702_v58  ;;  %v6459_v58 = vrot.slane %v6457_v20, 1 }
 0x3b2   : > { %v16601_v37 = vor.u32 %v6459_v58, %v6455_v30 }
 0x3b7   : > { %13406 = vmatmul.mubr.bf16.gmra.mrb[20].mxu0 %v4704_v22 }
 0x3b8   : > { %13409 = vmatprep.mubr.bf16.mxu0 %v4706_v9 }
 0x3bf   : > { %13410 = vmatmul.mubr.bf16.gmra.mrb[24].mxu0 %v4708_v34 }
 0x3c0   : > { %13413 = vmatprep.mubr.bf16.mxu0 %v4710_v28 }
 0x3c7   : > { %13414 = vmatmul.mubr.bf16.gmra.mrb[28].mxu0 %v4712_v35 }
 0x3c8   : > { %13417 = vmatprep.mubr.bf16.mxu0 %v4714_v46 }
 0x3cf   : > { %13418 = vmatmul.mubr.bf16.gmra.mrb[32].mxu0 %v4716_v39 }
 0x3d0   : > { %13421 = vmatprep.mubr.bf16.mxu0 %v4718_v7 }
 0x3d7   : > { %13422 = vmatmul.mubr.bf16.gmra.mrb[36].mxu0 %v4720_v42 }
 0x3d8   : > { %13425 = vmatprep.mubr.bf16.mxu0 %v4722_v45 }
 0x3df   : > { %13426 = vmatmul.mubr.bf16.gmra.mrb[40].mxu0 %v4724_v8 }
 0x3e0   : > { %13429 = vmatprep.mubr.bf16.mxu0 %v4726_v14 }
 0x3e7   : > { %13430 = vmatmul.mubr.bf16.gmra.mrb[44].mxu0 %v4728_v15  ;;  %v5314_v15 = vpop.permute.xlu1 %5313 }
 0x3eb   : > { %v5324_v58 = vpop.permute.xlu1 %5323 }
 0x462   : > { %v13387_v4 = vpop.f32.mrb[0].mxu0 }
 0x463   : > { %v5081_v5 = vmul.f32 %v13387_v4, %v16577_v63  ;;  %v4835_v24 = vpop.f32.mrb[1].mxu0 }
 0x464   : > { %v5079_v12 = vmul.f32 %v16577_v63, %v4835_v24  ;;  %v13388_v2 = vpop.f32.mrb[2].mxu0 }
 0x465   : > { %v5134_v23 = vadd.f32 %v16584_v25, %v5081_v5  ;;  %v5082_v27 = vmul.f32 %v13388_v2, %v16577_v63  ;;  %v4838_v29 = vpop.f32.mrb[3].mxu0 }
 0x466   : > { %v5132_v43 = vadd.f32 %v16584_v25, %v5079_v12  ;;  %v5080_v49 = vmul.f32 %v16577_v63, %v4838_v29 }
 0x467   : > { %v5182_v41 = vmax.f32 %v5134_v23, 0.0  ;;  %v5135_v50 = vadd.f32 %v16584_v25, %v5082_v27 }
 0x468   : > { %v5180_v19 = vmax.f32 %v5132_v43, 0.0  ;;  %v5133_v21 = vadd.f32 %v16584_v25, %v5080_v49 }
 0x469   : > { %v5518_v57 = vmul.f32 %v5289_v6, %v5182_v41  ;;  %v5183_v62 = vmax.f32 %v5135_v50, 0.0 }
 0x46a   : > { %v5516_v16 = vmul.f32 %v5279_v48, %v5180_v19  ;;  %v5181_v22 = vmax.f32 %v5133_v21, 0.0  ;;  %v13391_v9 = vpop.f32.mrb[4].mxu0  ;;  %v6194_v48 = vld [vmem:[#allocation2 + $0xc] sm:$0xf] }
 0x46b   : > { %v12120_v52 = vpack.c.bf16 %v5518_v57, %v5518_v57  ;;  %v5519_v34 = vmul.f32 %v5294_v10, %v5183_v62  ;;  %v5085_v28 = vmul.f32 %v13391_v9, %v16577_v63  ;;  %v4851_v44 = vpop.f32.mrb[5].mxu0 }
 0x46c   : > { %v12118_v61 = vpack.c.bf16 %v5516_v16, %v5516_v16  ;;  %v5517_v35 = vmul.f32 %v5284_v59, %v5181_v22  ;;  %v5083_v46 = vmul.f32 %v16577_v63, %v4851_v44  ;;  %v13392_v0 = vpop.f32.mrb[6].mxu0 }
 0x46d   : > { %v5729_v11 = vshrl.u32 %v12120_v52, 16  ;;  %v12121_v39 = vpack.c.bf16 %v5519_v34, %v5519_v34  ;;  %v5138_v7 = vadd.f32 %v16584_v25, %v5085_v28  ;;  %v4854_v32 = vpop.f32.mrb[7].mxu0  ;;  %v5732_v42 = vshll.u32 %v12120_v52, 16  ;;  %v5329_v52 = vpop.permute.xlu0 %5328 }
 0x46e   : > { %v5712_v45 = vshrl.u32 %v12118_v61, 16  ;;  %v12119_v53 = vpack.c.bf16 %v5517_v35, %v5517_v35  ;;  %v5136_v33 = vadd.f32 %v16584_v25, %v5083_v46  ;;  %v5715_v14 = vshll.u32 %v12118_v61, 16 }
 0x46f   : > { %v5731_v8 = vrot.slane %v5729_v11, 7  ;;  %v5738_v1 = vshrl.u32 %v12121_v39, 16  ;;  %v5186_v47 = vmax.f32 %v5138_v7, 0.0  ;;  %v5741_v13 = vshll.u32 %v12121_v39, 16 }
 0x470   : > { %v5714_v51 = vrot.slane %v5712_v45, 7  ;;  %v5720_v40 = vshrl.u32 %v12119_v53, 16  ;;  %v5184_v54 = vmax.f32 %v5136_v33, 0.0  ;;  %v5723_v17 = vshll.u32 %v12119_v53, 16 }
 0x471   : > { %v5734_v26 = vor.u32 %v5732_v42, %v5731_v8  ;;  %v5740_v6 = vrot.slane %v5738_v1, 7  ;;  %v5522_v60 = vmul.f32 %v5309_v36, %v5186_v47  ;;  %v5736_v59 = vrot.slane %v5731_v8, 4 }
 0x472   : > { %v5717_v4 = vor.u32 %v5715_v14, %v5714_v51  ;;  %v5722_v24 = vrot.slane %v5720_v40, 7  ;;  %v5520_v10 = vmul.f32 %v5299_v38, %v5184_v54  ;;  %v13395_v12 = vpop.f32.mrb[8].mxu0  ;;  %v5718_v2 = vrot.slane %v5714_v51, 4  ;;  %v5334_v54 = vpop.permute.xlu1 %5333 }
 0x473   : > { %v5743_v23 = vor.u32 %v5741_v13, %v5740_v6  ;;  %v12124_v27 = vpack.c.bf16 %v5522_v60, %v5522_v60  ;;  %v5086_v29 = vmul.f32 %v13392_v0, %v16577_v63  ;;  %v4867_v20 = vpop.f32.mrb[9].mxu0  ;;  %v5084_v44 = vmul.f32 %v16577_v63, %v4854_v32 }
 0x474   : > { %v6195_v43 = vsel %vm16608_vm6, %v5717_v4, %v6194_v48  ;;  %v5725_v49 = vor.u32 %v5723_v17, %v5722_v24  ;;  %v5727_v41 = vrot.slane %v5722_v24, 4  ;;  %v12122_v50 = vpack.c.bf16 %v5520_v10, %v5520_v10  ;;  %v13396_v19 = vpop.f32.mrb[10].mxu0  ;;  %v16648_v17 = vpop.permute.xlu0 %5338 }
 0x475   : > { %6196 = vst [vmem:[#allocation2 + $0xc] sm:$0xf] %v6195_v43  ;;  %v5744_v21 = vsel %vm16614_vm7, %v5736_v59, %v5743_v23  ;;  %v5765_v57 = vshrl.u32 %v12124_v27, 16  ;;  %v5768_v38 = vshll.u32 %v12124_v27, 16  ;;  %v5139_v62 = vadd.f32 %v16584_v25, %v5086_v29  ;;  %v4870_v30 = vpop.f32.mrb[11].mxu0 }
 0x476   : > { %6199 = vst [vmem:[#allocation2 + $0x18] sm:$0xf] %v5744_v21  ;;  %v5726_v16 = vsel %vm16614_vm7, %v5718_v2, %v5725_v49  ;;  %v5735_v22 = vsel %vm16614_vm7, %v5727_v41, %v5734_v26  ;;  %v5747_v9 = vshrl.u32 %v12122_v50, 16  ;;  %v5750_v36 = vshll.u32 %v12122_v50, 16 }
 0x477   : > { %6197 = vst [vmem:[#allocation2 + $0x10] sm:$0xf] %v5726_v16  ;;  %6198 = vst [vmem:[#allocation2 + $0x14] sm:$0xf] %v5735_v22  ;;  %v5767_v34 = vrot.slane %v5765_v57, 7  ;;  %v5187_v28 = vmax.f32 %v5139_v62, 0.0  ;;  %v5089_v61 = vmul.f32 %v13395_v12, %v16577_v63  ;;  %v5087_v46 = vmul.f32 %v16577_v63, %v4867_v20 }
 0x478   : > { %v16630_v35 = vrot.slane %v5747_v9, 7  ;;  %v5090_v0 = vmul.f32 %v13396_v19, %v16577_v63  ;;  %v5088_v11 = vmul.f32 %v16577_v63, %v4870_v30  ;;  %v5745_v39 = vrot.slane %v5740_v6, 4  ;;  %v16657_v30 = vpop.permute.xlu1 %5343 }
 0x479   : > { %v16635_v7 = vor.u32 %v5768_v38, %v5767_v34  ;;  %v5523_v42 = vmul.f32 %v5314_v15, %v5187_v28  ;;  %v5137_v45 = vadd.f32 %v16584_v25, %v5084_v44  ;;  %v5772_v53 = vrot.slane %v5767_v34, 4 }
 0x47a   : > { %v5752_v33 = vor.u32 %v5750_v36, %v16630_v35  ;;  %v5142_v32 = vadd.f32 %v16584_v25, %v5089_v61  ;;  %v5140_v8 = vadd.f32 %v16584_v25, %v5087_v46  ;;  %v13399_v14 = vpop.f32.mrb[12].mxu0  ;;  %v5143_v51 = vadd.f32 %v16584_v25, %v5090_v0 }
 0x47b   : > { %v12125_v1 = vpack.c.bf16 %v5523_v42, %v5523_v42  ;;  %v5185_v47 = vmax.f32 %v5137_v45, 0.0  ;;  %v5141_v13 = vadd.f32 %v16584_v25, %v5088_v11  ;;  %v4883_v40 = vpop.f32.mrb[13].mxu0  ;;  %v5093_v48 = vmul.f32 %v13399_v14, %v16577_v63 }
 0x47c   : > { %v5753_v15 = vsel %vm16614_vm7, %v5745_v39, %v5752_v33  ;;  %v5190_v26 = vmax.f32 %v5142_v32, 0.0  ;;  %v5188_v56 = vmax.f32 %v5140_v8, 0.0  ;;  %v16646_v6 = vpop.f32.mrb[14].mxu0  ;;  %v5191_v24 = vmax.f32 %v5143_v51, 0.0 }
 0x47d   : > { %6200 = vst [vmem:[#allocation2 + $0x1c] sm:$0xf] %v5753_v15  ;;  %v5774_v60 = vshrl.u32 %v12125_v1, 16  ;;  %v5777_v59 = vshll.u32 %v12125_v1, 16  ;;  %v5521_v4 = vmul.f32 %v16596_v31, %v5185_v47  ;;  %v16651_v10 = vpop.f32.mrb[15].mxu0  ;;  %v5189_v23 = vmax.f32 %v5141_v13, 0.0 }
 0x47e   : > { %v5526_v12 = vmul.f32 %v5329_v52, %v5190_v26  ;;  %v5524_v2 = vmul.f32 %v16604_v55, %v5188_v56  ;;  %v5146_v27 = vadd.f32 %v16584_v25, %v5093_v48  ;;  %v5527_v43 = vmul.f32 %v5334_v54, %v5191_v24  ;;  %v5349_v52 = vpop.permute.xlu0 %5348 }
 0x47f   : > { %v5776_v29 = vrot.slane %v5774_v60, 7  ;;  %v12123_v20 = vpack.c.bf16 %v5521_v4, %v5521_v4  ;;  %v5091_v49 = vmul.f32 %v16577_v63, %v4883_v40  ;;  %v5525_v19 = vmul.f32 %v5324_v58, %v5189_v23  ;;  %v5354_v60 = vpop.permute.xlu1 %5353 }
 0x480   : > { %v12128_v41 = vpack.c.bf16 %v5526_v12, %v5526_v12  ;;  %v12126_v50 = vpack.c.bf16 %v5524_v2, %v5524_v2  ;;  %v5194_v21 = vmax.f32 %v5146_v27, 0.0  ;;  %v5754_v31 = vrot.slane %v16630_v35, 4 }
 0x481   : > { %v5779_v57 = vor.u32 %v5777_v59, %v5776_v29  ;;  %v5756_v38 = vshrl.u32 %v12123_v20, 16  ;;  %v5759_v62 = vshll.u32 %v12123_v20, 16  ;;  %v12129_v44 = vpack.c.bf16 %v5527_v43, %v5527_v43 }
 0x482   : > { %v5801_v55 = vshrl.u32 %v12128_v41, 16  ;;  %v5804_v16 = vshll.u32 %v12128_v41, 16  ;;  %v5783_v22 = vshrl.u32 %v12126_v50, 16  ;;  %v5786_v9 = vshll.u32 %v12126_v50, 16  ;;  %v13403_v36 = vpop.f32.mrb[16].mxu0 }
 0x483   : > { %v5780_v34 = vsel %vm16614_vm7, %v5772_v53, %v5779_v57  ;;  %v5758_v28 = vrot.slane %v5756_v38, 7  ;;  %v12127_v58 = vpack.c.bf16 %v5525_v19, %v5525_v19  ;;  %v4899_v61 = vpop.f32.mrb[17].mxu0  ;;  %v5530_v0 = vmul.f32 %v5349_v52, %v5194_v21 }
 0x484   : > { %6203 = vst [vmem:[#allocation2 + $0x28] sm:$0xf] %v5780_v34  ;;  %v5803_v35 = vrot.slane %v5801_v55, 7  ;;  %v5785_v46 = vrot.slane %v5783_v22, 7  ;;  %v5144_v11 = vadd.f32 %v16584_v25, %v5091_v49  ;;  %v13404_v39 = vpop.f32.mrb[18].mxu0  ;;  %v5781_v42 = vrot.slane %v5776_v29, 4 }
 0x485   : > { %v5761_v45 = vor.u32 %v5759_v62, %v5758_v28  ;;  %v5763_v33 = vrot.slane %v5758_v28, 4  ;;  %v5810_v32 = vshrl.u32 %v12129_v44, 16  ;;  %v16662_v8 = vpop.f32.mrb[19].mxu0  ;;  %v5813_v47 = vshll.u32 %v12129_v44, 16  ;;  %v16679_v29 = vld [vmem:[#allocation2 + $0x8] sm:$0xff]   ;;  %v16706_v28 = vpop.permute.xlu1 %5363 }
 0x486   : > { %v5806_v14 = vor.u32 %v5804_v16, %v5803_v35  ;;  %v5808_v1 = vrot.slane %v5803_v35, 4  ;;  %v5788_v53 = vor.u32 %v5786_v9, %v5785_v46  ;;  %v5792_v54 = vshrl.u32 %v12127_v58, 16 }
 0x487   : > { %v5762_v51 = vsel %vm16614_vm7, %v5754_v31, %v5761_v45  ;;  %v5771_v13 = vsel %vm16614_vm7, %v5763_v33, %v16635_v7  ;;  %v16669_v40 = vrot.slane %v5810_v32, 7  ;;  %v5790_v26 = vrot.slane %v5785_v46, 4 }
 0x488   : > { %6201 = vst [vmem:[#allocation2 + $0x20] sm:$0xf] %v5762_v51  ;;  %6202 = vst [vmem:[#allocation2 + $0x24] sm:$0xf] %v5771_v13  ;;  %v5789_v15 = vsel %vm16614_vm7, %v5781_v42, %v5788_v53  ;;  %v12132_v56 = vpack.c.bf16 %v5530_v0, %v5530_v0  ;;  %v5192_v48 = vmax.f32 %v5144_v11, 0.0  ;;  %v5794_v4 = vrot.slane %v5792_v54, 7 }
 0x489   : > { %6204 = vst [vmem:[#allocation2 + $0x2c] sm:$0xf] %v5789_v15  ;;  %v5815_v59 = vor.u32 %v5813_v47, %v16669_v40  ;;  %v5795_v24 = vshll.u32 %v12127_v58, 16  ;;  %v5094_v7 = vmul.f32 %v16646_v6, %v16577_v63  ;;  %v5092_v27 = vmul.f32 %v16577_v63, %v16651_v10  ;;  %v5359_v6 = vpop.permute.xlu0 %5358 }
 0x48a   : > { %v5837_v12 = vshrl.u32 %v12132_v56, 16  ;;  %v5840_v2 = vshll.u32 %v12132_v56, 16  ;;  %v5528_v23 = vmul.f32 %v16648_v17, %v5192_v48  ;;  %v16681_v20 = vpop.f32.mrb[20].mxu0  ;;  %v5799_v41 = vrot.slane %v5794_v4, 4 }
 0x48b   : > { %v5816_v43 = vsel %vm16614_vm7, %v5808_v1, %v5815_v59  ;;  %v5797_v49 = vor.u32 %v5795_v24, %v5794_v4  ;;  %v5147_v50 = vadd.f32 %v16584_v25, %v5094_v7  ;;  %v16686_v19 = vpop.f32.mrb[21].mxu0  ;;  %v5145_v10 = vadd.f32 %v16584_v25, %v5092_v27  ;;  %v5374_v24 = vpop.permute.xlu1 %5373 }
 0x48c   : > { %6207 = vst [vmem:[#allocation2 + $0x38] sm:$0xf] %v5816_v43  ;;  %v16688_v21 = vrot.slane %v5837_v12, 7  ;;  %v12130_v17 = vpack.c.bf16 %v5528_v23, %v5528_v23  ;;  %v5097_v31 = vmul.f32 %v13403_v36, %v16577_v63  ;;  %v16692_v57 = vpop.f32.mrb[22].mxu0  ;;  %v5807_v62 = vsel %vm16614_vm7, %v5799_v41, %v5806_v14 }
 0x48d   : > { %v5798_v38 = vsel %vm16614_vm7, %v5790_v26, %v5797_v49  ;;  %v5195_v55 = vmax.f32 %v5147_v50, 0.0  ;;  %v5095_v16 = vmul.f32 %v16577_v63, %v4899_v61  ;;  %v16699_v22 = vpop.f32.mrb[23].mxu0  ;;  %v5817_v9 = vrot.slane %v16669_v40, 4  ;;  %6206 = vst [vmem:[#allocation2 + $0x34] sm:$0xf] %v5807_v62  ;;  %v5369_v1 = vpop.permute.xlu0 %5368 }
 0x48e   : > { %6205 = vst [vmem:[#allocation2 + $0x30] sm:$0xf] %v5798_v38  ;;  %v16703_v52 = vor.u32 %v5840_v2, %v16688_v21  ;;  %v5844_v36 = vrot.slane %v16688_v21, 4  ;;  %v5819_v34 = vshrl.u32 %v12130_v17, 16  ;;  %v5193_v58 = vmax.f32 %v5145_v10, 0.0 }
 0x48f   : > { %v5531_v44 = vmul.f32 %v5354_v60, %v5195_v55  ;;  %v5150_v35 = vadd.f32 %v16584_v25, %v5097_v31  ;;  %v5148_v61 = vadd.f32 %v16584_v25, %v5095_v16  ;;  %v5822_v0 = vshll.u32 %v12130_v17, 16 }
 0x490   : > { %v5821_v46 = vrot.slane %v5819_v34, 7  ;;  %v5098_v11 = vmul.f32 %v13404_v39, %v16577_v63  ;;  %v6462_v42 = vshll.u32 %v16679_v29, 16  ;;  %v5529_v33 = vmul.f32 %v16657_v30, %v5193_v58  ;;  %v15064_v34 = vld [vmem:[#allocation2 + $0x10] sm:$0xff]  }
 0x491   : > { %v12133_v45 = vpack.c.bf16 %v5531_v44, %v5531_v44  ;;  %v5198_v32 = vmax.f32 %v5150_v35, 0.0  ;;  %v5196_v14 = vmax.f32 %v5148_v61, 0.0  ;;  %v5096_v13 = vmul.f32 %v16577_v63, %v16662_v8 }
 0x492   : > { %v5824_v53 = vor.u32 %v5822_v0, %v5821_v46  ;;  %v5151_v47 = vadd.f32 %v16584_v25, %v5098_v11  ;;  %v6464_v51 = vrot.slane %v6462_v42, 1  ;;  %v16716_v40 = vpop.f32.mrb[24].mxu0  ;;  %v5826_v54 = vrot.slane %v5821_v46, 4 }
 0x493   : > { %v5846_v15 = vshrl.u32 %v12133_v45, 16  ;;  %v12131_v39 = vpack.c.bf16 %v5529_v33, %v5529_v33  ;;  %v5534_v26 = vmul.f32 %v5369_v1, %v5198_v32  ;;  %v16718_v56 = vpop.f32.mrb[25].mxu0  ;;  %v5532_v48 = vmul.f32 %v5359_v6, %v5196_v14 }
 0x494   : > { %v5825_v30 = vsel %vm16614_vm7, %v5817_v9, %v5824_v53  ;;  %v5199_v60 = vmax.f32 %v5151_v47, 0.0  ;;  %v6465_v59 = vsel %vm517_vm0, %v16601_v37, %v6464_v51  ;;  %v16724_v4 = vpop.f32.mrb[26].mxu0  ;;  %v5849_v7 = vshll.u32 %v12133_v45, 16  ;;  %v5379_v45 = vpop.permute.xlu0 %5378 }
 0x495   : > { %6208 = vst [vmem:[#allocation2 + $0x3c] sm:$0xf] %v5825_v30  ;;  %v5848_v8 = vrot.slane %v5846_v15, 7  ;;  %v5828_v12 = vshrl.u32 %v12131_v39, 16  ;;  %v12136_v2 = vpack.c.bf16 %v5534_v26, %v5534_v26  ;;  %13449 = vmatprep.mubr.bf16.mxu1 %v6465_v59  ;;  %v16726_v23 = vpop.f32.mrb[27].mxu0  ;;  %v5831_v27 = vshll.u32 %v12131_v39, 16  ;;  %v5384_v39 = vpop.permute.xlu1 %5383 }
 0x496   : > { %v12134_v43 = vpack.c.bf16 %v5532_v48, %v5532_v48  ;;  %v5535_v49 = vmul.f32 %v5374_v24, %v5199_v60  ;;  %v5149_v41 = vadd.f32 %v16584_v25, %v5096_v13  ;;  %v6466_v37 = vshrl.u32 %v16679_v29, 16  ;;  %v15066_v60 = vld [vmem:[#allocation2 + $0x18] sm:$0xff]  }
 0x497   : > { %v5851_v50 = vor.u32 %v5849_v7, %v5848_v8  ;;  %v5830_v6 = vrot.slane %v5828_v12, 7  ;;  %v5873_v21 = vshrl.u32 %v12136_v2, 16  ;;  %v5853_v17 = vrot.slane %v5848_v8, 4 }
 0x498   : > { %v5876_v10 = vshll.u32 %v12136_v2, 16  ;;  %v5855_v31 = vshrl.u32 %v12134_v43, 16  ;;  %v12137_v38 = vpack.c.bf16 %v5535_v49, %v5535_v49  ;;  %v5858_v58 = vshll.u32 %v12134_v43, 16  ;;  %v16767_v2 = vld [vmem:[#allocation2 + $0x20] sm:$0xff]  }
 0x499   : > { %v5852_v62 = vsel %vm16614_vm7, %v5844_v36, %v5851_v50  ;;  %v5833_v55 = vor.u32 %v5831_v27, %v5830_v6  ;;  %v5835_v16 = vrot.slane %v5830_v6, 4  ;;  %v5875_v9 = vrot.slane %v5873_v21, 7  ;;  %v15068_v27 = vld [vmem:[#allocation8 + $0x8] sm:$0xff]   ;;  %v5389_v6 = vpop.permute.xlu0 %5388 }
 0x49a   : > { %6211 = vst [vmem:[#allocation2 + $0x48] sm:$0xf] %v5852_v62  ;;  %v16732_v44 = vrot.slane %v5855_v31, 7  ;;  %v5882_v35 = vshrl.u32 %v12137_v38, 16  ;;  %v5197_v61 = vmax.f32 %v5149_v41, 0.0  ;;  %v16734_v46 = vpop.f32.mrb[28].mxu0  ;;  %v6468_v47 = vor.u32 %v6466_v37, %v6464_v51 }
 0x49b   : > { %v5834_v29 = vsel %vm16614_vm7, %v5826_v54, %v5833_v55  ;;  %v5843_v0 = vsel %vm16614_vm7, %v5835_v16, %v16703_v52  ;;  %v16741_v36 = vor.u32 %v5876_v10, %v5875_v9  ;;  %v5885_v11 = vshll.u32 %v12137_v38, 16  ;;  %v16743_v42 = vpop.f32.mrb[29].mxu0  ;;  %v5394_v16 = vpop.permute.xlu1 %5393 }
 0x49c   : > { %6209 = vst [vmem:[#allocation2 + $0x40] sm:$0xf] %v5834_v29  ;;  %6210 = vst [vmem:[#allocation2 + $0x44] sm:$0xf] %v5843_v0  ;;  %v5880_v33 = vrot.slane %v5875_v9, 4  ;;  %v5860_v32 = vor.u32 %v5858_v58, %v16732_v44  ;;  %v16746_v14 = vrot.slane %v5882_v35, 7  ;;  %v5533_v1 = vmul.f32 %v16706_v28, %v5197_v61 }
 0x49d   : > { %v16749_v53 = vpop.f32.mrb[30].mxu0  ;;  %v6470_v13 = vshll.u32 %v15064_v34, 16  ;;  %v5101_v52 = vmul.f32 %v16681_v20, %v16577_v63  ;;  %v5099_v54 = vmul.f32 %v16577_v63, %v16686_v19  ;;  %v5862_v30 = vrot.slane %v16732_v44, 4  ;;  %v15073_v35 = vld [vmem:[#allocation8 + $0x10] sm:$0xff]  }
 0x49e   : > { %v16755_v15 = vpop.f32.mrb[31].mxu0  ;;  %v5861_v26 = vsel %vm16614_vm7, %v5853_v17, %v5860_v32  ;;  %v5887_v28 = vor.u32 %v5885_v11, %v16746_v14  ;;  %v12135_v48 = vpack.c.bf16 %v5533_v1, %v5533_v1  ;;  %v5102_v19 = vmul.f32 %v16692_v57, %v16577_v63 }
 0x49f   : > { %6212 = vst [vmem:[#allocation2 + $0x4c] sm:$0xf] %v5861_v26  ;;  %v6472_v51 = vrot.slane %v6470_v13, 1  ;;  %v5154_v59 = vadd.f32 %v16584_v25, %v5101_v52  ;;  %v5152_v20 = vadd.f32 %v16584_v25, %v5099_v54  ;;  %v6474_v12 = vshrl.u32 %v15064_v34, 16 }
 0x4a0   : > { %v5888_v24 = vsel %vm16614_vm7, %v5880_v33, %v5887_v28  ;;  %v5864_v8 = vshrl.u32 %v12135_v48, 16  ;;  %v5867_v7 = vshll.u32 %v12135_v48, 16  ;;  %v5155_v50 = vadd.f32 %v16584_v25, %v5102_v19 }
 0x4a1   : > { %6215 = vst [vmem:[#allocation2 + $0x58] sm:$0xf] %v5888_v24  ;;  %v6473_v43 = vsel %vm517_vm0, %v6468_v47, %v6472_v51  ;;  %v5202_v49 = vmax.f32 %v5154_v59, 0.0  ;;  %v5200_v41 = vmax.f32 %v5152_v20, 0.0  ;;  %v6476_v57 = vor.u32 %v6474_v12, %v6472_v51  ;;  %v5399_v51 = vpop.permute.xlu0 %5398  ;;  %v15076_v24 = vld [vmem:[#allocation8 + $0x18] sm:$0xff]  }
 0x4a2   : > { %v5866_v21 = vrot.slane %v5864_v8, 7  ;;  %13450 = vmatmul.mubr.bf16.vlgmr.msra.gmra.mrb[0].mxu1 %v6473_v43  ;;  %v6478_v37 = vshll.u32 %v15066_v60, 16  ;;  %v5100_v17 = vmul.f32 %v16577_v63, %v16699_v22  ;;  %v16773_v10 = vpop.f32.mrb[32].mxu0  ;;  %v5203_v62 = vmax.f32 %v5155_v50, 0.0 }
 0x4a3   : > { %13498 = vmatpush3.bf16.msra.mxu1 %v16571_v18  ;;  %v5538_v31 = vmul.f32 %v5389_v6, %v5202_v49  ;;  %v5536_v38 = vmul.f32 %v5379_v45, %v5200_v41  ;;  %v6482_v55 = vshrl.u32 %v15066_v60, 16  ;;  %v16777_v61 = vpop.f32.mrb[33].mxu0  ;;  %v6486_v11 = vshll.u32 %v16767_v2, 16  ;;  %v15069_v6 = vld [vmem:[#allocation2 + $0x28] sm:$0xff]  }
 0x4a4   : > { %v5869_v9 = vor.u32 %v5867_v7, %v5866_v21  ;;  %v5871_v34 = vrot.slane %v5866_v21, 4  ;;  %v6480_v44 = vrot.slane %v6478_v37, 1  ;;  %v5153_v58 = vadd.f32 %v16584_v25, %v5100_v17  ;;  %13499 = vmatprep.subr.bf16.mxu1 %v15068_v27  ;;  %v16780_v18 = vpop.f32.mrb[34].mxu0 }
 0x4a5   : > { %v12140_v29 = vpack.c.bf16 %v5538_v31, %v5538_v31  ;;  %v12138_v22 = vpack.c.bf16 %v5536_v38, %v5536_v38  ;;  %v5539_v0 = vmul.f32 %v5394_v16, %v5203_v62  ;;  %v16788_v47 = vpop.f32.mrb[35].mxu0  ;;  %v6488_v60 = vrot.slane %v6486_v11, 1  ;;  %v15081_v31 = vld [vmem:[#allocation8 + $0x20] sm:$0xff]  }
 0x4a6   : > { %v5870_v45 = vsel %vm16614_vm7, %v5862_v30, %v5869_v9  ;;  %v5879_v33 = vsel %vm16614_vm7, %v5871_v34, %v16741_v36  ;;  %v6481_v32 = vsel %vm517_vm0, %v6476_v57, %v6480_v44  ;;  %v5201_v1 = vmax.f32 %v5153_v58, 0.0 }
 0x4a7   : > { %6213 = vst [vmem:[#allocation2 + $0x50] sm:$0xf] %v5870_v45  ;;  %6214 = vst [vmem:[#allocation2 + $0x54] sm:$0xf] %v5879_v33  ;;  %v5909_v13 = vshrl.u32 %v12140_v29, 16  ;;  %v5912_v52 = vshll.u32 %v12140_v29, 16  ;;  %13453 = vmatprep.mubr.bf16.mxu1 %v6481_v32  ;;  %13500 = vmatpush3.bf16.msra.mxu1 %v15068_v27  ;;  %v12141_v28 = vpack.c.bf16 %v5539_v0, %v5539_v0  ;;  %v5409_v29 = vpop.permute.xlu0 %5408 }
 0x4a8   : > { %v5891_v54 = vshrl.u32 %v12138_v22, 16  ;;  %v5894_v26 = vshll.u32 %v12138_v22, 16  ;;  %v5537_v48 = vmul.f32 %v5384_v39, %v5201_v1  ;;  %v6484_v30 = vor.u32 %v6482_v55, %v6480_v44  ;;  %13501 = vmatprep.subr.bf16.mxu1 %v15073_v35  ;;  %v16819_v1 = vld [vmem:[#allocation2 + $0x30] sm:$0xff]  }
 0x4a9   : > { %v5911_v36 = vrot.slane %v5909_v13, 7  ;;  %v5105_v20 = vmul.f32 %v16716_v40, %v16577_v63  ;;  %v5103_v19 = vmul.f32 %v16577_v63, %v16718_v56  ;;  %v5889_v8 = vrot.slane %v16746_v14, 4  ;;  %v16800_v40 = vpop.permute.xlu1 %5403  ;;  %v15084_v13 = vld [vmem:[#allocation8 + $0x28] sm:$0xff]  }
 0x4aa   : > { %v5893_v59 = vrot.slane %v5891_v54, 7  ;;  %v5918_v7 = vshrl.u32 %v12141_v28, 16  ;;  %v12139_v12 = vpack.c.bf16 %v5537_v48, %v5537_v48  ;;  %v6489_v27 = vsel %vm517_vm0, %v6484_v30, %v6488_v60  ;;  %v16796_v39 = vpop.f32.mrb[36].mxu0 }
 0x4ab   : > { %v5914_v43 = vor.u32 %v5912_v52, %v5911_v36  ;;  %v5916_v49 = vrot.slane %v5911_v36, 4  ;;  %v5921_v50 = vshll.u32 %v12141_v28, 16  ;;  %13454 = vmatmul.mubr.bf16.gmra.mrb[4].mxu1 %v6489_v27  ;;  %v16798_v21 = vpop.f32.mrb[37].mxu0  ;;  %v5158_v37 = vadd.f32 %v16584_v25, %v5105_v20 }
 0x4ac   : > { %v5896_v41 = vor.u32 %v5894_v26, %v5893_v59  ;;  %v5898_v56 = vrot.slane %v5893_v59, 4  ;;  %v16802_v57 = vrot.slane %v5918_v7, 7  ;;  %v5900_v14 = vshrl.u32 %v12139_v12, 16  ;;  %13502 = vmatpush3.bf16.msra.mxu1 %v15073_v35  ;;  %v16805_v17 = vpop.f32.mrb[38].mxu0 }
 0x4ad   : > { %v5156_v62 = vadd.f32 %v16584_v25, %v5103_v19  ;;  %v5106_v55 = vmul.f32 %v16724_v4, %v16577_v63  ;;  %v6490_v16 = vshrl.u32 %v16767_v2, 16  ;;  %13503 = vmatprep.subr.bf16.mxu1 %v15076_v24  ;;  %v16813_v9 = vpop.f32.mrb[39].mxu0  ;;  %v5903_v58 = vshll.u32 %v12139_v12, 16  ;;  %v5414_v48 = vpop.permute.xlu1 %5413 }
 0x4ae   : > { %v5897_v38 = vsel %vm16614_vm7, %v5889_v8, %v5896_v41  ;;  %v5923_v34 = vor.u32 %v5921_v50, %v16802_v57  ;;  %v5902_v44 = vrot.slane %v5900_v14, 7  ;;  %v5206_v35 = vmax.f32 %v5158_v37, 0.0  ;;  %v15089_v14 = vld [vmem:[#allocation8 + $0x30] sm:$0xff]  }
 0x4af   : > { %6216 = vst [vmem:[#allocation2 + $0x5c] sm:$0xf] %v5897_v38  ;;  %v5204_v22 = vmax.f32 %v5156_v62, 0.0  ;;  %v5159_v0 = vadd.f32 %v16584_v25, %v5106_v55  ;;  %v6492_v11 = vor.u32 %v6490_v16, %v6488_v60  ;;  %v6494_v45 = vshll.u32 %v15069_v6, 16 }
 0x4b0   : > { %v5924_v4 = vsel %vm16614_vm7, %v5916_v49, %v5923_v34  ;;  %v5905_v33 = vor.u32 %v5903_v58, %v5902_v44  ;;  %v5907_v2 = vrot.slane %v5902_v44, 4  ;;  %v5542_v32 = vmul.f32 %v5409_v29, %v5206_v35  ;;  %13504 = vmatpush3.bf16.msra.mxu1 %v15076_v24  ;;  %v5419_v49 = vpop.permute.xlu0 %5418 }
 0x4b1   : > { %6219 = vst [vmem:[#allocation2 + $0x68] sm:$0xf] %v5924_v4  ;;  %v5540_v52 = vmul.f32 %v5399_v51, %v5204_v22  ;;  %v5207_v54 = vmax.f32 %v5159_v0, 0.0  ;;  %v6496_v26 = vrot.slane %v6494_v45, 1  ;;  %v5104_v28 = vmul.f32 %v16577_v63, %v16726_v23  ;;  %13505 = vmatprep.subr.bf16.mxu1 %v15081_v31  ;;  %v16853_v22 = vld [vmem:[%s17834_s3 + $0x1] ss:$0 sm:$0xff] }
 0x4b2   : > { %v5906_v30 = vsel %vm16614_vm7, %v5898_v56, %v5905_v33  ;;  %v5915_v60 = vsel %vm16614_vm7, %v5907_v2, %v5914_v43  ;;  %v12144_v36 = vpack.c.bf16 %v5542_v32, %v5542_v32  ;;  %v6498_v59 = vshrl.u32 %v15069_v6, 16  ;;  %v16827_v20 = vpop.f32.mrb[40].mxu0  ;;  %v15092_v33 = vld [vmem:[#allocation8 + $0x38] sm:$0xff]  }
 0x4b3   : > { %6217 = vst [vmem:[#allocation2 + $0x60] sm:$0xf] %v5906_v30  ;;  %6218 = vst [vmem:[#allocation2 + $0x64] sm:$0xf] %v5915_v60  ;;  %v12142_v51 = vpack.c.bf16 %v5540_v52, %v5540_v52  ;;  %v5543_v19 = vmul.f32 %v5414_v48, %v5207_v54  ;;  %v6497_v24 = vsel %vm517_vm0, %v6492_v11, %v6496_v26  ;;  %v16831_v23 = vpop.f32.mrb[41].mxu0  ;;  %v5925_v8 = vrot.slane %v16802_v57, 4 }
 0x4b4   : > { %v5157_v63 = vadd.f32 %v16584_v25, %v5104_v28  ;;  %v5945_v7 = vshrl.u32 %v12144_v36, 16  ;;  %13457 = vmatprep.mubr.bf16.mxu1 %v6497_v24  ;;  %v6500_v12 = vor.u32 %v6498_v59, %v6496_v26  ;;  %v6502_v27 = vshll.u32 %v16819_v1, 16  ;;  %v16835_v43 = vpop.f32.mrb[42].mxu0  ;;  %13506 = vmatpush3.bf16.msra.mxu1 %v15081_v31  ;;  %v16840_v57 = vld [vmem:[%s17834_s3] ss:$0 sm:$0xff]  ;;  %v5429_v26 = vpop.permute.xlu0 %5428 }
 0x4b5   : > { %v5948_v41 = vshll.u32 %v12144_v36, 16  ;;  %v5927_v50 = vshrl.u32 %v12142_v51, 16  ;;  %v12145_v6 = vpack.c.bf16 %v5543_v19, %v5543_v19  ;;  %13507 = vmatprep.subr.bf16.mxu1 %v15084_v13  ;;  %v5109_v38 = vmul.f32 %v16840_v57, %v16734_v46  ;;  %v16846_v62 = vpop.f32.mrb[43].mxu0 }
 0x4b6   : > { %v5205_v56 = vmax.f32 %v5157_v63, 0.0  ;;  %v5947_v25 = vrot.slane %v5945_v7, 7  ;;  %v6504_v37 = vrot.slane %v6502_v27, 1  ;;  %v5107_v31 = vmul.f32 %v16840_v57, %v16743_v42  ;;  %v16856_v42 = vpop.permute.xlu1 %5423 }
 0x4b7   : > { %v5929_v55 = vrot.slane %v5927_v50, 7  ;;  %v5930_v16 = vshll.u32 %v12142_v51, 16  ;;  %v5954_v34 = vshrl.u32 %v12145_v6, 16  ;;  %v5957_v35 = vshll.u32 %v12145_v6, 16 }
 0x4b8   : > { %v5541_v44 = vmul.f32 %v16800_v40, %v5205_v56  ;;  %v5950_v58 = vor.u32 %v5948_v41, %v5947_v25  ;;  %v6505_v29 = vsel %vm517_vm0, %v6500_v12, %v6504_v37  ;;  %v5162_v46 = vadd.f32 %v16853_v22, %v5109_v38  ;;  %13508 = vmatpush3.bf16.msra.mxu1 %v15084_v13  ;;  %v15071_v40 = vld [vmem:[#allocation2 + $0x38] sm:$0xff]  }
 0x4b9   : > { %v5952_v0 = vrot.slane %v5947_v25, 4  ;;  %v5932_v11 = vor.u32 %v5930_v16, %v5929_v55  ;;  %v16858_v45 = vrot.slane %v5954_v34, 7  ;;  %13458 = vmatmul.mubr.bf16.gmra.mrb[8].mxu1 %v6505_v29  ;;  %13509 = vmatprep.subr.bf16.mxu1 %v15089_v14  ;;  %v5934_v2 = vrot.slane %v5929_v55, 4  ;;  %v16881_v16 = vld [vmem:[#allocation2 + $0x40] sm:$0xff]  }
 0x4ba   : > { %v12143_v4 = vpack.c.bf16 %v5541_v44, %v5541_v44  ;;  %v5210_v32 = vmax.f32 %v5162_v46, 0.0  ;;  %v5160_v52 = vadd.f32 %v16853_v22, %v5107_v31  ;;  %v5110_v54 = vmul.f32 %v16840_v57, %v16749_v53  ;;  %v16867_v60 = vpop.f32.mrb[44].mxu0  ;;  %v15095_v53 = vld [vmem:[#allocation8 + $0x80] sm:$0xff]  }
 0x4bb   : > { %v5933_v13 = vsel %vm16614_vm7, %v5925_v8, %v5932_v11  ;;  %v5959_v28 = vor.u32 %v5957_v35, %v16858_v45  ;;  %v6506_v30 = vshrl.u32 %v16819_v1, 16  ;;  %v5961_v36 = vrot.slane %v16858_v45, 4  ;;  %v16871_v24 = vpop.f32.mrb[45].mxu0 }
 0x4bc   : > { %v5936_v48 = vshrl.u32 %v12143_v4, 16  ;;  %6220 = vst [vmem:[#allocation2 + $0x6c] sm:$0xf] %v5933_v13  ;;  %v5546_v59 = vmul.f32 %v5429_v26, %v5210_v32  ;;  %v5208_v51 = vmax.f32 %v5160_v52, 0.0  ;;  %v5163_v19 = vadd.f32 %v16853_v22, %v5110_v54  ;;  %13510 = vmatpush3.bf16.msra.mxu1 %v15089_v14  ;;  %v16875_v1 = vpop.f32.mrb[46].mxu0  ;;  %v5434_v14 = vpop.permute.xlu1 %5433 }
 0x4bd   : > { %v5960_v63 = vsel %vm16614_vm7, %v5952_v0, %v5959_v28  ;;  %v5939_v7 = vshll.u32 %v12143_v4, 16  ;;  %v6510_v12 = vshll.u32 %v15071_v40, 16  ;;  %13511 = vmatprep.subr.bf16.mxu1 %v15092_v33  ;;  %v5108_v6 = vmul.f32 %v16840_v57, %v16755_v15  ;;  %v16879_v56 = vpop.f32.mrb[47].mxu0 }
 0x4be   : > { %v5938_v8 = vrot.slane %v5936_v48, 7  ;;  %6223 = vst [vmem:[#allocation2 + $0x78] sm:$0xf] %v5960_v63  ;;  %v12148_v27 = vpack.c.bf16 %v5546_v59, %v5546_v59  ;;  %v5544_v41 = vmul.f32 %v5419_v49, %v5208_v51  ;;  %v5211_v50 = vmax.f32 %v5163_v19, 0.0  ;;  %v15074_v48 = vld [vmem:[#allocation2 + $0x48] sm:$0xff]  }
 0x4bf   : > { %v6508_v31 = vor.u32 %v6506_v30, %v6504_v37  ;;  %v6512_v55 = vrot.slane %v6510_v12, 1  ;;  %v6514_v29 = vshrl.u32 %v15071_v40, 16  ;;  %v5161_v0 = vadd.f32 %v16853_v22, %v5108_v6  ;;  %v5439_v37 = vpop.permute.xlu0 %5438 }
 0x4c0   : > { %v5941_v25 = vor.u32 %v5939_v7, %v5938_v8  ;;  %v5943_v38 = vrot.slane %v5938_v8, 4  ;;  %v5981_v34 = vshrl.u32 %v12148_v27, 16  ;;  %v12146_v44 = vpack.c.bf16 %v5544_v41, %v5544_v41  ;;  %13512 = vmatpush3.bf16.msra.mxu1 %v15092_v33 }
 0x4c1   : > { %v5547_v35 = vmul.f32 %v5434_v14, %v5211_v50  ;;  %v6513_v46 = vsel %vm517_vm0, %v6508_v31, %v6512_v55  ;;  %13561 = vmatprep.subr.bf16.mxu1 %v15095_v53  ;;  %v5984_v4 = vshll.u32 %v12148_v27, 16  ;;  %v5209_v40 = vmax.f32 %v5161_v0, 0.0  ;;  %v16894_v53 = vpop.permute.xlu1 %5443 }
 0x4c2   : > { %v5942_v49 = vsel %vm16614_vm7, %v5934_v2, %v5941_v25  ;;  %v5951_v15 = vsel %vm16614_vm7, %v5943_v38, %v5950_v58  ;;  %v5983_v11 = vrot.slane %v5981_v34, 7  ;;  %v5963_v32 = vshrl.u32 %v12146_v44, 16  ;;  %13461 = vmatprep.mubr.bf16.mxu1 %v6513_v46 }
 0x4c3   : > { %6221 = vst [vmem:[#allocation2 + $0x70] sm:$0xf] %v5942_v49  ;;  %6222 = vst [vmem:[#allocation2 + $0x74] sm:$0xf] %v5951_v15  ;;  %v12149_v52 = vpack.c.bf16 %v5547_v35, %v5547_v35  ;;  %v6516_v33 = vor.u32 %v6514_v29, %v6512_v55  ;;  %v6518_v2 = vshll.u32 %v16881_v16, 16  ;;  %v5113_v58 = vmul.f32 %v16840_v57, %v16773_v10 }
 0x4c4   : > { %v5986_v54 = vor.u32 %v5984_v4, %v5983_v11  ;;  %v5965_v26 = vrot.slane %v5963_v32, 7  ;;  %v5966_v13 = vshll.u32 %v12146_v44, 16  ;;  %v5988_v30 = vrot.slane %v5983_v11, 4 }
 0x4c5   : > { %v5990_v28 = vshrl.u32 %v12149_v52, 16  ;;  %v5545_v59 = vmul.f32 %v16856_v42, %v5209_v40  ;;  %v6520_v51 = vrot.slane %v6518_v2, 1  ;;  %v5166_v19 = vadd.f32 %v16853_v22, %v5113_v58  ;;  %v5449_v42 = vpop.permute.xlu0 %5448  ;;  %v5454_v46 = vpop.permute.xlu1 %5453  ;;  %v16916_v2 = vld [vmem:[#allocation2 + $0x50] sm:$0xff]  }
 0x4c6   : > { %v5968_v63 = vor.u32 %v5966_v13, %v5965_v26  ;;  %v5993_v7 = vshll.u32 %v12149_v52, 16  ;;  %v5111_v10 = vmul.f32 %v16840_v57, %v16777_v61  ;;  %v5114_v50 = vmul.f32 %v16840_v57, %v16780_v18 }
 0x4c7   : > { %v16896_v8 = vrot.slane %v5990_v28, 7  ;;  %v12147_v12 = vpack.c.bf16 %v5545_v59, %v5545_v59  ;;  %v6521_v27 = vsel %vm517_vm0, %v6516_v33, %v6520_v51  ;;  %v5214_v41 = vmax.f32 %v5166_v19, 0.0 }
 0x4c8   : > { %v5969_v6 = vsel %vm16614_vm7, %v5961_v36, %v5968_v63  ;;  %v5970_v14 = vrot.slane %v5965_v26, 4  ;;  %13462 = vmatmul.mubr.bf16.gmra.mrb[12].mxu1 %v6521_v27  ;;  %v5164_v38 = vadd.f32 %v16853_v22, %v5111_v10  ;;  %v5167_v34 = vadd.f32 %v16853_v22, %v5114_v50 }
 0x4c9   : > { %v5995_v25 = vor.u32 %v5993_v7, %v16896_v8  ;;  %6224 = vst [vmem:[#allocation2 + $0x7c] sm:$0xf] %v5969_v6  ;;  %v5972_v61 = vshrl.u32 %v12147_v12, 16  ;;  %v5975_v31 = vshll.u32 %v12147_v12, 16  ;;  %v5550_v55 = vmul.f32 %v5449_v42, %v5214_v41  ;;  %v16927_v41 = vpop.permute.xlu1 %5463 }
 0x4ca   : > { %v5212_v44 = vmax.f32 %v5164_v38, 0.0  ;;  %v6522_v45 = vshrl.u32 %v16881_v16, 16  ;;  %v6526_v35 = vshll.u32 %v15074_v48, 16  ;;  %v5215_v49 = vmax.f32 %v5167_v34, 0.0 }
 0x4cb   : > { %v5996_v18 = vsel %vm16614_vm7, %v5988_v30, %v5995_v25  ;;  %v5974_v36 = vrot.slane %v5972_v61, 7  ;;  %v12152_v29 = vpack.c.bf16 %v5550_v55, %v5550_v55  ;;  %v5112_v15 = vmul.f32 %v16840_v57, %v16788_v47 }
 0x4cc   : > { %6227 = vst [vmem:[#allocation2 + $0x88] sm:$0xf] %v5996_v18  ;;  %v5997_v0 = vrot.slane %v16896_v8, 4  ;;  %v5548_v11 = vmul.f32 %v5439_v37, %v5212_v44  ;;  %v6524_v4 = vor.u32 %v6522_v45, %v6520_v51  ;;  %v6528_v32 = vrot.slane %v6526_v35, 1  ;;  %v5459_v51 = vpop.permute.xlu0 %5458 }
 0x4cd   : > { %v5977_v52 = vor.u32 %v5975_v31, %v5974_v36  ;;  %v5979_v40 = vrot.slane %v5974_v36, 4  ;;  %v6017_v33 = vshrl.u32 %v12152_v29, 16  ;;  %v6530_v16 = vshrl.u32 %v15074_v48, 16  ;;  %v16935_v31 = vld [vmem:[#allocation2 + $0x58] sm:$0xff]  }
 0x4ce   : > { %v12150_v58 = vpack.c.bf16 %v5548_v11, %v5548_v11  ;;  %v5551_v26 = vmul.f32 %v5454_v46, %v5215_v49  ;;  %v6529_v13 = vsel %vm517_vm0, %v6524_v4, %v6528_v32  ;;  %v5165_v28 = vadd.f32 %v16853_v22, %v5112_v15 }
 0x4cf   : > { %v5978_v47 = vsel %vm16614_vm7, %v5970_v14, %v5977_v52  ;;  %v5987_v37 = vsel %vm16614_vm7, %v5979_v40, %v5986_v54  ;;  %v6019_v30 = vrot.slane %v6017_v33, 7  ;;  %v6020_v59 = vshll.u32 %v12152_v29, 16  ;;  %13465 = vmatprep.mubr.bf16.mxu1 %v6529_v13 }
 0x4d0   : > { %6225 = vst [vmem:[#allocation2 + $0x80] sm:$0xf] %v5978_v47  ;;  %6226 = vst [vmem:[#allocation2 + $0x84] sm:$0xf] %v5987_v37  ;;  %v5999_v19 = vshrl.u32 %v12150_v58, 16  ;;  %v12153_v48 = vpack.c.bf16 %v5551_v26, %v5551_v26  ;;  %v5213_v63 = vmax.f32 %v5165_v28, 0.0  ;;  %v6532_v8 = vor.u32 %v6530_v16, %v6528_v32  ;;  %v5469_v36 = vpop.permute.xlu0 %5468  ;;  %v5474_v32 = vpop.permute.xlu1 %5473 }
 0x4d1   : > { %v6022_v7 = vor.u32 %v6020_v59, %v6019_v30  ;;  %v6002_v10 = vshll.u32 %v12150_v58, 16  ;;  %v6534_v12 = vshll.u32 %v16916_v2, 16  ;;  %v5117_v27 = vmul.f32 %v16840_v57, %v16796_v39  ;;  %v16951_v59 = vld [vmem:[#allocation2 + $0x60] sm:$0xff]  }
 0x4d2   : > { %v6024_v54 = vrot.slane %v6019_v30, 4  ;;  %v6001_v50 = vrot.slane %v5999_v19, 7  ;;  %v6026_v42 = vshrl.u32 %v12153_v48, 16  ;;  %v5549_v6 = vmul.f32 %v16894_v53, %v5213_v63 }
 0x4d3   : > { %v6536_v14 = vrot.slane %v6534_v12, 1  ;;  %v5170_v25 = vadd.f32 %v16853_v22, %v5117_v27  ;;  %v5115_v38 = vmul.f32 %v16840_v57, %v16798_v21  ;;  %v5118_v61 = vmul.f32 %v16840_v57, %v16805_v17 }
 0x4d4   : > { %v6004_v55 = vor.u32 %v6002_v10, %v6001_v50  ;;  %v16937_v39 = vrot.slane %v6026_v42, 7  ;;  %v6029_v34 = vshll.u32 %v12153_v48, 16  ;;  %v12151_v18 = vpack.c.bf16 %v5549_v6, %v5549_v6 }
 0x4d5   : > { %v6537_v44 = vsel %vm517_vm0, %v6532_v8, %v6536_v14  ;;  %v5218_v45 = vmax.f32 %v5170_v25, 0.0  ;;  %v5168_v53 = vadd.f32 %v16853_v22, %v5115_v38  ;;  %v5171_v35 = vadd.f32 %v16853_v22, %v5118_v61  ;;  %v5479_v38 = vpop.permute.xlu0 %5478 }
 0x4d6   : > { %v6005_v21 = vsel %vm16614_vm7, %v5997_v0, %v6004_v55  ;;  %v6006_v29 = vrot.slane %v6001_v50, 4  ;;  %v6031_v17 = vor.u32 %v6029_v34, %v16937_v39  ;;  %v6008_v49 = vshrl.u32 %v12151_v18, 16  ;;  %13466 = vmatmul.mubr.bf16.gmra.mrb[16].mxu1 %v6537_v44 }
 0x4d7   : > { %6228 = vst [vmem:[#allocation2 + $0x8c] sm:$0xf] %v6005_v21  ;;  %v6011_v15 = vshll.u32 %v12151_v18, 16  ;;  %v5554_v46 = vmul.f32 %v5469_v36, %v5218_v45  ;;  %v5216_v11 = vmax.f32 %v5168_v53, 0.0  ;;  %v5219_v4 = vmax.f32 %v5171_v35, 0.0  ;;  %v16967_v53 = vld [vmem:[#allocation2 + $0x68] sm:$0xff]  }
 0x4d8   : > { %v6032_v52 = vsel %vm16614_vm7, %v6024_v54, %v6031_v17  ;;  %v6010_v40 = vrot.slane %v6008_v49, 7  ;;  %v6538_v33 = vshrl.u32 %v16916_v2, 16  ;;  %v6542_v16 = vshll.u32 %v16935_v31, 16  ;;  %v5484_v17 = vpop.permute.xlu1 %5483 }
 0x4d9   : > { %6231 = vst [vmem:[#allocation2 + $0x98] sm:$0xf] %v6032_v52  ;;  %v12156_v0 = vpack.c.bf16 %v5554_v46, %v5554_v46  ;;  %v5552_v58 = vmul.f32 %v5459_v51, %v5216_v11  ;;  %v5555_v26 = vmul.f32 %v5474_v32, %v5219_v4  ;;  %v5116_v13 = vmul.f32 %v16840_v57, %v16813_v9  ;;  %v16981_v52 = vld [vmem:[#allocation2 + $0x70] sm:$0xff]  }
 0x4da   : > { %v6013_v28 = vor.u32 %v6011_v15, %v6010_v40  ;;  %v6015_v47 = vrot.slane %v6010_v40, 4  ;;  %v6540_v37 = vor.u32 %v6538_v33, %v6536_v14  ;;  %v6544_v30 = vrot.slane %v6542_v16, 1 }
 0x4db   : > { %v6033_v19 = vrot.slane %v16937_v39, 4  ;;  %v6053_v48 = vshrl.u32 %v12156_v0, 16  ;;  %v12154_v63 = vpack.c.bf16 %v5552_v58, %v5552_v58  ;;  %v12157_v2 = vpack.c.bf16 %v5555_v26, %v5555_v26 }
 0x4dc   : > { %v6014_v8 = vsel %vm16614_vm7, %v6006_v29, %v6013_v28  ;;  %v6023_v51 = vsel %vm16614_vm7, %v6015_v47, %v6022_v7  ;;  %v6545_v10 = vsel %vm517_vm0, %v6540_v37, %v6544_v30  ;;  %v5169_v9 = vadd.f32 %v16853_v22, %v5116_v13 }
 0x4dd   : > { %6229 = vst [vmem:[#allocation2 + $0x90] sm:$0xf] %v6014_v8  ;;  %6230 = vst [vmem:[#allocation2 + $0x94] sm:$0xf] %v6023_v51  ;;  %v6055_v12 = vrot.slane %v6053_v48, 7  ;;  %v6056_v27 = vshll.u32 %v12156_v0, 16  ;;  %13469 = vmatprep.mubr.bf16.mxu1 %v6545_v10  ;;  %v5121_v45 = vmul.f32 %v16840_v57, %v16827_v20  ;;  %v5122_v4 = vmul.f32 %v16840_v57, %v16835_v43  ;;  %v5489_v0 = vpop.permute.xlu0 %5488  ;;  %v5494_v8 = vpop.permute.xlu1 %5493 }
 0x4de   : > { %v6035_v54 = vshrl.u32 %v12154_v63, 16  ;;  %v6062_v50 = vshrl.u32 %v12157_v2, 16  ;;  %v6038_v42 = vshll.u32 %v12154_v63, 16  ;;  %v5217_v6 = vmax.f32 %v5169_v9, 0.0 }
 0x4df   : > { %v6546_v14 = vshrl.u32 %v16935_v31, 16  ;;  %v6550_v25 = vshll.u32 %v16951_v59, 16  ;;  %v6058_v61 = vor.u32 %v6056_v27, %v6055_v12  ;;  %v6065_v39 = vshll.u32 %v12157_v2, 16 }
 0x4e0   : > { %v6037_v7 = vrot.slane %v6035_v54, 7  ;;  %v16962_v55 = vrot.slane %v6062_v50, 7  ;;  %v5553_v34 = vmul.f32 %v16927_v41, %v5217_v6  ;;  %v6060_v35 = vrot.slane %v6055_v12, 4 }
 0x4e1   : > { %v6548_v18 = vor.u32 %v6546_v14, %v6544_v30  ;;  %v6552_v44 = vrot.slane %v6550_v25, 1  ;;  %v5174_v46 = vadd.f32 %v16853_v22, %v5121_v45  ;;  %v5119_v41 = vmul.f32 %v16840_v57, %v16831_v23 }
 0x4e2   : > { %v6040_v36 = vor.u32 %v6038_v42, %v6037_v7  ;;  %v6042_v21 = vrot.slane %v6037_v7, 4  ;;  %v6067_v29 = vor.u32 %v6065_v39, %v16962_v55  ;;  %v12155_v49 = vpack.c.bf16 %v5553_v34, %v5553_v34 }
 0x4e3   : > { %v6553_v15 = vsel %vm517_vm0, %v6548_v18, %v6552_v44  ;;  %v6554_v32 = vshrl.u32 %v16951_v59, 16  ;;  %v5222_v16 = vmax.f32 %v5174_v46, 0.0  ;;  %v5172_v23 = vadd.f32 %v16853_v22, %v5119_v41 }
 0x4e4   : > { %v6041_v11 = vsel %vm16614_vm7, %v6033_v19, %v6040_v36  ;;  %v6068_v20 = vsel %vm16614_vm7, %v6060_v35, %v6067_v29  ;;  %13470 = vmatmul.mubr.bf16.gmra.mrb[20].mxu1 %v6553_v15  ;;  %v6044_v40 = vshrl.u32 %v12155_v49, 16  ;;  %v6047_v33 = vshll.u32 %v12155_v49, 16  ;;  %v17003_v49 = vpop.permute.xlu1 %5503 }
 0x4e5   : > { %6232 = vst [vmem:[#allocation2 + $0x9c] sm:$0xf] %v6041_v11  ;;  %6235 = vst [vmem:[#allocation2 + $0xa8] sm:$0xf] %v6068_v20  ;;  %v5175_v58 = vadd.f32 %v16853_v22, %v5122_v4  ;;  %v6556_v26 = vor.u32 %v6554_v32, %v6552_v44  ;;  %v6558_v13 = vshll.u32 %v16967_v53, 16  ;;  %v5120_v43 = vmul.f32 %v16840_v57, %v16846_v62  ;;  %v17010_v20 = vld [vmem:[#allocation2 + $0x78] sm:$0xff]  }
 0x4e6   : > { %v6046_v28 = vrot.slane %v6044_v40, 7  ;;  %v5558_v47 = vmul.f32 %v5489_v0, %v5222_v16  ;;  %v5220_v37 = vmax.f32 %v5172_v23, 0.0  ;;  %v6562_v30 = vshrl.u32 %v16967_v53, 16 }
 0x4e7   : > { %v5223_v19 = vmax.f32 %v5175_v58, 0.0  ;;  %v6560_v48 = vrot.slane %v6558_v13, 1  ;;  %v5173_v63 = vadd.f32 %v16853_v22, %v5120_v43  ;;  %v6566_v2 = vshll.u32 %v16981_v52, 16 }
 0x4e8   : > { %v6049_v51 = vor.u32 %v6047_v33, %v6046_v28  ;;  %v6051_v10 = vrot.slane %v6046_v28, 4  ;;  %v12160_v9 = vpack.c.bf16 %v5558_v47, %v5558_v47  ;;  %v5556_v12 = vmul.f32 %v5479_v38, %v5220_v37 }
 0x4e9   : > { %v5559_v27 = vmul.f32 %v5494_v8, %v5223_v19  ;;  %v6561_v54 = vsel %vm517_vm0, %v6556_v26, %v6560_v48  ;;  %v5221_v62 = vmax.f32 %v5173_v63, 0.0  ;;  %v6564_v14 = vor.u32 %v6562_v30, %v6560_v48  ;;  %v5514_v48 = vpop.permute.xlu1 %5513 }
 0x4ea   : > { %v6050_v50 = vsel %vm16614_vm7, %v6042_v21, %v6049_v51  ;;  %v6059_v42 = vsel %vm16614_vm7, %v6051_v10, %v6058_v61  ;;  %v6089_v6 = vshrl.u32 %v12160_v9, 16  ;;  %13473 = vmatprep.mubr.bf16.mxu1 %v6561_v54  ;;  %v12158_v25 = vpack.c.bf16 %v5556_v12, %v5556_v12  ;;  %v5499_v61 = vpop.permute.xlu0 %5498 }
 0x4eb   : > { %6233 = vst [vmem:[#allocation2 + $0xa0] sm:$0xf] %v6050_v50  ;;  %6234 = vst [vmem:[#allocation2 + $0xa4] sm:$0xf] %v6059_v42  ;;  %v12161_v7 = vpack.c.bf16 %v5559_v27, %v5559_v27  ;;  %v5557_v39 = vmul.f32 %v5484_v17, %v5221_v62  ;;  %v6568_v34 = vrot.slane %v6566_v2, 1  ;;  %v5125_v18 = vmul.f32 %v16840_v57, %v16867_v60 }
 0x4ec   : > { %v6091_v38 = vrot.slane %v6089_v6, 7  ;;  %v5123_v44 = vmul.f32 %v16840_v57, %v16871_v24  ;;  %v5126_v45 = vmul.f32 %v16840_v57, %v16875_v1  ;;  %v6069_v35 = vrot.slane %v16962_v55, 4  ;;  %v17026_v6 = vld [vmem:[#allocation2 + $0x80] sm:$0xff]  }
 0x4ed   : > { %v6092_v36 = vshll.u32 %v12160_v9, 16  ;;  %v6071_v21 = vshrl.u32 %v12158_v25, 16  ;;  %v6098_v29 = vshrl.u32 %v12161_v7, 16  ;;  %v6074_v17 = vshll.u32 %v12158_v25, 16 }
 0x4ee   : > { %v6101_v15 = vshll.u32 %v12161_v7, 16  ;;  %v12159_v46 = vpack.c.bf16 %v5557_v39, %v5557_v39  ;;  %v6569_v41 = vsel %vm517_vm0, %v6564_v14, %v6568_v34  ;;  %v5178_v24 = vadd.f32 %v16853_v22, %v5125_v18  ;;  %v5509_v28 = vpop.permute.xlu0 %5508  ;;  %v17030_v39 = vld [vmem:[#allocation2 + $0x88] sm:$0xff]  }
 0x4ef   : > { %v6073_v60 = vrot.slane %v6071_v21, 7  ;;  %v17006_v11 = vrot.slane %v6098_v29, 7  ;;  %13474 = vmatmul.mubr.bf16.gmra.mrb[24].mxu1 %v6569_v41  ;;  %v5176_v1 = vadd.f32 %v16853_v22, %v5123_v44  ;;  %v6094_v55 = vor.u32 %v6092_v36, %v6091_v38  ;;  %v17034_v21 = vld [vmem:[#allocation2 + $0x90] sm:$0xff]  }
 0x4f0   : > { %v6096_v4 = vrot.slane %v6091_v38, 4  ;;  %v6080_v32 = vshrl.u32 %v12159_v46, 16  ;;  %v5179_v40 = vadd.f32 %v16853_v22, %v5126_v45  ;;  %v6083_v0 = vshll.u32 %v12159_v46, 16  ;;  %v17038_v46 = vld [vmem:[#allocation2 + $0x98] sm:$0xff]  }
 0x4f1   : > { %v6076_v33 = vor.u32 %v6074_v17, %v6073_v60  ;;  %v6078_v16 = vrot.slane %v6073_v60, 4  ;;  %v6103_v23 = vor.u32 %v6101_v15, %v17006_v11  ;;  %v5226_v26 = vmax.f32 %v5178_v24, 0.0 }
 0x4f2   : > { %v6082_v58 = vrot.slane %v6080_v32, 7  ;;  %v5224_v13 = vmax.f32 %v5176_v1, 0.0  ;;  %v5227_v43 = vmax.f32 %v5179_v40, 0.0  ;;  %v6570_v30 = vshrl.u32 %v16981_v52, 16 }
 0x4f3   : > { %v6077_v47 = vsel %vm16614_vm7, %v6069_v35, %v6076_v33  ;;  %v6104_v37 = vsel %vm16614_vm7, %v6096_v4, %v6103_v23  ;;  %v6574_v19 = vshll.u32 %v17010_v20, 16  ;;  %v5562_v8 = vmul.f32 %v5509_v28, %v5226_v26  ;;  %v6246_v35 = vld [vmem:[#allocation2 + $0xcc] sm:$0x1] }
 0x4f4   : > { %6236 = vst [vmem:[#allocation2 + $0xac] sm:$0xf] %v6077_v47  ;;  %6239 = vst [vmem:[#allocation2 + $0xb8] sm:$0xf] %v6104_v37  ;;  %v6085_v63 = vor.u32 %v6083_v0, %v6082_v58  ;;  %v6087_v2 = vrot.slane %v6082_v58, 4  ;;  %v5560_v51 = vmul.f32 %v5499_v61, %v5224_v13  ;;  %v5563_v10 = vmul.f32 %v5514_v48, %v5227_v43  ;;  %v17051_v47 = vld [vmem:[#allocation2 + $0xa0] sm:$0xff]  }
 0x4f5   : > { %v6572_v9 = vor.u32 %v6570_v30, %v6568_v34  ;;  %v6576_v12 = vrot.slane %v6574_v19, 1  ;;  %v5124_v27 = vmul.f32 %v16840_v57, %v16879_v56  ;;  %v12164_v50 = vpack.c.bf16 %v5562_v8, %v5562_v8 }
 0x4f6   : > { %v6086_v54 = vsel %vm16614_vm7, %v6078_v16, %v6085_v63  ;;  %v6095_v62 = vsel %vm16614_vm7, %v6087_v2, %v6094_v55  ;;  %v12162_v42 = vpack.c.bf16 %v5560_v51, %v5560_v51  ;;  %v12165_v14 = vpack.c.bf16 %v5563_v10, %v5563_v10 }
 0x4f7   : > { %6237 = vst [vmem:[#allocation2 + $0xb0] sm:$0xf] %v6086_v54  ;;  %6238 = vst [vmem:[#allocation2 + $0xb4] sm:$0xf] %v6095_v62  ;;  %v6577_v25 = vsel %vm517_vm0, %v6572_v9, %v6576_v12  ;;  %v5177_v7 = vadd.f32 %v16853_v22, %v5124_v27  ;;  %v6125_v57 = vshrl.u32 %v12164_v50, 16  ;;  %v6578_v18 = vshrl.u32 %v17010_v20, 16 }
 0x4f8   : > { %v6107_v56 = vshrl.u32 %v12162_v42, 16  ;;  %13477 = vmatprep.mubr.bf16.mxu1 %v6577_v25  ;;  %v6134_v34 = vshrl.u32 %v12165_v14, 16  ;;  %v6110_v61 = vshll.u32 %v12162_v42, 16  ;;  %v6582_v36 = vshll.u32 %v17026_v6, 16 }
 0x4f9   : > { %v5225_v38 = vmax.f32 %v5177_v7, 0.0  ;;  %v6127_v44 = vrot.slane %v6125_v57, 7  ;;  %v6137_v22 = vshll.u32 %v12165_v14, 16  ;;  %v6590_v15 = vshll.u32 %v17030_v39, 16 }
 0x4fa   : > { %v6109_v45 = vrot.slane %v6107_v56, 7  ;;  %v6136_v29 = vrot.slane %v6134_v34, 7  ;;  %v6105_v41 = vrot.slane %v17006_v11, 4  ;;  %v6580_v1 = vor.u32 %v6578_v18, %v6576_v12 }
 0x4fb   : > { %v5561_v17 = vmul.f32 %v17003_v49, %v5225_v38  ;;  %v6132_v60 = vrot.slane %v6127_v44, 4  ;;  %v6584_v40 = vrot.slane %v6582_v36, 1  ;;  %v6586_v49 = vshrl.u32 %v17026_v6, 16  ;;  %v17056_v54 = vld [vmem:[#allocation2 + $0xa8] sm:$0xff]  }
 0x4fc   : > { %v6112_v24 = vor.u32 %v6110_v61, %v6109_v45  ;;  %v6139_v55 = vor.u32 %v6137_v22, %v6136_v29  ;;  %v6141_v4 = vrot.slane %v6136_v29, 4  ;;  %v6592_v16 = vrot.slane %v6590_v15, 1 }
 0x4fd   : > { %v12163_v32 = vpack.c.bf16 %v5561_v17, %v5561_v17  ;;  %v6598_v23 = vshll.u32 %v17034_v21, 16  ;;  %v6128_v26 = vshll.u32 %v12164_v50, 16  ;;  %v6585_v13 = vsel %vm517_vm0, %v6580_v1, %v6584_v40 }
 0x4fe   : > { %v6113_v33 = vsel %vm16614_vm7, %v6105_v41, %v6112_v24  ;;  %v6140_v11 = vsel %vm16614_vm7, %v6132_v60, %v6139_v55  ;;  %v6247_v0 = vsel %vm6245_vm9, %v6141_v4, %v6246_v35  ;;  %v6588_v43 = vor.u32 %v6586_v49, %v6584_v40  ;;  %13478 = vmatmul.mubr.bf16.gmra.mrb[28].mxu1 %v6585_v13  ;;  %v17067_v38 = vld [vmem:[#allocation2 + $0xb0] sm:$0xff]   ;;  %v15097_v13 = vld [vmem:[#allocation8 + $0x90] sm:$0xff]  }
 0x4ff   : > { %6240 = vst [vmem:[#allocation2 + $0xbc] sm:$0xf] %v6113_v33  ;;  %v6116_v58 = vshrl.u32 %v12163_v32, 16  ;;  %6243 = vst [vmem:[#allocation2 + $0xc8] sm:$0xf] %v6140_v11  ;;  %v6594_v28 = vshrl.u32 %v17030_v39, 16  ;;  %v6130_v63 = vor.u32 %v6128_v26, %v6127_v44 }
 0x500   : > { %6248 = vst [vmem:[#allocation2 + $0xcc] sm:$0x1] %v6247_v0  ;;  %v6119_v30 = vshll.u32 %v12163_v32, 16  ;;  %v6600_v19 = vrot.slane %v6598_v23, 1  ;;  %v6606_v48 = vshll.u32 %v17038_v46, 16  ;;  %v6114_v2 = vrot.slane %v6109_v45, 4 }
 0x501   : > { %v6118_v37 = vrot.slane %v6116_v58, 7  ;;  %v6593_v8 = vsel %vm517_vm0, %v6588_v43, %v6592_v16  ;;  %v6596_v51 = vor.u32 %v6594_v28, %v6592_v16  ;;  %v6602_v12 = vshrl.u32 %v17034_v21, 16  ;;  %v15096_v11 = vld [vmem:[#allocation8 + $0x88] sm:$0xff]   ;;  %v17086_v0 = vld [vmem:[#allocation2 + $0x8] sm:$0xff]   ;;  %v17092_v43 = vld [vmem:[#allocation2 + $0x10] sm:$0xf] }
 0x502   : > { %13481 = vmatprep.mubr.bf16.mxu1 %v6593_v8  ;;  %v6608_v27 = vrot.slane %v6606_v48, 1  ;;  %v6614_v62 = vshll.u32 %v17051_v47, 16  ;;  %v6622_v57 = vshll.u32 %v17056_v54, 16  ;;  %v6610_v56 = vshrl.u32 %v17038_v46, 16  ;;  %v17089_v58 = vld [vmem:[#allocation2 + $0x10] sm:$0xff]   ;;  %v15098_v28 = vld [vmem:[#allocation8 + $0x98] sm:$0xff]  }
 0x503   : > { %v6121_v10 = vor.u32 %v6119_v30, %v6118_v37  ;;  %v6123_v9 = vrot.slane %v6118_v37, 4  ;;  %v6604_v14 = vor.u32 %v6602_v12, %v6600_v19  ;;  %v6601_v25 = vsel %vm517_vm0, %v6596_v51, %v6600_v19  ;;  %v15278_v26 = vld [vmem:[#allocation8 + $0x80] sm:$0xff]   ;;  %v17094_v37 = vld [vmem:[#allocation2 + $0x14] sm:$0xff]   ;;  %v17101_v19 = vld [vmem:[#allocation2 + $0x24] sm:$0xff]  }
 0x504   : > { %v6616_v34 = vrot.slane %v6614_v62, 1  ;;  %v6612_v18 = vor.u32 %v6610_v56, %v6608_v27  ;;  %v6618_v5 = vshrl.u32 %v17051_v47, 16  ;;  %v6624_v44 = vrot.slane %v6622_v57, 1  ;;  %v17098_v30 = vld [vmem:[#allocation2 + $0x18] sm:$0xff]   ;;  %v17103_v48 = vld [vmem:[#allocation2 + $0x2c] sm:$0xff]   ;;  %v17113_v12 = vld [vmem:[#allocation2 + $0x44] sm:$0xff]  }
 0x505   : > { %v6122_v50 = vsel %vm16614_vm7, %v6114_v2, %v6121_v10  ;;  %v6131_v42 = vsel %vm16614_vm7, %v6123_v9, %v6130_v63  ;;  %v6609_v7 = vsel %vm517_vm0, %v6604_v14, %v6608_v27  ;;  %v6630_v35 = vshll.u32 %v17067_v38, 16  ;;  %v8919_v63 = vld [vmem:[#allocation2 + $0xc] sm:$0xe]  ;;  %v17105_v2 = vld [vmem:[#allocation2 + $0x20] sm:$0xff]   ;;  %v17108_v8 = vld [vmem:[#allocation2 + $0x34] sm:$0xff]  }
 0x506   : > { %6241 = vst [vmem:[#allocation2 + $0xc0] sm:$0xf] %v6122_v50  ;;  %6242 = vst [vmem:[#allocation2 + $0xc4] sm:$0xf] %v6131_v42  ;;  %13482 = vmatmul.mubr.bf16.gmra.mrb[32].mxu1 %v6601_v25  ;;  %v17070_v45 = vld [vmem:[#allocation2 + $0xb8] sm:$0xff]   ;;  %v6620_v61 = vor.u32 %v6618_v5, %v6616_v34  ;;  %v6617_v36 = vsel %vm517_vm0, %v6612_v18, %v6616_v34  ;;  %v6626_v17 = vshrl.u32 %v17056_v54, 16 }
 0x507   : > { %13485 = vmatprep.mubr.bf16.mxu1 %v6609_v7  ;;  %v6638_v22 = vshll.u32 %v17070_v45, 16  ;;  %v6632_v15 = vrot.slane %v6630_v35, 1  ;;  %v6634_v24 = vshrl.u32 %v17067_v38, 16  ;;  %v6642_v33 = vshrl.u32 %v17070_v45, 16  ;;  %v17110_v51 = vld [vmem:[#allocation2 + $0x3c] sm:$0xff]   ;;  %v15099_v9 = vld [vmem:[#allocation8 + $0xa0] sm:$0xff]  }
 0x508   : > { %v6625_v29 = vsel %vm517_vm0, %v6620_v61, %v6624_v44  ;;  %v6628_v41 = vor.u32 %v6626_v17, %v6624_v44  ;;  %v12030_v10 = vcombine.low %v8919_v63, %v17092_v43  ;;  %v8941_v27 = vrot.slane %v17094_v37, 1  ;;  %v17117_v50 = vld [vmem:[#allocation2 + $0x4c] sm:$0xff]   ;;  %v17119_v42 = vld [vmem:[#allocation2 + $0x54] sm:$0xff]   ;;  %v17121_v25 = vld [vmem:[#allocation2 + $0x5c] sm:$0xff]  }
 0x509   : > { %v6640_v1 = vrot.slane %v6638_v22, 1  ;;  %v6636_v55 = vor.u32 %v6634_v24, %v6632_v15  ;;  %v17123_v7 = vld [vmem:[#allocation2 + $0x64] sm:$0xff]   ;;  %v17125_v57 = vld [vmem:[#allocation2 + $0x6c] sm:$0xff]   ;;  %v8945_v34 = vrot.slane %v17101_v19, 1  ;;  %v8947_v18 = vrot.slane %v17103_v48, 1  ;;  %v17132_v5 = vld [vmem:[#allocation2 + $0x74] sm:$0xff]  }
 0x50a   : > { %v6633_v4 = vsel %vm517_vm0, %v6628_v41, %v6632_v15  ;;  %v8940_v14 = vrot.slane %v12030_v10, 1  ;;  %v17134_v44 = vld [vmem:[#allocation2 + $0x7c] sm:$0xff]   ;;  %v8949_v35 = vrot.slane %v17108_v8, 1  ;;  %v17141_v22 = vld [vmem:[#allocation2 + $0x84] sm:$0xff]   ;;  %v8953_v41 = vrot.slane %v17113_v12, 1  ;;  %v17150_v24 = vld [vmem:[#allocation2 + $0x8c] sm:$0xff]  }
 0x50b   : > { %v6641_v40 = vsel %vm517_vm0, %v6636_v55, %v6640_v1  ;;  %v6644_v49 = vor.u32 %v6642_v33, %v6640_v1  ;;  %v17147_v15 = vsel %vm1329_vm1, %v8945_v34, %v8947_v18  ;;  %17880 = vst [vmem:[#allocation17_spill] sm:$0xff] %v17150_v24  ;;  %v17152_v1 = vld [vmem:[#allocation2 + $0x94] sm:$0xff]   ;;  %v17162_v33 = vld [vmem:[#allocation2 + $0x28] sm:$0xff]  }
 0x50c   : > { %v17137_v61 = vsel %vm1329_vm1, %v8940_v14, %v8941_v27  ;;  %17879 = vst [vmem:[#allocation16_spill] sm:$0xff] %v17147_v15  ;;  %17881 = vst [vmem:[#allocation18_spill] sm:$0xff] %v17152_v1  ;;  %v17155_v55 = vsel %vm1329_vm1, %v8947_v18, %v8949_v35  ;;  %v17177_v63 = vld [vmem:[#allocation2 + $0x30] sm:$0xff]   ;;  %v8967_v18 = vrot.slane %v17134_v44, 1  ;;  %v17245_v15 = vld [vmem:[#allocation2 + $0x38] sm:$0xff]  }
 0x50d   : > { %v17077_v60 = vld [vmem:[#allocation2 + $0xc0] ss:$0 sps:$4 sm:$0x11]   ;;  %17877 = vst [vmem:[#allocation14_spill] sm:$0xff] %v17137_v61  ;;  %17882 = vst [vmem:[#allocation19_spill] sm:$0xff] %v17155_v55  ;;  %v17180_v10 = vld [vmem:[#allocation2 + $0xb4] sm:$0xff]  }
 0x50e   : > { %13486 = vmatmul.mubr.bf16.gmra.mrb[36].mxu1 %v6617_v36  ;;  %v6646_v32 = vshll.u32 %v17077_v60, 16  ;;  %v8951_v36 = vrot.slane %v17110_v51, 1  ;;  %17888 = vst [vmem:[#allocation25_spill] sm:$0xff] %v17180_v10  ;;  %v8971_v55 = vrot.slane %v17150_v24, 1  ;;  %v17293_v24 = vld [vmem:[#allocation2 + $0xc8] sm:$0xff]  }
 0x50f   : > { %13489 = vmatprep.mubr.bf16.mxu1 %v6625_v29  ;;  %v15100_v29 = vld [vmem:[#allocation8 + $0xa8] sm:$0xff]  }
 0x510   : > { %v6648_v16 = vrot.slane %v6646_v32, 1  ;;  %v8955_v32 = vrot.slane %v17117_v50, 1 }
 0x512   : > { %v6649_v23 = vsel %vm517_vm0, %v6644_v49, %v6648_v16  ;;  %v17165_v49 = vld [vmem:[#allocation2 + $0x9c] sm:$0xff]   ;;  %v17167_v16 = vld [vmem:[#allocation2 + $0xa4] sm:$0xff]  }
 0x513   : > { %17884 = vst [vmem:[#allocation21_spill] sm:$0xff] %v17165_v49  ;;  %17885 = vst [vmem:[#allocation22_spill] sm:$0xff] %v17167_v16 }
 0x516   : > { %13490 = vmatmul.mubr.bf16.gmra.mrb[40].mxu1 %v6633_v4  ;;  %v17158_v4 = vsel %vm1329_vm1, %v8949_v35, %v8951_v36  ;;  %v15101_v35 = vld [vmem:[#allocation8 + $0xb0] sm:$0xff]  }
 0x517   : > { %13493 = vmatprep.mubr.bf16.mxu1 %v6641_v40  ;;  %17883 = vst [vmem:[#allocation20_spill] sm:$0xff] %v17158_v4  ;;  %v8957_v40 = vrot.slane %v17119_v42, 1 }
 0x519   : > { %v17188_v14 = vsel %vm1329_vm1, %v8955_v32, %v8957_v40 }
 0x51a   : > { %17891 = vst [vmem:[#allocation28_spill] sm:$0xff] %v17188_v14  ;;  %v17204_v14 = vld [vmem:[#allocation2 + $0xcc] ss:$0 sps:$4 sm:$0x11]  }
 0x51b   : > { %17896 = vst [vmem:[#allocation33_spill] sm:$0xff] %v17204_v14 }
 0x51e   : > { %13494 = vmatmul.mubr.bf16.gmra.mrb[44].mxu1 %v6649_v23  ;;  %v17169_v23 = vld [vmem:[#allocation2 + $0xac] sm:$0xff]  }
 0x51f   : > { %13513 = vmatprep.mubr.bf16.mxu1 %v16579_v3  ;;  %v17096_v3 = vld [vmem:[#allocation2 + $0x1c] sm:$0xff]   ;;  %17886 = vst [vmem:[#allocation23_spill] sm:$0xff] %v17169_v23 }
 0x520   : > { %v8943_v62 = vrot.slane %v17096_v3, 1 }
 0x522   : > { %v17128_v56 = vsel %vm1329_vm1, %v8941_v27, %v8943_v62  ;;  %v17144_v17 = vsel %vm1329_vm1, %v8943_v62, %v8945_v34  ;;  %v17182_v27 = vld [vmem:[#allocation2 + $0xbc] sm:$0xff]   ;;  %v17185_v62 = vsel %vm1329_vm1, %v8953_v41, %v8955_v32  ;;  %v8965_v34 = vrot.slane %v17132_v5, 1 }
 0x523   : > { %17876 = vst [vmem:[#allocation13_spill] sm:$0xff] %v17128_v56  ;;  %17878 = vst [vmem:[#allocation15_spill] sm:$0xff] %v17144_v17  ;;  %v8969_v32 = vrot.slane %v17141_v22, 1  ;;  %v15228_v17 = vld [vmem:[#allocation2 + $0x58] sm:$0xff]   ;;  %v15230_v56 = vld [vmem:[#allocation2 + $0x60] sm:$0xff]  }
 0x524   : > { %17889 = vst [vmem:[#allocation26_spill] sm:$0xff] %v17182_v27  ;;  %17890 = vst [vmem:[#allocation27_spill] sm:$0xff] %v17185_v62  ;;  %v17210_v4 = vsel %vm1329_vm1, %v8965_v34, %v8967_v18 }
 0x525   : > { %17898 = vst [vmem:[#allocation35_spill] sm:$0xff] %v17210_v4  ;;  %v8981_v4 = vrot.slane %v17180_v10, 1  ;;  %v15235_v10 = vld [vmem:[#allocation2 + $0x80] sm:$0xff]  }
 0x526   : > { %13514 = vmatmul.mubr.bf16.vlgmr.msra.gmra.mrb[0].mxu1 %v17086_v0 }
 0x527   : > { %13517 = vmatprep.mubr.bf16.mxu1 %v17089_v58  ;;  %13562 = vmatpush3.bf16.msra.mxu1 %v15278_v26  ;;  %v8959_v26 = vrot.slane %v17121_v25, 1 }
 0x528   : > { %13563 = vmatprep.subr.bf16.mxu1 %v15096_v11 }
 0x52b   : > { %13564 = vmatpush3.bf16.msra.mxu1 %v15096_v11  ;;  %v17172_v11 = vsel %vm1329_vm1, %v8951_v36, %v8953_v41  ;;  %v17192_v36 = vld [vmem:[#allocation2 + $0xc4] sm:$0xff]  }
 0x52c   : > { %13565 = vmatprep.subr.bf16.mxu1 %v15097_v13  ;;  %17887 = vst [vmem:[#allocation24_spill] sm:$0xff] %v17172_v11  ;;  %17892 = vst [vmem:[#allocation29_spill] sm:$0xff] %v17192_v36 }
 0x52e   : > { %13518 = vmatmul.mubr.bf16.gmra.mrb[4].mxu1 %v17098_v30 }
 0x52f   : > { %13521 = vmatprep.mubr.bf16.mxu1 %v17105_v2  ;;  %13566 = vmatpush3.bf16.msra.mxu1 %v15097_v13  ;;  %v8961_v13 = vrot.slane %v17123_v7, 1 }
 0x530   : > { %13567 = vmatprep.subr.bf16.mxu1 %v15098_v28 }
 0x531   : > { %v17198_v11 = vsel %vm1329_vm1, %v8959_v26, %v8961_v13 }
 0x532   : > { %17894 = vst [vmem:[#allocation31_spill] sm:$0xff] %v17198_v11  ;;  %v8979_v11 = vrot.slane %v17169_v23, 1 }
 0x533   : > { %13568 = vmatpush3.bf16.msra.mxu1 %v15098_v28  ;;  %v8963_v28 = vrot.slane %v17125_v57, 1 }
 0x534   : > { %13569 = vmatprep.subr.bf16.mxu1 %v15099_v9 }
 0x535   : > { %v17201_v41 = vsel %vm1329_vm1, %v8961_v13, %v8963_v28  ;;  %v17207_v62 = vsel %vm1329_vm1, %v8963_v28, %v8965_v34  ;;  %v8975_v13 = vrot.slane %v17165_v49, 1  ;;  %v17221_v28 = vsel %vm1329_vm1, %v8969_v32, %v8971_v55  ;;  %v15243_v49 = vld [vmem:[#allocation2 + $0xb0] sm:$0xff]  }
 0x536   : > { %13522 = vmatmul.mubr.bf16.gmra.mrb[8].mxu1 %v17162_v33  ;;  %17895 = vst [vmem:[#allocation32_spill] sm:$0xff] %v17201_v41  ;;  %17897 = vst [vmem:[#allocation34_spill] sm:$0xff] %v17207_v62  ;;  %v8977_v41 = vrot.slane %v17167_v16, 1  ;;  %v8983_v62 = vrot.slane %v17182_v27, 1 }
 0x537   : > { %13525 = vmatprep.mubr.bf16.mxu1 %v17177_v63  ;;  %13570 = vmatpush3.bf16.msra.mxu1 %v15099_v9  ;;  %v17195_v9 = vsel %vm1329_vm1, %v8957_v40, %v8959_v26  ;;  %v8973_v40 = vrot.slane %v17152_v1, 1  ;;  %v17215_v26 = vsel %vm1329_vm1, %v8967_v18, %v8969_v32  ;;  %17900 = vst [vmem:[#allocation37_spill] sm:$0xff] %v17221_v28  ;;  %v15102_v18 = vld [vmem:[#allocation8 + $0xb8] sm:$0xff]   ;;  %v8985_v32 = vrot.slane %v17192_v36, 1 }
 0x538   : > { %13571 = vmatprep.subr.bf16.mxu1 %v15100_v29  ;;  %17893 = vst [vmem:[#allocation30_spill] sm:$0xff] %v17195_v9  ;;  %17899 = vst [vmem:[#allocation36_spill] sm:$0xff] %v17215_v26  ;;  %v17232_v9 = vsel %vm1329_vm1, %v8975_v13, %v8977_v41  ;;  %v8987_v28 = vrot.slane %v17204_v14, 1  ;;  %v15232_v14 = vld [vmem:[#allocation2 + $0x70] sm:$0xff]   ;;  %v15246_v1 = vld [vmem:[#allocation2 + $0xc0] sm:$0xff]  }
 0x539   : > { %v17224_v34 = vsel %vm1329_vm1, %v8971_v55, %v8973_v40  ;;  %v17229_v26 = vsel %vm1329_vm1, %v8973_v40, %v8975_v13  ;;  %17903 = vst [vmem:[#allocation40_spill] sm:$0xff] %v17232_v9  ;;  %v17239_v55 = vsel %vm1329_vm1, %v8979_v11, %v8981_v4  ;;  %v17249_v40 = vsel %vm1329_vm1, %v8983_v62, %v8985_v32  ;;  %v17251_v13 = vld [vmem:[#allocation2 + $0x40] sm:$0xff]   ;;  %v15227_v9 = vld [vmem:[#allocation2 + $0x50] sm:$0xff]  }
 0x53a   : > { %17901 = vst [vmem:[#allocation38_spill] sm:$0xff] %v17224_v34  ;;  %17902 = vst [vmem:[#allocation39_spill] sm:$0xff] %v17229_v26  ;;  %v17242_v34 = vsel %vm1329_vm1, %v8981_v4, %v8983_v62  ;;  %v17257_v4 = vld [vmem:[#allocation8 + $0xc0] sm:$0xff]  }
 0x53b   : > { %13572 = vmatpush3.bf16.msra.mxu1 %v15100_v29  ;;  %v17235_v29 = vsel %vm1329_vm1, %v8977_v41, %v8979_v11  ;;  %17905 = vst [vmem:[#allocation42_spill] sm:$0xff] %v17239_v55  ;;  %17906 = vst [vmem:[#allocation43_spill] sm:$0xff] %v17242_v34  ;;  %v17255_v11 = vsel %vm1329_vm1, %v8985_v32, %v8987_v28  ;;  %v17260_v41 = vld [vmem:[#allocation2 + $0x48] sm:$0xff]   ;;  %v17263_v62 = vld [vmem:[#allocation2 + $0x50] sm:$0xff]  }
 0x53c   : > { %13573 = vmatprep.subr.bf16.mxu1 %v15101_v35  ;;  %17904 = vst [vmem:[#allocation41_spill] sm:$0xff] %v17235_v29  ;;  %17907 = vst [vmem:[#allocation44_spill] sm:$0xff] %v17249_v40  ;;  %v15219_v28 = vld [vmem:[#allocation2 + $0x20] sm:$0xff]   ;;  %v15222_v32 = vld [vmem:[#allocation2 + $0x30] sm:$0xff]  }
 0x53d   : > { %17908 = vst [vmem:[#allocation45_spill] sm:$0xff] %v17255_v11  ;;  %v15223_v11 = vld [vmem:[#allocation2 + $0x38] sm:$0xff]   ;;  %v15224_v34 = vld [vmem:[#allocation2 + $0x40] sm:$0xff]   ;;  %v15226_v55 = vld [vmem:[#allocation2 + $0x48] sm:$0xff]   ;;  %v10616_v26 = vrot.slane %v15219_v28, 1  ;;  %v10620_v36 = vrot.slane %v15222_v32, 1 }
 0x53e   : > { %13526 = vmatmul.mubr.bf16.gmra.mrb[12].mxu1 %v17245_v15  ;;  %v10594_v40 = vld [vmem:[#allocation2 + $0x18] sm:$0xe]  ;;  %v10622_v27 = vrot.slane %v15223_v11, 1  ;;  %v15238_v28 = vld [vmem:[#allocation2 + $0x90] sm:$0xff]   ;;  %v10628_v11 = vrot.slane %v15227_v9, 1  ;;  %v10636_v9 = vrot.slane %v15232_v14, 1 }
 0x53f   : > { %13529 = vmatprep.mubr.bf16.mxu1 %v17251_v13  ;;  %13574 = vmatpush3.bf16.msra.mxu1 %v15101_v35  ;;  %v9865_v35 = vld [vmem:[#allocation2 + $0x1c] sm:$0xf] }
 0x540   : > { %13575 = vmatprep.subr.bf16.mxu1 %v15102_v18  ;;  %v12104_v29 = vcombine.low %v10594_v40, %v9865_v35  ;;  %v10624_v40 = vrot.slane %v15224_v34, 1  ;;  %v10626_v35 = vrot.slane %v15226_v55, 1  ;;  %v15239_v32 = vld [vmem:[#allocation2 + $0x98] sm:$0xff]   ;;  %v10630_v34 = vrot.slane %v15228_v17, 1 }
 0x541   : > { %v10632_v55 = vrot.slane %v15230_v56, 1  ;;  %v10640_v17 = vrot.slane %v15235_v10, 1 }
 0x543   : > { %13576 = vmatpush3.bf16.msra.mxu1 %v15102_v18  ;;  %v15220_v18 = vld [vmem:[#allocation2 + $0x28] sm:$0xff]  }
 0x544   : > { %13625 = vmatprep.subr.bf16.mxu1 %v17257_v4  ;;  %v10618_v61 = vrot.slane %v15220_v18, 1  ;;  %v17281_v18 = vsel %vm1329_vm1, %v10620_v36, %v10622_v27 }
 0x545   : > { %17912 = vst [vmem:[#allocation49_spill] sm:$0xff] %v17281_v18 }
 0x546   : > { %13530 = vmatmul.mubr.bf16.gmra.mrb[16].mxu1 %v17260_v41  ;;  %v17274_v16 = vsel %vm1329_vm1, %v10616_v26, %v10618_v61 }
 0x547   : > { %13533 = vmatprep.mubr.bf16.mxu1 %v17263_v62  ;;  %17910 = vst [vmem:[#allocation47_spill] sm:$0xff] %v17274_v16  ;;  %v15242_v16 = vld [vmem:[#allocation2 + $0xa8] sm:$0xff]  }
 0x54e   : > { %13534 = vmatmul.mubr.bf16.gmra.mrb[20].mxu1 %v16935_v31  ;;  %v10615_v31 = vrot.slane %v12104_v29, 1  ;;  %v17278_v29 = vsel %vm1329_vm1, %v10618_v61, %v10620_v36  ;;  %v15244_v61 = vld [vmem:[#allocation2 + $0xb8] sm:$0xff]  }
 0x54f   : > { %13537 = vmatprep.mubr.bf16.mxu1 %v16951_v59  ;;  %v15231_v59 = vld [vmem:[#allocation2 + $0x68] sm:$0xff]   ;;  %17911 = vst [vmem:[#allocation48_spill] sm:$0xff] %v17278_v29  ;;  %v17291_v29 = vsel %vm1329_vm1, %v10626_v35, %v10628_v11 }
 0x550   : > { %v17271_v23 = vsel %vm1329_vm1, %v10615_v31, %v10616_v26  ;;  %v15240_v31 = vld [vmem:[#allocation2 + $0xa0] sm:$0xff]   ;;  %v17288_v26 = vsel %vm1329_vm1, %v10624_v40, %v10626_v35  ;;  %v10634_v36 = vrot.slane %v15231_v59, 1  ;;  %v10644_v59 = vrot.slane %v15238_v28, 1 }
 0x551   : > { %17909 = vst [vmem:[#allocation46_spill] sm:$0xff] %v17271_v23  ;;  %v17285_v23 = vsel %vm1329_vm1, %v10622_v27, %v10624_v40  ;;  %17913 = vst [vmem:[#allocation50_spill] sm:$0xff] %v17288_v26  ;;  %v17296_v27 = vsel %vm1329_vm1, %v10628_v11, %v10630_v34  ;;  %v17299_v40 = vsel %vm1329_vm1, %v10630_v34, %v10632_v55  ;;  %v10646_v34 = vrot.slane %v15239_v32, 1 }
 0x552   : > { %17914 = vst [vmem:[#allocation51_spill] sm:$0xff] %v17299_v40  ;;  %v17302_v26 = vsel %vm1329_vm1, %v10632_v55, %v10634_v36  ;;  %v17305_v35 = vsel %vm1329_vm1, %v10634_v36, %v10636_v9  ;;  %v10648_v40 = vrot.slane %v15240_v31, 1  ;;  %v10652_v55 = vrot.slane %v15243_v49, 1 }
 0x553   : > { %17915 = vst [vmem:[#allocation52_spill] sm:$0xff] %v17302_v26  ;;  %v10654_v26 = vrot.slane %v15244_v61, 1  ;;  %v17320_v36 = vsel %vm1329_vm1, %v10644_v59, %v10646_v34  ;;  %v10656_v28 = vrot.slane %v15246_v1, 1  ;;  %v7244_v61 = vld [vmem:[#allocation2] sm:$0xe] }
 0x555   : > { %v17334_v49 = vsel %vm1329_vm1, %v10652_v55, %v10654_v26 }
 0x556   : > { %13538 = vmatmul.mubr.bf16.gmra.mrb[24].mxu1 %v16967_v53  ;;  %v15234_v53 = vld [vmem:[#allocation2 + $0x78] sm:$0xff]  }
 0x557   : > { %13541 = vmatprep.mubr.bf16.mxu1 %v16981_v52  ;;  %v15236_v52 = vld [vmem:[#allocation2 + $0x88] sm:$0xff]   ;;  %v10638_v18 = vrot.slane %v15234_v53, 1 }
 0x558   : > { %v10642_v56 = vrot.slane %v15236_v52, 1  ;;  %v10650_v52 = vrot.slane %v15242_v16, 1  ;;  %v17338_v16 = vsel %vm1329_vm1, %v10654_v26, %v10656_v28  ;;  %v7266_v26 = vrot.slane %v17086_v0, 1  ;;  %v15106_v0 = vld [vmem:[#allocation8 + $0xd0] sm:$0xff]  }
 0x559   : > { %v17308_v14 = vsel %vm1329_vm1, %v10636_v9, %v10638_v18  ;;  %v17311_v53 = vsel %vm1329_vm1, %v10638_v18, %v10640_v17  ;;  %v17323_v9 = vsel %vm1329_vm1, %v10646_v34, %v10648_v40  ;;  %v10658_v18 = vrot.slane %v17293_v24, 1  ;;  %v17555_v24 = vld [vmem:[%s17836_s5] ss:$0 sm:$0xff] }
 0x55a   : > { %v17314_v11 = vsel %vm1329_vm1, %v10640_v17, %v10642_v56  ;;  %v17317_v10 = vsel %vm1329_vm1, %v10642_v56, %v10644_v59  ;;  %v17328_v32 = vsel %vm1329_vm1, %v10648_v40, %v10650_v52  ;;  %v17331_v31 = vsel %vm1329_vm1, %v10650_v52, %v10652_v55  ;;  %v15287_v40 = vld [vmem:[#allocation2 + $0x4] sm:$0xf]  ;;  %v15105_v55 = vld [vmem:[#allocation8 + $0xc8] sm:$0xff]  }
 0x55b   : > { %v17343_v1 = vsel %vm1329_vm1, %v10656_v28, %v10658_v18  ;;  %v11956_v17 = vcombine.low %v7244_v61, %v15287_v40  ;;  %v7268_v34 = vrot.slane %v17089_v58, 1  ;;  %v7270_v52 = vrot.slane %v17098_v30, 1  ;;  %v15107_v58 = vld [vmem:[#allocation8 + $0xd8] sm:$0xff]  }
 0x55c   : > { %v7272_v40 = vrot.slane %v17105_v2, 1  ;;  %v15109_v2 = vld [vmem:[#allocation8 + $0xe8] sm:$0xff]  }
 0x55d   : > { %v7265_v56 = vrot.slane %v11956_v17, 1  ;;  %v7269_v28 = vsel %vm1329_vm1, %v7266_v26, %v7268_v34  ;;  %v7271_v61 = vsel %vm1329_vm1, %v7268_v34, %v7270_v52  ;;  %v7274_v17 = vrot.slane %v17162_v33, 1 }
 0x55e   : > { %13542 = vmatmul.mubr.bf16.gmra.mrb[28].mxu1 %v17010_v20  ;;  %v7273_v30 = vsel %vm1329_vm1, %v7270_v52, %v7272_v40  ;;  %v15110_v52 = vld [vmem:[#allocation8 + $0xf0] sm:$0xff]  }
 0x55f   : > { %13545 = vmatprep.mubr.bf16.mxu1 %v17026_v6  ;;  %v7267_v59 = vsel %vm1329_vm1, %v7265_v56, %v7266_v26  ;;  %v7275_v56 = vsel %vm1329_vm1, %v7272_v40, %v7274_v17  ;;  %v15108_v26 = vld [vmem:[#allocation8 + $0xe0] sm:$0xff]   ;;  %v7284_v40 = vrot.slane %v17263_v62, 1 }
 0x560   : > { %v15291_v62 = vld [vmem:[#allocation2 + $0x70] sm:$0xff]  }
 0x566   : > { %13546 = vmatmul.mubr.bf16.gmra.mrb[32].mxu1 %v17030_v39 }
 0x567   : > { %13549 = vmatprep.mubr.bf16.mxu1 %v17034_v21 }
 0x56e   : > { %13550 = vmatmul.mubr.bf16.gmra.mrb[36].mxu1 %v17038_v46 }
 0x56f   : > { %13553 = vmatprep.mubr.bf16.mxu1 %v17051_v47 }
 0x576   : > { %13554 = vmatmul.mubr.bf16.gmra.mrb[40].mxu1 %v17056_v54 }
 0x577   : > { %13557 = vmatprep.mubr.bf16.mxu1 %v17067_v38 }
 0x57e   : > { %13558 = vmatmul.mubr.bf16.gmra.mrb[44].mxu1 %v17070_v45 }
 0x57f   : > { %13577 = vmatprep.mubr.bf16.mxu1 %v7267_v59  ;;  %v7278_v59 = vrot.slane %v17245_v15, 1 }
 0x586   : > { %13578 = vmatmul.mubr.bf16.vlgmr.msra.gmra.mrb[0].mxu1 %v7269_v28  ;;  %v7282_v28 = vrot.slane %v17260_v41, 1 }
 0x587   : > { %13581 = vmatprep.mubr.bf16.mxu1 %v7271_v61  ;;  %13626 = vmatpush3.bf16.msra.mxu1 %v17257_v4  ;;  %v7276_v4 = vrot.slane %v17177_v63, 1  ;;  %v15111_v63 = vld [vmem:[#allocation8 + $0xf8] sm:$0xff]  }
 0x588   : > { %13627 = vmatprep.subr.bf16.mxu1 %v15105_v55 }
 0x589   : > { %v7277_v33 = vsel %vm1329_vm1, %v7274_v17, %v7276_v4  ;;  %v7279_v34 = vsel %vm1329_vm1, %v7276_v4, %v7278_v59  ;;  %v15288_v17 = vld [vmem:[#allocation2 + $0x58] sm:$0xff]  }
 0x58b   : > { %13628 = vmatpush3.bf16.msra.mxu1 %v15105_v55  ;;  %v7280_v55 = vrot.slane %v17251_v13, 1  ;;  %v7285_v13 = vsel %vm1329_vm1, %v7282_v28, %v7284_v40 }
 0x58c   : > { %13629 = vmatprep.subr.bf16.mxu1 %v15106_v0 }
 0x58d   : > { %v7281_v15 = vsel %vm1329_vm1, %v7278_v59, %v7280_v55  ;;  %v7283_v61 = vsel %vm1329_vm1, %v7280_v55, %v7282_v28  ;;  %v7296_v28 = vrot.slane %v17026_v6, 1  ;;  %v7304_v6 = vrot.slane %v17051_v47, 1 }
 0x58e   : > { %13582 = vmatmul.mubr.bf16.gmra.mrb[4].mxu1 %v7273_v30  ;;  %v15289_v30 = vld [vmem:[#allocation2 + $0x60] sm:$0xff]   ;;  %v7312_v47 = vrot.slane %v17077_v60, 1  ;;  %v15130_v60 = vld [vmem:[#allocation8 + $0x120] sm:$0xff]  }
 0x58f   : > { %13585 = vmatprep.mubr.bf16.mxu1 %v7275_v56  ;;  %13630 = vmatpush3.bf16.msra.mxu1 %v15106_v0  ;;  %v15114_v0 = vld [vmem:[#allocation8 + $0x100] sm:$0xff]   ;;  %v7288_v56 = vrot.slane %v15289_v30, 1 }
 0x590   : > { %13631 = vmatprep.subr.bf16.mxu1 %v15107_v58 }
 0x593   : > { %13632 = vmatpush3.bf16.msra.mxu1 %v15107_v58  ;;  %v7286_v58 = vrot.slane %v15288_v17, 1 }
 0x594   : > { %13633 = vmatprep.subr.bf16.mxu1 %v15108_v26 }
 0x595   : > { %v7287_v41 = vsel %vm1329_vm1, %v7284_v40, %v7286_v58  ;;  %v7289_v59 = vsel %vm1329_vm1, %v7286_v58, %v7288_v56  ;;  %v7300_v40 = vrot.slane %v17034_v21, 1  ;;  %v7308_v21 = vrot.slane %v17067_v38, 1  ;;  %v15122_v38 = vld [vmem:[#allocation8 + $0x110] sm:$0xff]  }
 0x596   : > { %13586 = vmatmul.mubr.bf16.gmra.mrb[8].mxu1 %v7277_v33  ;;  %v7292_v33 = vrot.slane %v15291_v62, 1  ;;  %v15126_v62 = vld [vmem:[#allocation8 + $0x118] sm:$0xff]  }
 0x597   : > { %13589 = vmatprep.mubr.bf16.mxu1 %v7279_v34  ;;  %13634 = vmatpush3.bf16.msra.mxu1 %v15108_v26  ;;  %v15290_v26 = vld [vmem:[#allocation2 + $0x68] sm:$0xff]   ;;  %v7294_v34 = vrot.slane %v17010_v20, 1  ;;  %v7302_v20 = vrot.slane %v17038_v46, 1  ;;  %v7310_v46 = vrot.slane %v17070_v45, 1 }
 0x598   : > { %13635 = vmatprep.subr.bf16.mxu1 %v15109_v2  ;;  %v7290_v4 = vrot.slane %v15290_v26, 1  ;;  %v15112_v26 = vld [vmem:[#allocation2 + $0xc] sm:$0xff]   ;;  %v15116_v45 = vld [vmem:[#allocation2 + $0x24] sm:$0xff]  }
 0x599   : > { %v7295_v55 = vsel %vm1329_vm1, %v7292_v33, %v7294_v34  ;;  %v7303_v58 = vsel %vm1329_vm1, %v7300_v40, %v7302_v20 }
 0x59b   : > { %13636 = vmatpush3.bf16.msra.mxu1 %v15109_v2  ;;  %v7291_v2 = vsel %vm1329_vm1, %v7288_v56, %v7290_v4  ;;  %v7311_v56 = vsel %vm1329_vm1, %v7308_v21, %v7310_v46 }
 0x59c   : > { %13637 = vmatprep.subr.bf16.mxu1 %v15110_v52 }
 0x59e   : > { %13590 = vmatmul.mubr.bf16.gmra.mrb[12].mxu1 %v7281_v15  ;;  %v7297_v15 = vsel %vm1329_vm1, %v7294_v34, %v7296_v28  ;;  %v15119_v34 = vld [vmem:[#allocation2 + $0x34] sm:$0xff]  }
 0x59f   : > { %13593 = vmatprep.mubr.bf16.mxu1 %v7283_v61  ;;  %13638 = vmatpush3.bf16.msra.mxu1 %v15110_v52  ;;  %v7293_v52 = vsel %vm1329_vm1, %v7290_v4, %v7292_v33  ;;  %v15113_v4 = vld [vmem:[#allocation2 + $0x14] sm:$0xff]   ;;  %v15117_v33 = vld [vmem:[#allocation2 + $0x2c] sm:$0xff]  }
 0x5a0   : > { %13639 = vmatprep.subr.bf16.mxu1 %v15111_v63 }
 0x5a3   : > { %13640 = vmatpush3.bf16.msra.mxu1 %v15111_v63  ;;  %v7298_v63 = vrot.slane %v17030_v39, 1  ;;  %v7306_v39 = vrot.slane %v17056_v54, 1  ;;  %v7313_v54 = vsel %vm1329_vm1, %v7310_v46, %v7312_v47  ;;  %v15136_v46 = vld [vmem:[#allocation2 + $0x9c] sm:$0xff]   ;;  %v8189_v47 = vld [vmem:[#allocation2 + $0xc] sm:$0xf] }
 0x5a4   : > { %13689 = vmatprep.subr.bf16.mxu1 %v15114_v0 }
 0x5a5   : > { %v7299_v61 = vsel %vm1329_vm1, %v7296_v28, %v7298_v63  ;;  %v7301_v17 = vsel %vm1329_vm1, %v7298_v63, %v7300_v40  ;;  %v7309_v30 = vsel %vm1329_vm1, %v7306_v39, %v7308_v21  ;;  %v15121_v28 = vld [vmem:[#allocation2 + $0x44] sm:$0xff]   ;;  %v15124_v40 = vld [vmem:[#allocation2 + $0x54] sm:$0xff]  }
 0x5a6   : > { %13594 = vmatmul.mubr.bf16.gmra.mrb[16].mxu1 %v7285_v13  ;;  %v7305_v13 = vsel %vm1329_vm1, %v7302_v20, %v7304_v6  ;;  %v15142_v63 = vld [vmem:[#allocation8 + $0x138] sm:$0xff]   ;;  %v15125_v20 = vld [vmem:[#allocation2 + $0x5c] sm:$0xff]   ;;  %v15135_v21 = vld [vmem:[#allocation2 + $0x94] sm:$0xff]  }
 0x5a7   : > { %13597 = vmatprep.mubr.bf16.mxu1 %v7287_v41  ;;  %v7307_v41 = vsel %vm1329_vm1, %v7304_v6, %v7306_v39  ;;  %v15129_v6 = vld [vmem:[#allocation2 + $0x74] sm:$0xff]   ;;  %v15131_v39 = vld [vmem:[#allocation2 + $0x7c] sm:$0xff]  }
 0x5ae   : > { %13598 = vmatmul.mubr.bf16.gmra.mrb[20].mxu1 %v7289_v59  ;;  %v15118_v59 = vld [vmem:[#allocation8 + $0x108] sm:$0xff]  }
 0x5af   : > { %13601 = vmatprep.mubr.bf16.mxu1 %v7291_v2  ;;  %v15115_v2 = vld [vmem:[#allocation2 + $0x1c] sm:$0xff]  }
 0x5b6   : > { %13602 = vmatmul.mubr.bf16.gmra.mrb[24].mxu1 %v7293_v52  ;;  %v15134_v52 = vld [vmem:[#allocation8 + $0x128] sm:$0xff]  }
 0x5b7   : > { %13605 = vmatprep.mubr.bf16.mxu1 %v7295_v55  ;;  %v15120_v55 = vld [vmem:[#allocation2 + $0x3c] sm:$0xff]  }
 0x5be   : > { %13606 = vmatmul.mubr.bf16.gmra.mrb[28].mxu1 %v7297_v15  ;;  %v15123_v15 = vld [vmem:[#allocation2 + $0x4c] sm:$0xff]  }
 0x5bf   : > { %13609 = vmatprep.mubr.bf16.mxu1 %v7299_v61  ;;  %v15147_v61 = vld [vmem:[#allocation8 + $0x140] sm:$0xff]  }
 0x5c6   : > { %13610 = vmatmul.mubr.bf16.gmra.mrb[32].mxu1 %v7301_v17  ;;  %v15127_v17 = vld [vmem:[#allocation2 + $0x64] sm:$0xff]  }
 0x5c7   : > { %13613 = vmatprep.mubr.bf16.mxu1 %v7303_v58  ;;  %v15128_v58 = vld [vmem:[#allocation2 + $0x6c] sm:$0xff]  }
 0x5ce   : > { %13614 = vmatmul.mubr.bf16.gmra.mrb[36].mxu1 %v7305_v13  ;;  %v15132_v13 = vld [vmem:[#allocation2 + $0x84] sm:$0xff]  }
 0x5cf   : > { %13617 = vmatprep.mubr.bf16.mxu1 %v7307_v41  ;;  %v15133_v41 = vld [vmem:[#allocation2 + $0x8c] sm:$0xff]  }
 0x5d6   : > { %13618 = vmatmul.mubr.bf16.gmra.mrb[40].mxu1 %v7309_v30  ;;  %v15137_v30 = vld [vmem:[#allocation2 + $0xa4] sm:$0xff]  }
 0x5d7   : > { %13621 = vmatprep.mubr.bf16.mxu1 %v7311_v56  ;;  %v15139_v56 = vld [vmem:[#allocation2 + $0xac] sm:$0xff]  }
 0x5de   : > { %13622 = vmatmul.mubr.bf16.gmra.mrb[44].mxu1 %v7313_v54  ;;  %v11997_v54 = vcombine.low %v8189_v47, %v17092_v43  ;;  %v8398_v43 = vshrl.u32 %v17096_v3, 16  ;;  %v15159_v47 = vld [vmem:[#allocation8 + $0x158] sm:$0xff]  }
 0x5df   : > { %13641 = vmatprep.mubr.bf16.mxu1 %v15112_v26 }
 0x5e0   : > { %v8381_v26 = vshll.u32 %v11997_v54, 16 }
 0x5e6   : > { %13642 = vmatmul.mubr.bf16.vlgmr.msra.gmra.mrb[0].mxu1 %v15113_v4  ;;  %v15140_v4 = vld [vmem:[#allocation2 + $0xb4] sm:$0xff]  }
 0x5e7   : > { %13645 = vmatprep.mubr.bf16.mxu1 %v15115_v2  ;;  %13690 = vmatpush3.bf16.msra.mxu1 %v15114_v0  ;;  %v15138_v0 = vld [vmem:[#allocation8 + $0x130] sm:$0xff]   ;;  %v8383_v2 = vrot.slane %v8381_v26, 1  ;;  %v8430_v26 = vshrl.u32 %v17110_v51, 16 }
 0x5e8   : > { %13691 = vmatprep.subr.bf16.mxu1 %v15118_v59 }
 0x5eb   : > { %13692 = vmatpush3.bf16.msra.mxu1 %v15118_v59  ;;  %v15141_v59 = vld [vmem:[#allocation2 + $0xbc] sm:$0xff]  }
 0x5ec   : > { %13693 = vmatprep.subr.bf16.mxu1 %v15122_v38 }
 0x5ee   : > { %13646 = vmatmul.mubr.bf16.gmra.mrb[4].mxu1 %v15116_v45  ;;  %v8386_v45 = vshll.u32 %v17094_v37, 16 }
 0x5ef   : > { %13649 = vmatprep.mubr.bf16.mxu1 %v15117_v33  ;;  %13694 = vmatpush3.bf16.msra.mxu1 %v15122_v38  ;;  %v8379_v38 = vshrl.u32 %v11997_v54, 16  ;;  %v8394_v33 = vshll.u32 %v17096_v3, 16  ;;  %v8414_v3 = vshrl.u32 %v17103_v48, 16 }
 0x5f0   : > { %13695 = vmatprep.subr.bf16.mxu1 %v15126_v62 }
 0x5f3   : > { %13696 = vmatpush3.bf16.msra.mxu1 %v15126_v62  ;;  %v8384_v62 = vor.u32 %v8383_v2, %v8379_v38  ;;  %v8442_v38 = vshll.u32 %v17117_v50, 16 }
 0x5f4   : > { %13697 = vmatprep.subr.bf16.mxu1 %v15130_v60 }
 0x5f6   : > { %13650 = vmatmul.mubr.bf16.gmra.mrb[8].mxu1 %v15119_v34  ;;  %v8388_v34 = vrot.slane %v8386_v45, 1 }
 0x5f7   : > { %13653 = vmatprep.mubr.bf16.mxu1 %v15120_v55  ;;  %13698 = vmatpush3.bf16.msra.mxu1 %v15130_v60  ;;  %v15143_v60 = vld [vmem:[#allocation2 + $0xc4] sm:$0xff]   ;;  %v8396_v55 = vrot.slane %v8394_v33, 1  ;;  %v15167_v33 = vld [vmem:[#allocation8 + $0x168] sm:$0xff]  }
 0x5f8   : > { %13699 = vmatprep.subr.bf16.mxu1 %v15134_v52 }
 0x5fb   : > { %13700 = vmatpush3.bf16.msra.mxu1 %v15134_v52  ;;  %v8389_v52 = vsel %vm517_vm0, %v8384_v62, %v8388_v34 }
 0x5fc   : > { %13701 = vmatprep.subr.bf16.mxu1 %v15138_v0 }
 0x5fe   : > { %13654 = vmatmul.mubr.bf16.gmra.mrb[12].mxu1 %v15121_v28  ;;  %v8390_v28 = vshrl.u32 %v17094_v37, 16  ;;  %v15155_v37 = vld [vmem:[#allocation8 + $0x150] sm:$0xff]  }
 0x5ff   : > { %13657 = vmatprep.mubr.bf16.mxu1 %v15123_v15  ;;  %13702 = vmatpush3.bf16.msra.mxu1 %v15138_v0  ;;  %v8402_v0 = vshll.u32 %v17101_v19, 16  ;;  %v8410_v15 = vshll.u32 %v17103_v48, 16 }
 0x600   : > { %13703 = vmatprep.subr.bf16.mxu1 %v15142_v63 }
 0x603   : > { %13704 = vmatpush3.bf16.msra.mxu1 %v15142_v63  ;;  %v8400_v63 = vor.u32 %v8398_v43, %v8396_v55  ;;  %v8438_v43 = vshrl.u32 %v17113_v12, 16 }
 0x604   : > { %13753 = vmatprep.subr.bf16.mxu1 %v15147_v61 }
 0x606   : > { %13658 = vmatmul.mubr.bf16.gmra.mrb[16].mxu1 %v15124_v40  ;;  %v8392_v40 = vor.u32 %v8390_v28, %v8388_v34  ;;  %v8458_v28 = vshll.u32 %v17121_v25, 16 }
 0x607   : > { %13661 = vmatprep.mubr.bf16.mxu1 %v15125_v20  ;;  %v8404_v20 = vrot.slane %v8402_v0, 1 }
 0x60e   : > { %13662 = vmatmul.mubr.bf16.gmra.mrb[20].mxu1 %v15127_v17  ;;  %v15151_v17 = vld [vmem:[#allocation8 + $0x148] sm:$0xff]  }
 0x60f   : > { %13665 = vmatprep.mubr.bf16.mxu1 %v15128_v58  ;;  %v8397_v58 = vsel %vm517_vm0, %v8392_v40, %v8396_v55  ;;  %v15171_v55 = vld [vmem:[#allocation8 + $0x170] sm:$0xff]   ;;  %v15175_v40 = vld [vmem:[#allocation8 + $0x178] sm:$0xff]  }
 0x616   : > { %13666 = vmatmul.mubr.bf16.gmra.mrb[24].mxu1 %v15129_v6  ;;  %v8405_v6 = vsel %vm517_vm0, %v8400_v63, %v8404_v20 }
 0x617   : > { %13669 = vmatprep.mubr.bf16.mxu1 %v15131_v39  ;;  %v8412_v39 = vrot.slane %v8410_v15, 1 }
 0x61e   : > { %13670 = vmatmul.mubr.bf16.gmra.mrb[28].mxu1 %v15132_v13  ;;  %v8418_v13 = vshll.u32 %v17108_v8, 16 }
 0x61f   : > { %13673 = vmatprep.mubr.bf16.mxu1 %v15133_v41  ;;  %v8406_v41 = vshrl.u32 %v17101_v19, 16  ;;  %v8434_v19 = vshll.u32 %v17113_v12, 16  ;;  %v8466_v12 = vshll.u32 %v17123_v7, 16 }
 0x621   : > { %v8436_v62 = vrot.slane %v8434_v19, 1 }
 0x623   : > { %v8440_v63 = vor.u32 %v8438_v43, %v8436_v62 }
 0x626   : > { %13674 = vmatmul.mubr.bf16.gmra.mrb[32].mxu1 %v15135_v21  ;;  %v8416_v21 = vor.u32 %v8414_v3, %v8412_v39 }
 0x627   : > { %13677 = vmatprep.mubr.bf16.mxu1 %v15136_v46  ;;  %v8426_v46 = vshll.u32 %v17110_v51, 16  ;;  %v8444_v51 = vrot.slane %v8442_v38, 1 }
 0x629   : > { %v8428_v48 = vrot.slane %v8426_v46, 1 }
 0x62b   : > { %v8432_v2 = vor.u32 %v8430_v26, %v8428_v48 }
 0x62d   : > { %v8437_v34 = vsel %vm517_vm0, %v8432_v2, %v8436_v62  ;;  %v8486_v2 = vshrl.u32 %v17132_v5, 16 }
 0x62e   : > { %13678 = vmatmul.mubr.bf16.gmra.mrb[36].mxu1 %v15137_v30  ;;  %v8408_v30 = vor.u32 %v8406_v41, %v8404_v20  ;;  %v8445_v20 = vsel %vm517_vm0, %v8440_v63, %v8444_v51  ;;  %v8468_v41 = vrot.slane %v8466_v12, 1 }
 0x62f   : > { %13681 = vmatprep.mubr.bf16.mxu1 %v15139_v56  ;;  %v8420_v56 = vrot.slane %v8418_v13, 1  ;;  %v8474_v13 = vshll.u32 %v17125_v57, 16 }
 0x630   : > { %v8413_v54 = vsel %vm517_vm0, %v8408_v30, %v8412_v39  ;;  %v8454_v39 = vshrl.u32 %v17119_v42, 16  ;;  %v8478_v30 = vshrl.u32 %v17125_v57, 16  ;;  %v8498_v57 = vshll.u32 %v17141_v22, 16 }
 0x631   : > { %v8476_v46 = vrot.slane %v8474_v13, 1 }
 0x636   : > { %13682 = vmatmul.mubr.bf16.gmra.mrb[40].mxu1 %v15140_v4  ;;  %v15163_v4 = vld [vmem:[#allocation8 + $0x160] sm:$0xff]  }
 0x637   : > { %13685 = vmatprep.mubr.bf16.mxu1 %v15141_v59  ;;  %v8422_v59 = vshrl.u32 %v17108_v8, 16  ;;  %v8450_v8 = vshll.u32 %v17119_v42, 16  ;;  %v8470_v42 = vshrl.u32 %v17123_v7, 16  ;;  %v17916_v7 = vld [vmem:[#allocation17_spill] sm:$0xff] }
 0x639   : > { %v8424_v45 = vor.u32 %v8422_v59, %v8420_v56  ;;  %v8452_v15 = vrot.slane %v8450_v8, 1  ;;  %v8494_v59 = vshrl.u32 %v17134_v44, 16  ;;  %v17917_v8 = vld [vmem:[#allocation18_spill] sm:$0xff] }
 0x63a   : > { %v8518_v12 = vshrl.u32 %v17917_v8, 16 }
 0x63e   : > { %13686 = vmatmul.mubr.bf16.gmra.mrb[44].mxu1 %v15143_v60  ;;  %v8429_v60 = vsel %vm517_vm0, %v8424_v45, %v8428_v48  ;;  %v8506_v45 = vshll.u32 %v17916_v7, 16 }
 0x63f   : > { %13705 = vmatprep.mubr.bf16.mxu1 %v8389_v52  ;;  %v8446_v52 = vshrl.u32 %v17117_v50, 16  ;;  %v8460_v50 = vrot.slane %v8458_v28, 1 }
 0x641   : > { %v8448_v0 = vor.u32 %v8446_v52, %v8444_v51  ;;  %v8508_v51 = vrot.slane %v8506_v45, 1  ;;  %v8510_v52 = vshrl.u32 %v17916_v7, 16 }
 0x643   : > { %v8512_v43 = vor.u32 %v8510_v52, %v8508_v51  ;;  %v17924_v52 = vld [vmem:[#allocation33_spill] sm:$0xff] }
 0x646   : > { %13706 = vmatmul.mubr.bf16.vlgmr.msra.gmra.mrb[0].mxu1 %v8397_v58  ;;  %v8462_v58 = vshrl.u32 %v17121_v25, 16 }
 0x647   : > { %13709 = vmatprep.mubr.bf16.mxu1 %v8405_v6  ;;  %13754 = vmatpush3.bf16.msra.mxu1 %v15147_v61  ;;  %v8421_v61 = vsel %vm517_vm0, %v8416_v21, %v8420_v56  ;;  %v17425_v6 = vld [vmem:[#allocation8 + $0x180] sm:$0xff]   ;;  %v8482_v56 = vshll.u32 %v17132_v5, 16 }
 0x648   : > { %13755 = vmatprep.subr.bf16.mxu1 %v15151_v17  ;;  %v8464_v3 = vor.u32 %v8462_v58, %v8460_v50  ;;  %v17918_v5 = vld [vmem:[#allocation21_spill] sm:$0xff] }
 0x649   : > { %v8484_v48 = vrot.slane %v8482_v56, 1 }
 0x64a   : > { %v8469_v25 = vsel %vm517_vm0, %v8464_v3, %v8468_v41 }
 0x64b   : > { %13756 = vmatpush3.bf16.msra.mxu1 %v15151_v17  ;;  %v8453_v17 = vsel %vm517_vm0, %v8448_v0, %v8452_v15  ;;  %v8488_v62 = vor.u32 %v8486_v2, %v8484_v48  ;;  %v8522_v0 = vshll.u32 %v17918_v5, 16  ;;  %v17923_v2 = vld [vmem:[#allocation29_spill] sm:$0xff] }
 0x64c   : > { %13757 = vmatprep.subr.bf16.mxu1 %v15155_v37 }
 0x64e   : > { %13710 = vmatmul.mubr.bf16.gmra.mrb[4].mxu1 %v8413_v54  ;;  %v8490_v54 = vshll.u32 %v17134_v44, 16  ;;  %v8514_v44 = vshll.u32 %v17917_v8, 16  ;;  %v8570_v8 = vshll.u32 %v17924_v52, 16  ;;  %v15208_v52 = vld [vmem:[#allocation8 + $0x1e8] sm:$0xff]  }
 0x64f   : > { %13713 = vmatprep.mubr.bf16.mxu1 %v8421_v61  ;;  %13758 = vmatpush3.bf16.msra.mxu1 %v15155_v37  ;;  %v8456_v37 = vor.u32 %v8454_v39, %v8452_v15  ;;  %v8472_v61 = vor.u32 %v8470_v42, %v8468_v41 }
 0x650   : > { %13759 = vmatprep.subr.bf16.mxu1 %v15159_v47  ;;  %v8516_v63 = vrot.slane %v8514_v44, 1 }
 0x651   : > { %v8461_v21 = vsel %vm517_vm0, %v8456_v37, %v8460_v50  ;;  %v8477_v26 = vsel %vm517_vm0, %v8472_v61, %v8476_v46  ;;  %v17919_v50 = vld [vmem:[#allocation22_spill] sm:$0xff] }
 0x652   : > { %v8530_v58 = vshll.u32 %v17919_v50, 16  ;;  %v8520_v13 = vor.u32 %v8518_v12, %v8516_v63  ;;  %v8534_v42 = vshrl.u32 %v17919_v50, 16  ;;  %v15182_v50 = vld [vmem:[#allocation8 + $0x1a0] sm:$0xff]   ;;  %v17930_v12 = vld [vmem:[#allocation20_spill] sm:$0xff] }
 0x653   : > { %13760 = vmatpush3.bf16.msra.mxu1 %v15159_v47  ;;  %v8480_v47 = vor.u32 %v8478_v30, %v8476_v46  ;;  %v17921_v30 = vld [vmem:[#allocation25_spill] sm:$0xff] }
 0x654   : > { %13761 = vmatprep.subr.bf16.mxu1 %v15163_v4  ;;  %v8532_v37 = vrot.slane %v8530_v58, 1  ;;  %v8546_v56 = vshll.u32 %v17921_v30, 16  ;;  %v8550_v7 = vshrl.u32 %v17921_v30, 16  ;;  %v15183_v58 = vld [vmem:[#allocation8 + $0x1a8] sm:$0xff]   ;;  %v17938_v30 = vld [vmem:[#allocation35_spill] sm:$0xff] }
 0x655   : > { %v8485_v19 = vsel %vm517_vm0, %v8480_v47, %v8484_v48 }
 0x656   : > { %13714 = vmatmul.mubr.bf16.gmra.mrb[8].mxu1 %v8429_v60  ;;  %v8536_v48 = vor.u32 %v8534_v42, %v8532_v37  ;;  %v17940_v42 = vld [vmem:[#allocation37_spill] sm:$0xff] }
 0x657   : > { %13717 = vmatprep.mubr.bf16.mxu1 %v8437_v34  ;;  %13762 = vmatpush3.bf16.msra.mxu1 %v15163_v4  ;;  %v8492_v4 = vrot.slane %v8490_v54, 1  ;;  %v17922_v54 = vld [vmem:[#allocation26_spill] sm:$0xff] }
 0x658   : > { %13763 = vmatprep.subr.bf16.mxu1 %v15167_v33  ;;  %v8554_v61 = vshll.u32 %v17922_v54, 16 }
 0x659   : > { %v8496_v38 = vor.u32 %v8494_v59, %v8492_v4  ;;  %v8493_v60 = vsel %vm517_vm0, %v8488_v62, %v8492_v4 }
 0x65a   : > { %v8556_v59 = vrot.slane %v8554_v61, 1  ;;  %v17943_v61 = vld [vmem:[#allocation40_spill] sm:$0xff] }
 0x65b   : > { %13764 = vmatpush3.bf16.msra.mxu1 %v15167_v33  ;;  %v8500_v33 = vrot.slane %v8498_v57, 1  ;;  %v8558_v57 = vshrl.u32 %v17922_v54, 16  ;;  %v17942_v54 = vld [vmem:[#allocation39_spill] sm:$0xff] }
 0x65c   : > { %13765 = vmatprep.subr.bf16.mxu1 %v15171_v55 }
 0x65d   : > { %v8501_v34 = vsel %vm517_vm0, %v8496_v38, %v8500_v33  ;;  %v8562_v38 = vshll.u32 %v17923_v2, 16  ;;  %v8560_v45 = vor.u32 %v8558_v57, %v8556_v59  ;;  %v17948_v57 = vld [vmem:[#allocation45_spill] sm:$0xff] }
 0x65e   : > { %13718 = vmatmul.mubr.bf16.gmra.mrb[12].mxu1 %v8445_v20  ;;  %v8524_v20 = vrot.slane %v8522_v0, 1  ;;  %v15179_v0 = vld [vmem:[#allocation8 + $0x188] sm:$0xff]  }
 0x65f   : > { %13721 = vmatprep.mubr.bf16.mxu1 %v8453_v17  ;;  %13766 = vmatpush3.bf16.msra.mxu1 %v15171_v55  ;;  %v8502_v55 = vshrl.u32 %v17141_v22, 16  ;;  %v8526_v17 = vshrl.u32 %v17918_v5, 16  ;;  %v17920_v22 = vld [vmem:[#allocation23_spill] sm:$0xff]  ;;  %v17925_v5 = vld [vmem:[#allocation14_spill] sm:$0xff] }
 0x660   : > { %13767 = vmatprep.subr.bf16.mxu1 %v15175_v40  ;;  %v8538_v3 = vshll.u32 %v17920_v22, 16  ;;  %v8525_v41 = vsel %vm517_vm0, %v8520_v13, %v8524_v20  ;;  %v8542_v46 = vshrl.u32 %v17920_v22, 16  ;;  %v15185_v22 = vld [vmem:[#allocation8 + $0x1b8] sm:$0xff]  }
 0x661   : > { %v8504_v28 = vor.u32 %v8502_v55, %v8500_v33  ;;  %v8528_v39 = vor.u32 %v8526_v17, %v8524_v20  ;;  %v8564_v33 = vrot.slane %v8562_v38, 1  ;;  %v8572_v55 = vrot.slane %v8570_v8, 1  ;;  %v17928_v20 = vld [vmem:[#allocation16_spill] sm:$0xff]  ;;  %v17929_v17 = vld [vmem:[#allocation19_spill] sm:$0xff]  ;;  %v15192_v38 = vld [vmem:[#allocation8 + $0x1c8] sm:$0xff]  }
 0x662   : > { %v17933_v13 = vld [vmem:[#allocation28_spill] sm:$0xff] }
 0x663   : > { %13768 = vmatpush3.bf16.msra.mxu1 %v15175_v40  ;;  %v8509_v15 = vsel %vm517_vm0, %v8504_v28, %v8508_v51  ;;  %v8517_v40 = vsel %vm517_vm0, %v8512_v43, %v8516_v63  ;;  %v8566_v51 = vshrl.u32 %v17923_v2, 16  ;;  %v17926_v28 = vld [vmem:[#allocation13_spill] sm:$0xff]  ;;  %v17927_v63 = vld [vmem:[#allocation15_spill] sm:$0xff] }
 0x664   : > { %13817 = vmatprep.subr.bf16.mxu1 %v17425_v6  ;;  %v15187_v2 = vld [vmem:[#allocation2 + $0x20] sm:$0xff]   ;;  %v15194_v8 = vld [vmem:[#allocation2 + $0x48] sm:$0xff]  }
 0x665   : > { %v8568_v44 = vor.u32 %v8566_v51, %v8564_v33  ;;  %v15193_v51 = vld [vmem:[#allocation2 + $0x40] sm:$0xff]  }
 0x666   : > { %13722 = vmatmul.mubr.bf16.gmra.mrb[16].mxu1 %v8461_v21  ;;  %v8533_v21 = vsel %vm517_vm0, %v8528_v39, %v8532_v37  ;;  %v17931_v39 = vld [vmem:[#allocation24_spill] sm:$0xff]  ;;  %v15188_v37 = vld [vmem:[#allocation8 + $0x1c0] sm:$0xff]  }
 0x667   : > { %13725 = vmatprep.mubr.bf16.mxu1 %v8469_v25  ;;  %v8540_v25 = vrot.slane %v8538_v3, 1  ;;  %v8573_v43 = vsel %vm517_vm0, %v8568_v44, %v8572_v55  ;;  %v17932_v3 = vld [vmem:[#allocation27_spill] sm:$0xff]  ;;  %v15195_v55 = vld [vmem:[#allocation2 + $0x50] sm:$0xff]  }
 0x668   : > { %v15212_v44 = vld [vmem:[#allocation8 + $0x1f0] sm:$0xff]  }
 0x669   : > { %v8544_v47 = vor.u32 %v8542_v46, %v8540_v25  ;;  %v17937_v46 = vld [vmem:[#allocation34_spill] sm:$0xff] }
 0x66e   : > { %13726 = vmatmul.mubr.bf16.gmra.mrb[20].mxu1 %v8477_v26  ;;  %v8548_v26 = vrot.slane %v8546_v56, 1  ;;  %v17939_v56 = vld [vmem:[#allocation36_spill] sm:$0xff] }
 0x66f   : > { %13729 = vmatprep.mubr.bf16.mxu1 %v8485_v19  ;;  %v8541_v19 = vsel %vm517_vm0, %v8536_v48, %v8540_v25  ;;  %v17936_v25 = vld [vmem:[#allocation32_spill] sm:$0xff]  ;;  %v17944_v48 = vld [vmem:[#allocation41_spill] sm:$0xff] }
 0x670   : > { %v8549_v4 = vsel %vm517_vm0, %v8544_v47, %v8548_v26  ;;  %v8552_v62 = vor.u32 %v8550_v7, %v8548_v26  ;;  %v17941_v47 = vld [vmem:[#allocation38_spill] sm:$0xff]  ;;  %v15189_v7 = vld [vmem:[#allocation2 + $0x28] sm:$0xff]  }
 0x671   : > { %v17945_v26 = vld [vmem:[#allocation42_spill] sm:$0xff] }
 0x676   : > { %13730 = vmatmul.mubr.bf16.gmra.mrb[24].mxu1 %v8493_v60  ;;  %v8557_v60 = vsel %vm517_vm0, %v8552_v62, %v8556_v59  ;;  %v15186_v59 = vld [vmem:[#allocation2 + $0x18] sm:$0xff]   ;;  %v15190_v62 = vld [vmem:[#allocation2 + $0x30] sm:$0xff]  }
 0x677   : > { %13733 = vmatprep.mubr.bf16.mxu1 %v8501_v34  ;;  %v8565_v34 = vsel %vm517_vm0, %v8560_v45, %v8564_v33  ;;  %v15196_v45 = vld [vmem:[#allocation8 + $0x1d0] sm:$0xff]   ;;  %v15200_v33 = vld [vmem:[#allocation8 + $0x1d8] sm:$0xff]  }
 0x67e   : > { %13734 = vmatmul.mubr.bf16.gmra.mrb[28].mxu1 %v8509_v15  ;;  %v15180_v15 = vld [vmem:[#allocation8 + $0x190] sm:$0xff]  }
 0x67f   : > { %13737 = vmatprep.mubr.bf16.mxu1 %v8517_v40  ;;  %v15181_v40 = vld [vmem:[#allocation8 + $0x198] sm:$0xff]  }
 0x686   : > { %13738 = vmatmul.mubr.bf16.gmra.mrb[32].mxu1 %v8525_v41  ;;  %v17934_v41 = vld [vmem:[#allocation30_spill] sm:$0xff] }
 0x687   : > { %13741 = vmatprep.mubr.bf16.mxu1 %v8533_v21  ;;  %v17935_v21 = vld [vmem:[#allocation31_spill] sm:$0xff] }
 0x68e   : > { %13742 = vmatmul.mubr.bf16.gmra.mrb[36].mxu1 %v8541_v19  ;;  %v17946_v19 = vld [vmem:[#allocation43_spill] sm:$0xff] }
 0x68f   : > { %13745 = vmatprep.mubr.bf16.mxu1 %v8549_v4  ;;  %v17947_v4 = vld [vmem:[#allocation44_spill] sm:$0xff] }
 0x696   : > { %13746 = vmatmul.mubr.bf16.gmra.mrb[40].mxu1 %v8557_v60  ;;  %v15191_v60 = vld [vmem:[#allocation2 + $0x38] sm:$0xff]  }
 0x697   : > { %13749 = vmatprep.mubr.bf16.mxu1 %v8565_v34  ;;  %v15204_v34 = vld [vmem:[#allocation8 + $0x1e0] sm:$0xff]  }
 0x69e   : > { %13750 = vmatmul.mubr.bf16.gmra.mrb[44].mxu1 %v8573_v43  ;;  %v15216_v43 = vld [vmem:[#allocation8 + $0x1f8] sm:$0xff]  }
 0x69f   : > { %13769 = vmatprep.mubr.bf16.mxu1 %v17925_v5  ;;  %v15197_v5 = vld [vmem:[#allocation2 + $0x58] sm:$0xff]  }
 0x6a6   : > { %13770 = vmatmul.mubr.bf16.vlgmr.msra.gmra.mrb[0].mxu1 %v17926_v28  ;;  %v15198_v28 = vld [vmem:[#allocation2 + $0x60] sm:$0xff]  }
 0x6a7   : > { %13773 = vmatprep.mubr.bf16.mxu1 %v17927_v63  ;;  %13818 = vmatpush3.bf16.msra.mxu1 %v17425_v6  ;;  %v15184_v6 = vld [vmem:[#allocation8 + $0x1b0] sm:$0xff]   ;;  %v15199_v63 = vld [vmem:[#allocation2 + $0x68] sm:$0xff]  }
 0x6a8   : > { %13819 = vmatprep.subr.bf16.mxu1 %v15179_v0 }
 0x6ab   : > { %13820 = vmatpush3.bf16.msra.mxu1 %v15179_v0  ;;  %v17495_v0 = vld [vmem:[#allocation8 + $0x200] sm:$0xff]  }
 0x6ac   : > { %13821 = vmatprep.subr.bf16.mxu1 %v15180_v15 }
 0x6ae   : > { %13774 = vmatmul.mubr.bf16.gmra.mrb[4].mxu1 %v17928_v20  ;;  %v15203_v20 = vld [vmem:[#allocation2 + $0x80] sm:$0xff]  }
 0x6af   : > { %13777 = vmatprep.mubr.bf16.mxu1 %v17929_v17  ;;  %13822 = vmatpush3.bf16.msra.mxu1 %v15180_v15  ;;  %v15201_v15 = vld [vmem:[#allocation2 + $0x70] sm:$0xff]   ;;  %v15205_v17 = vld [vmem:[#allocation2 + $0x88] sm:$0xff]  }
 0x6b0   : > { %13823 = vmatprep.subr.bf16.mxu1 %v15181_v40 }
 0x6b3   : > { %13824 = vmatpush3.bf16.msra.mxu1 %v15181_v40  ;;  %v15202_v40 = vld [vmem:[#allocation2 + $0x78] sm:$0xff]  }
 0x6b4   : > { %13825 = vmatprep.subr.bf16.mxu1 %v15182_v50 }
 0x6b6   : > { %13778 = vmatmul.mubr.bf16.gmra.mrb[8].mxu1 %v17930_v12  ;;  %v15209_v12 = vld [vmem:[#allocation2 + $0xa0] sm:$0xff]  }
 0x6b7   : > { %13781 = vmatprep.mubr.bf16.mxu1 %v17931_v39  ;;  %13826 = vmatpush3.bf16.msra.mxu1 %v15182_v50  ;;  %v15206_v50 = vld [vmem:[#allocation2 + $0x90] sm:$0xff]   ;;  %v15210_v39 = vld [vmem:[#allocation2 + $0xa8] sm:$0xff]  }
 0x6b8   : > { %13827 = vmatprep.subr.bf16.mxu1 %v15183_v58 }
 0x6bb   : > { %13828 = vmatpush3.bf16.msra.mxu1 %v15183_v58  ;;  %v15207_v58 = vld [vmem:[#allocation2 + $0x98] sm:$0xff]  }
 0x6bc   : > { %13829 = vmatprep.subr.bf16.mxu1 %v15184_v6 }
 0x6be   : > { %13782 = vmatmul.mubr.bf16.gmra.mrb[12].mxu1 %v17932_v3  ;;  %v9864_v3 = vld [vmem:[#allocation2 + $0x18] sm:$0xf] }
 0x6bf   : > { %13785 = vmatprep.mubr.bf16.mxu1 %v17933_v13  ;;  %13830 = vmatpush3.bf16.msra.mxu1 %v15184_v6  ;;  %v15211_v6 = vld [vmem:[#allocation2 + $0xb0] sm:$0xff]   ;;  %v15292_v13 = vld [vmem:[#allocation2 + $0x1c] sm:$0xf] }
 0x6c0   : > { %13831 = vmatprep.subr.bf16.mxu1 %v15185_v22 }
 0x6c3   : > { %13832 = vmatpush3.bf16.msra.mxu1 %v15185_v22  ;;  %v15213_v22 = vld [vmem:[#allocation2 + $0xb8] sm:$0xff]  }
 0x6c4   : > { %13881 = vmatprep.subr.bf16.mxu1 %v15188_v37 }
 0x6c6   : > { %13786 = vmatmul.mubr.bf16.gmra.mrb[16].mxu1 %v17934_v41 }
 0x6c7   : > { %13789 = vmatprep.mubr.bf16.mxu1 %v17935_v21  ;;  %v15214_v21 = vld [vmem:[#allocation2 + $0xc0] sm:$0xff]  }
 0x6ce   : > { %13790 = vmatmul.mubr.bf16.gmra.mrb[20].mxu1 %v17936_v25  ;;  %v15215_v25 = vld [vmem:[#allocation2 + $0xc8] sm:$0xff]  }
 0x6cf   : > { %13793 = vmatprep.mubr.bf16.mxu1 %v17937_v46 }
 0x6d6   : > { %13794 = vmatmul.mubr.bf16.gmra.mrb[24].mxu1 %v17938_v30  ;;  %v15293_v30 = vld [vmem:[#allocation2 + $0x20] sm:$0xff]  }
 0x6d7   : > { %13797 = vmatprep.mubr.bf16.mxu1 %v17939_v56  ;;  %v10061_v56 = vshll.u32 %v15293_v30, 16 }
 0x6de   : > { %13798 = vmatmul.mubr.bf16.gmra.mrb[28].mxu1 %v17940_v42 }
 0x6df   : > { %13801 = vmatprep.mubr.bf16.mxu1 %v17941_v47  ;;  %v15217_v47 = vld [vmem:[#allocation2 + $0xd0] sm:$0xff]  }
 0x6e6   : > { %13802 = vmatmul.mubr.bf16.gmra.mrb[32].mxu1 %v17942_v54 }
 0x6e7   : > { %13805 = vmatprep.mubr.bf16.mxu1 %v17943_v61  ;;  %v10063_v61 = vrot.slane %v10061_v56, 1 }
 0x6ee   : > { %13806 = vmatmul.mubr.bf16.gmra.mrb[36].mxu1 %v17944_v48  ;;  %v15294_v48 = vld [vmem:[#allocation2 + $0x28] sm:$0xff]  }
 0x6ef   : > { %13809 = vmatprep.mubr.bf16.mxu1 %v17945_v26  ;;  %v10069_v26 = vshll.u32 %v15294_v48, 16 }
 0x6f6   : > { %13810 = vmatmul.mubr.bf16.gmra.mrb[40].mxu1 %v17946_v19 }
 0x6f7   : > { %13813 = vmatprep.mubr.bf16.mxu1 %v17947_v4  ;;  %v10071_v4 = vrot.slane %v10069_v26, 1  ;;  %v15245_v26 = vld [vmem:[#allocation8 + $0x230] sm:$0xff]  }
 0x6fe   : > { %13814 = vmatmul.mubr.bf16.gmra.mrb[44].mxu1 %v17948_v57 }
 0x6ff   : > { %13833 = vmatprep.mubr.bf16.mxu1 %v15186_v59  ;;  %v15295_v59 = vld [vmem:[#allocation2 + $0x30] sm:$0xff]  }
 0x700   : > { %v10077_v57 = vshll.u32 %v15295_v59, 16 }
 0x706   : > { %13834 = vmatmul.mubr.bf16.vlgmr.msra.gmra.mrb[0].mxu1 %v15187_v2  ;;  %v10073_v2 = vshrl.u32 %v15294_v48, 16 }
 0x707   : > { %13837 = vmatprep.mubr.bf16.mxu1 %v15189_v7  ;;  %13882 = vmatpush3.bf16.msra.mxu1 %v15188_v37  ;;  %v12071_v37 = vcombine.low %v9864_v3, %v15292_v13  ;;  %v15237_v3 = vld [vmem:[#allocation8 + $0x220] sm:$0xff]  }
 0x708   : > { %13883 = vmatprep.subr.bf16.mxu1 %v15192_v38  ;;  %v10075_v7 = vor.u32 %v10073_v2, %v10071_v4 }
 0x709   : > { %v10056_v41 = vshll.u32 %v12071_v37, 16  ;;  %v10054_v42 = vshrl.u32 %v12071_v37, 16 }
 0x70b   : > { %13884 = vmatpush3.bf16.msra.mxu1 %v15192_v38  ;;  %v10058_v46 = vrot.slane %v10056_v41, 1  ;;  %v10065_v38 = vshrl.u32 %v15293_v30, 16  ;;  %v15241_v30 = vld [vmem:[#allocation8 + $0x228] sm:$0xff]  }
 0x70c   : > { %13885 = vmatprep.subr.bf16.mxu1 %v15196_v45 }
 0x70d   : > { %v10059_v54 = vor.u32 %v10058_v46, %v10054_v42 }
 0x70e   : > { %13838 = vmatmul.mubr.bf16.gmra.mrb[4].mxu1 %v15190_v62  ;;  %v15296_v62 = vld [vmem:[#allocation2 + $0x38] sm:$0xff]  }
 0x70f   : > { %13841 = vmatprep.mubr.bf16.mxu1 %v15191_v60  ;;  %13886 = vmatpush3.bf16.msra.mxu1 %v15196_v45  ;;  %v10064_v19 = vsel %vm517_vm0, %v10059_v54, %v10063_v61  ;;  %v10079_v45 = vrot.slane %v10077_v57, 1  ;;  %v10067_v60 = vor.u32 %v10065_v38, %v10063_v61  ;;  %v15301_v54 = vld [vmem:[#allocation2 + $0x60] sm:$0xff]   ;;  %v15302_v57 = vld [vmem:[#allocation2 + $0x68] sm:$0xff]  }
 0x710   : > { %13887 = vmatprep.subr.bf16.mxu1 %v15200_v33  ;;  %v10125_v61 = vshll.u32 %v15301_v54, 16  ;;  %v10133_v2 = vshll.u32 %v15302_v57, 16 }
 0x713   : > { %13888 = vmatpush3.bf16.msra.mxu1 %v15200_v33  ;;  %v10085_v33 = vshll.u32 %v15296_v62, 16 }
 0x714   : > { %13889 = vmatprep.subr.bf16.mxu1 %v15204_v34 }
 0x716   : > { %13842 = vmatmul.mubr.bf16.gmra.mrb[8].mxu1 %v15193_v51  ;;  %v10072_v51 = vsel %vm517_vm0, %v10067_v60, %v10071_v4  ;;  %v15303_v60 = vld [vmem:[#allocation2 + $0x70] sm:$0xff]  }
 0x717   : > { %13845 = vmatprep.mubr.bf16.mxu1 %v15194_v8  ;;  %13890 = vmatpush3.bf16.msra.mxu1 %v15204_v34  ;;  %v15225_v34 = vld [vmem:[#allocation8 + $0x208] sm:$0xff]   ;;  %v10087_v8 = vrot.slane %v10085_v33, 1  ;;  %v10135_v33 = vrot.slane %v10133_v2, 1 }
 0x718   : > { %13891 = vmatprep.subr.bf16.mxu1 %v15208_v52 }
 0x71b   : > { %13892 = vmatpush3.bf16.msra.mxu1 %v15208_v52  ;;  %v10080_v52 = vsel %vm517_vm0, %v10075_v7, %v10079_v45  ;;  %v15249_v7 = vld [vmem:[#allocation8 + $0x238] sm:$0xff]  }
 0x71c   : > { %13893 = vmatprep.subr.bf16.mxu1 %v15212_v44 }
 0x71e   : > { %13846 = vmatmul.mubr.bf16.gmra.mrb[12].mxu1 %v15195_v55 }
 0x71f   : > { %13849 = vmatprep.mubr.bf16.mxu1 %v15197_v5  ;;  %13894 = vmatpush3.bf16.msra.mxu1 %v15212_v44  ;;  %v15297_v44 = vld [vmem:[#allocation2 + $0x40] sm:$0xff]  }
 0x720   : > { %13895 = vmatprep.subr.bf16.mxu1 %v15216_v43  ;;  %v10093_v55 = vshll.u32 %v15297_v44, 16  ;;  %v15229_v5 = vld [vmem:[#allocation8 + $0x210] sm:$0xff]   ;;  %v10097_v13 = vshrl.u32 %v15297_v44, 16 }
 0x723   : > { %13896 = vmatpush3.bf16.msra.mxu1 %v15216_v43  ;;  %v10089_v43 = vshrl.u32 %v15296_v62, 16 }
 0x724   : > { %13945 = vmatprep.subr.bf16.mxu1 %v17495_v0 }
 0x726   : > { %13850 = vmatmul.mubr.bf16.gmra.mrb[16].mxu1 %v15198_v28  ;;  %v10081_v28 = vshrl.u32 %v15295_v59, 16  ;;  %v10127_v59 = vrot.slane %v10125_v61, 1 }
 0x727   : > { %13853 = vmatprep.mubr.bf16.mxu1 %v15199_v63  ;;  %v10091_v63 = vor.u32 %v10089_v43, %v10087_v8 }
 0x72e   : > { %13854 = vmatmul.mubr.bf16.gmra.mrb[20].mxu1 %v15201_v15  ;;  %v10095_v15 = vrot.slane %v10093_v55, 1  ;;  %v15304_v55 = vld [vmem:[#allocation2 + $0x78] sm:$0xff]  }
 0x72f   : > { %13857 = vmatprep.mubr.bf16.mxu1 %v15202_v40  ;;  %v15298_v40 = vld [vmem:[#allocation2 + $0x48] sm:$0xff]   ;;  %v10149_v43 = vshll.u32 %v15304_v55, 16 }
 0x730   : > { %v10099_v46 = vor.u32 %v10097_v13, %v10095_v15 }
 0x736   : > { %13858 = vmatmul.mubr.bf16.gmra.mrb[24].mxu1 %v15203_v20  ;;  %v10101_v20 = vshll.u32 %v15298_v40, 16 }
 0x737   : > { %13861 = vmatprep.mubr.bf16.mxu1 %v15205_v17  ;;  %v10083_v17 = vor.u32 %v10081_v28, %v10079_v45 }
 0x73e   : > { %13862 = vmatmul.mubr.bf16.gmra.mrb[28].mxu1 %v15206_v50  ;;  %v15233_v50 = vld [vmem:[#allocation8 + $0x218] sm:$0xff]  }
 0x73f   : > { %13865 = vmatprep.mubr.bf16.mxu1 %v15207_v58  ;;  %v10088_v58 = vsel %vm517_vm0, %v10083_v17, %v10087_v8  ;;  %v10153_v17 = vshrl.u32 %v15304_v55, 16 }
 0x746   : > { %13866 = vmatmul.mubr.bf16.gmra.mrb[32].mxu1 %v15209_v12  ;;  %v10096_v12 = vsel %vm517_vm0, %v10091_v63, %v10095_v15  ;;  %v10151_v15 = vrot.slane %v10149_v43, 1  ;;  %v15312_v43 = vld [vmem:[#allocation2 + $0xb8] sm:$0xff]  }
 0x747   : > { %13869 = vmatprep.mubr.bf16.mxu1 %v15210_v39  ;;  %v10103_v39 = vrot.slane %v10101_v20, 1 }
 0x749   : > { %v10104_v56 = vsel %vm517_vm0, %v10099_v46, %v10103_v39 }
 0x74e   : > { %13870 = vmatmul.mubr.bf16.gmra.mrb[36].mxu1 %v15211_v6  ;;  %v15299_v6 = vld [vmem:[#allocation2 + $0x50] sm:$0xff]  }
 0x74f   : > { %13873 = vmatprep.mubr.bf16.mxu1 %v15213_v22  ;;  %v10105_v22 = vshrl.u32 %v15298_v40, 16  ;;  %v15305_v40 = vld [vmem:[#allocation2 + $0x80] sm:$0xff]  }
 0x750   : > { %v10157_v20 = vshll.u32 %v15305_v40, 16 }
 0x751   : > { %v10107_v37 = vor.u32 %v10105_v22, %v10103_v39  ;;  %v15306_v39 = vld [vmem:[#allocation2 + $0x88] sm:$0xff]  }
 0x756   : > { %13874 = vmatmul.mubr.bf16.gmra.mrb[40].mxu1 %v15214_v21  ;;  %v15300_v21 = vld [vmem:[#allocation2 + $0x58] sm:$0xff]  }
 0x757   : > { %13877 = vmatprep.mubr.bf16.mxu1 %v15215_v25  ;;  %v10117_v25 = vshll.u32 %v15300_v21, 16  ;;  %v10121_v48 = vshrl.u32 %v15300_v21, 16  ;;  %v10169_v21 = vshrl.u32 %v15306_v39, 16 }
 0x75e   : > { %13878 = vmatmul.mubr.bf16.gmra.mrb[44].mxu1 %v15217_v47  ;;  %v10119_v47 = vrot.slane %v10117_v25, 1  ;;  %v10161_v25 = vshrl.u32 %v15305_v40, 16 }
 0x75f   : > { %13897 = vmatprep.mubr.bf16.mxu1 %v10064_v19  ;;  %v10113_v19 = vshrl.u32 %v15299_v6, 16 }
 0x760   : > { %v10123_v4 = vor.u32 %v10121_v48, %v10119_v47 }
 0x762   : > { %v10128_v62 = vsel %vm517_vm0, %v10123_v4, %v10127_v59 }
 0x766   : > { %13898 = vmatmul.mubr.bf16.vlgmr.msra.gmra.mrb[0].mxu1 %v10072_v51  ;;  %v10137_v51 = vshrl.u32 %v15302_v57, 16 }
 0x767   : > { %13901 = vmatprep.mubr.bf16.mxu1 %v10080_v52  ;;  %13946 = vmatpush3.bf16.msra.mxu1 %v17495_v0  ;;  %v10109_v0 = vshll.u32 %v15299_v6, 16  ;;  %v10129_v52 = vshrl.u32 %v15301_v54, 16  ;;  %v10165_v6 = vshll.u32 %v15306_v39, 16 }
 0x768   : > { %13947 = vmatprep.subr.bf16.mxu1 %v15225_v34  ;;  %v10139_v8 = vor.u32 %v10137_v51, %v10135_v33 }
 0x769   : > { %v10111_v41 = vrot.slane %v10109_v0, 1  ;;  %v10167_v13 = vrot.slane %v10165_v6, 1  ;;  %v15314_v6 = vld [vmem:[#allocation2 + $0xc8] sm:$0xff]  }
 0x76b   : > { %13948 = vmatpush3.bf16.msra.mxu1 %v15225_v34  ;;  %v10112_v42 = vsel %vm517_vm0, %v10107_v37, %v10111_v41  ;;  %v10115_v38 = vor.u32 %v10113_v19, %v10111_v41  ;;  %v10141_v34 = vshll.u32 %v15303_v60, 16  ;;  %v15307_v37 = vld [vmem:[#allocation2 + $0x90] sm:$0xff]   ;;  %v10171_v46 = vor.u32 %v10169_v21, %v10167_v13 }
 0x76c   : > { %13949 = vmatprep.subr.bf16.mxu1 %v15229_v5  ;;  %v10173_v41 = vshll.u32 %v15307_v37, 16 }
 0x76d   : > { %v10120_v45 = vsel %vm517_vm0, %v10115_v38, %v10119_v47  ;;  %v10143_v44 = vrot.slane %v10141_v34, 1  ;;  %v15310_v38 = vld [vmem:[#allocation2 + $0xa8] sm:$0xff]   ;;  %v15311_v34 = vld [vmem:[#allocation2 + $0xb0] sm:$0xff]  }
 0x76e   : > { %13902 = vmatmul.mubr.bf16.gmra.mrb[4].mxu1 %v10088_v58  ;;  %v10155_v58 = vor.u32 %v10153_v17, %v10151_v15  ;;  %v10205_v51 = vshll.u32 %v15311_v34, 16 }
 0x76f   : > { %13905 = vmatprep.mubr.bf16.mxu1 %v10096_v12  ;;  %13950 = vmatpush3.bf16.msra.mxu1 %v15229_v5  ;;  %v10131_v5 = vor.u32 %v10129_v52, %v10127_v59  ;;  %v10144_v63 = vsel %vm517_vm0, %v10139_v8, %v10143_v44  ;;  %v10159_v12 = vrot.slane %v10157_v20, 1  ;;  %v10177_v59 = vshrl.u32 %v15307_v37, 16  ;;  %v15313_v20 = vld [vmem:[#allocation2 + $0xc0] sm:$0xff]  }
 0x770   : > { %13951 = vmatprep.subr.bf16.mxu1 %v15233_v50  ;;  %v10201_v52 = vshrl.u32 %v15310_v38, 16  ;;  %v10207_v55 = vrot.slane %v10205_v51, 1  ;;  %v10221_v17 = vshll.u32 %v15313_v20, 16 }
 0x771   : > { %v10136_v28 = vsel %vm517_vm0, %v10131_v5, %v10135_v33  ;;  %v10163_v47 = vor.u32 %v10161_v25, %v10159_v12  ;;  %v10213_v5 = vshll.u32 %v15312_v43, 16  ;;  %v10225_v25 = vshrl.u32 %v15313_v20, 16 }
 0x772   : > { %v10223_v39 = vrot.slane %v10221_v17, 1 }
 0x773   : > { %13952 = vmatpush3.bf16.msra.mxu1 %v15233_v50  ;;  %v10145_v50 = vshrl.u32 %v15303_v60, 16  ;;  %v10168_v54 = vsel %vm517_vm0, %v10163_v47, %v10167_v13  ;;  %v10215_v40 = vrot.slane %v10213_v5, 1 }
 0x774   : > { %13953 = vmatprep.subr.bf16.mxu1 %v15237_v3 }
 0x775   : > { %v10147_v0 = vor.u32 %v10145_v50, %v10143_v44  ;;  %v10217_v50 = vshrl.u32 %v15312_v43, 16 }
 0x776   : > { %13906 = vmatmul.mubr.bf16.gmra.mrb[8].mxu1 %v10104_v56  ;;  %v15308_v56 = vld [vmem:[#allocation2 + $0x98] sm:$0xff]  }
 0x777   : > { %13909 = vmatprep.mubr.bf16.mxu1 %v10112_v42  ;;  %13954 = vmatpush3.bf16.msra.mxu1 %v15237_v3  ;;  %v10152_v22 = vsel %vm517_vm0, %v10147_v0, %v10151_v15  ;;  %v10160_v3 = vsel %vm517_vm0, %v10155_v58, %v10159_v12  ;;  %v10181_v42 = vshll.u32 %v15308_v56, 16  ;;  %v10185_v4 = vshrl.u32 %v15308_v56, 16 }
 0x778   : > { %13955 = vmatprep.subr.bf16.mxu1 %v15241_v30  ;;  %v10209_v58 = vshrl.u32 %v15311_v34, 16  ;;  %v10219_v12 = vor.u32 %v10217_v50, %v10215_v40  ;;  %v10229_v0 = vshll.u32 %v15314_v6, 16  ;;  %v10227_v56 = vor.u32 %v10225_v25, %v10223_v39  ;;  %v12261_v34 = vld [vmem:[%s15702_s12 + $0x28] sm:$0xff]  }
 0x779   : > { %v10183_v48 = vrot.slane %v10181_v42, 1 }
 0x77a   : > { %v10224_v37 = vsel %vm517_vm0, %v10219_v12, %v10223_v39 }
 0x77b   : > { %13956 = vmatpush3.bf16.msra.mxu1 %v15241_v30  ;;  %v10175_v30 = vrot.slane %v10173_v41, 1  ;;  %v10187_v57 = vor.u32 %v10185_v4, %v10183_v48  ;;  %v10231_v41 = vrot.slane %v10229_v0, 1  ;;  %v12181_v0 = vunpack.c.h.bf16 %v12261_v34 }
 0x77c   : > { %13957 = vmatprep.subr.bf16.mxu1 %v15245_v26 }
 0x77d   : > { %v10176_v61 = vsel %vm517_vm0, %v10171_v46, %v10175_v30  ;;  %v15250_v46 = vld [vmem:[#allocation2 + $0xd8] ss:$0 sps:$4 sm:$0x11]  }
 0x77e   : > { %13910 = vmatmul.mubr.bf16.gmra.mrb[12].mxu1 %v10120_v45  ;;  %v10179_v45 = vor.u32 %v10177_v59, %v10175_v30  ;;  %v10233_v30 = vshrl.u32 %v15314_v6, 16 }
 0x77f   : > { %13913 = vmatprep.mubr.bf16.mxu1 %v10128_v62  ;;  %13958 = vmatpush3.bf16.msra.mxu1 %v15245_v26  ;;  %v15309_v26 = vld [vmem:[#allocation2 + $0xa0] sm:$0xff]  }
 0x780   : > { %13959 = vmatprep.subr.bf16.mxu1 %v15249_v7  ;;  %v10189_v19 = vshll.u32 %v15309_v26, 16  ;;  %v10184_v62 = vsel %vm517_vm0, %v10179_v45, %v10183_v48  ;;  %v10193_v8 = vshrl.u32 %v15309_v26, 16  ;;  %v10235_v42 = vor.u32 %v10233_v30, %v10231_v41  ;;  %v17953_v45 = vld [vmem:[#allocation50_spill] sm:$0xff] }
 0x781   : > { %v10232_v48 = vsel %vm517_vm0, %v10227_v56, %v10231_v41  ;;  %v12262_v30 = vld [vmem:[%s15702_s12 + $0x30] sm:$0xff]   ;;  %v12263_v56 = vld [vmem:[%s15702_s12 + $0x38] sm:$0xff]  }
 0x782   : > { %v10191_v2 = vrot.slane %v10189_v19, 1 }
 0x783   : > { %13960 = vmatpush3.bf16.msra.mxu1 %v15249_v7  ;;  %v10197_v7 = vshll.u32 %v15310_v38, 16  ;;  %v17951_v38 = vld [vmem:[#allocation48_spill] sm:$0xff] }
 0x784   : > { %v10192_v33 = vsel %vm517_vm0, %v10187_v57, %v10191_v2  ;;  %v17949_v57 = vld [vmem:[#allocation46_spill] sm:$0xff] }
 0x785   : > { %v10199_v60 = vrot.slane %v10197_v7, 1  ;;  %v17952_v7 = vld [vmem:[#allocation49_spill] sm:$0xff] }
 0x786   : > { %13914 = vmatmul.mubr.bf16.gmra.mrb[16].mxu1 %v10136_v28  ;;  %v10195_v28 = vor.u32 %v10193_v8, %v10191_v2  ;;  %v17950_v2 = vld [vmem:[#allocation47_spill] sm:$0xff] }
 0x787   : > { %13917 = vmatprep.mubr.bf16.mxu1 %v10144_v63  ;;  %v10203_v44 = vor.u32 %v10201_v52, %v10199_v60  ;;  %v17562_v52 = vld [vmem:[%s17836_s5 + $0x1] ss:$0 sm:$0xff] }
 0x788   : > { %v10200_v63 = vsel %vm517_vm0, %v10195_v28, %v10199_v60 }
 0x789   : > { %v10208_v15 = vsel %vm517_vm0, %v10203_v44, %v10207_v55 }
 0x78e   : > { %13918 = vmatmul.mubr.bf16.gmra.mrb[20].mxu1 %v10152_v22  ;;  %v10211_v22 = vor.u32 %v10209_v58, %v10207_v55 }
 0x78f   : > { %13921 = vmatprep.mubr.bf16.mxu1 %v10160_v3  ;;  %v15248_v3 = vld [vmem:[#allocation2 + $0xd0] sm:$0xff]  }
 0x790   : > { %v10216_v13 = vsel %vm517_vm0, %v10211_v22, %v10215_v40  ;;  %v10237_v21 = vshll.u32 %v15248_v3, 16 }
 0x792   : > { %v10239_v47 = vrot.slane %v10237_v21, 1 }
 0x794   : > { %v10240_v26 = vsel %vm517_vm0, %v10235_v42, %v10239_v47 }
 0x796   : > { %13922 = vmatmul.mubr.bf16.gmra.mrb[24].mxu1 %v10168_v54  ;;  %v10241_v54 = vshrl.u32 %v15248_v3, 16 }
 0x797   : > { %13925 = vmatprep.mubr.bf16.mxu1 %v10176_v61  ;;  %v10245_v61 = vshll.u32 %v15250_v46, 16 }
 0x798   : > { %v10243_v19 = vor.u32 %v10241_v54, %v10239_v47 }
 0x799   : > { %v10247_v4 = vrot.slane %v10245_v61, 1 }
 0x79b   : > { %v10248_v59 = vsel %vm517_vm0, %v10243_v19, %v10247_v4 }
 0x79e   : > { %13926 = vmatmul.mubr.bf16.gmra.mrb[28].mxu1 %v10184_v62  ;;  %v17954_v62 = vld [vmem:[#allocation51_spill] sm:$0xff] }
 0x79f   : > { %13929 = vmatprep.mubr.bf16.mxu1 %v10192_v33  ;;  %v17955_v33 = vld [vmem:[#allocation52_spill] sm:$0xff] }
 0x7a6   : > { %13930 = vmatmul.mubr.bf16.gmra.mrb[32].mxu1 %v10200_v63 }
 0x7a7   : > { %13933 = vmatprep.mubr.bf16.mxu1 %v10208_v15  ;;  %v12180_v15 = vunpack.c.l.bf16 %v12261_v34 }
 0x7a9   : > { %v11276_v25 = vrot.slane %v12180_v15, 1 }
 0x7ae   : > { %13934 = vmatmul.mubr.bf16.gmra.mrb[36].mxu1 %v10216_v13 }
 0x7af   : > { %13937 = vmatprep.mubr.bf16.mxu1 %v10224_v37 }
 0x7b6   : > { %13938 = vmatmul.mubr.bf16.gmra.mrb[40].mxu1 %v10232_v48 }
 0x7b7   : > { %13941 = vmatprep.mubr.bf16.mxu1 %v10240_v26  ;;  %v11278_v26 = vrot.slane %v12181_v0, 1 }
 0x7be   : > { %13942 = vmatmul.mubr.bf16.gmra.mrb[44].mxu1 %v10248_v59 }
 0x7bf   : > { %13961 = vmatprep.mubr.bf16.mxu1 %v17949_v57  ;;  %v12185_v57 = vunpack.c.h.bf16 %v12262_v30 }
 0x7c6   : > { %13962 = vmatmul.mubr.bf16.vlgmr.msra.gmra.mrb[0].mxu1 %v17950_v2  ;;  %v12188_v2 = vunpack.c.l.bf16 %v12263_v56 }
 0x7c7   : > { %13965 = vmatprep.mubr.bf16.mxu1 %v17951_v38 }
 0x7ce   : > { %13966 = vmatmul.mubr.bf16.gmra.mrb[4].mxu1 %v17952_v7 }
 0x7cf   : > { %13969 = vmatprep.mubr.bf16.mxu1 %v17285_v23  ;;  %v10660_v23 = vrot.slane %v15248_v3, 1 }
 0x7d6   : > { %13970 = vmatmul.mubr.bf16.gmra.mrb[8].mxu1 %v17953_v45 }
 0x7d7   : > { %13973 = vmatprep.mubr.bf16.mxu1 %v17291_v29  ;;  %v10661_v29 = vsel %vm1329_vm1, %v10658_v18, %v10660_v23 }
 0x7de   : > { %13974 = vmatmul.mubr.bf16.gmra.mrb[12].mxu1 %v17296_v27  ;;  %v10662_v27 = vrot.slane %v15250_v46, 1 }
 0x7df   : > { %13977 = vmatprep.mubr.bf16.mxu1 %v17954_v62 }
 0x7e6   : > { %13978 = vmatmul.mubr.bf16.gmra.mrb[16].mxu1 %v17955_v33 }
 0x7e7   : > { %13981 = vmatprep.mubr.bf16.mxu1 %v17305_v35  ;;  %v10663_v35 = vsel %vm1329_vm1, %v10660_v23, %v10662_v27 }
 0x7ee   : > { %13982 = vmatmul.mubr.bf16.gmra.mrb[20].mxu1 %v17308_v14  ;;  %v12258_v14 = vld [vmem:[%s15702_s12 + $0x10] sm:$0xff]  }
 0x7ef   : > { %13985 = vmatprep.mubr.bf16.mxu1 %v17311_v53  ;;  %v12259_v53 = vld [vmem:[%s15702_s12 + $0x18] sm:$0xff]  }
 0x7f6   : > { %13986 = vmatmul.mubr.bf16.gmra.mrb[24].mxu1 %v17314_v11  ;;  %v11115_v11 = vld [vmem:[%s15702_s12 + $0xc] sm:$0xf] }
 0x7f7   : > { %13989 = vmatprep.mubr.bf16.mxu1 %v17317_v10  ;;  %v12169_v10 = vunpack.c.h.bf16 %v12258_v14 }
 0x7f9   : > { %v11266_v18 = vrot.slane %v12169_v10, 1 }
 0x7fe   : > { %13990 = vmatmul.mubr.bf16.gmra.mrb[28].mxu1 %v17320_v36  ;;  %v12172_v36 = vunpack.c.l.bf16 %v12259_v53 }
 0x7ff   : > { %13993 = vmatprep.mubr.bf16.mxu1 %v17323_v9  ;;  %v12168_v9 = vunpack.c.l.bf16 %v12258_v14  ;;  %v12184_v14 = vunpack.c.l.bf16 %v12262_v30 }
 0x801   : > { %v11264_v60 = vrot.slane %v12168_v9, 1 }
 0x803   : > { %v11267_v13 = vsel %vm1329_vm1, %v11264_v60, %v11266_v18 }
 0x806   : > { %13994 = vmatmul.mubr.bf16.gmra.mrb[32].mxu1 %v17328_v32  ;;  %v11164_v32 = vunpack.c.l.bf16 %v11115_v11  ;;  %v11279_v11 = vsel %vm1329_vm1, %v11276_v25, %v11278_v26 }
 0x807   : > { %13997 = vmatprep.mubr.bf16.mxu1 %v17331_v31  ;;  %v12173_v31 = vunpack.c.h.bf16 %v12259_v53 }
 0x809   : > { %v11270_v8 = vrot.slane %v12173_v31, 1  ;;  %v11282_v31 = vrot.slane %v12185_v57, 1 }
 0x80e   : > { %13998 = vmatmul.mubr.bf16.gmra.mrb[36].mxu1 %v17334_v49  ;;  %v11268_v49 = vrot.slane %v12172_v36, 1  ;;  %v12189_v36 = vunpack.c.h.bf16 %v12263_v56 }
 0x80f   : > { %14001 = vmatprep.mubr.bf16.mxu1 %v17338_v16  ;;  %v12260_v16 = vld [vmem:[%s15702_s12 + $0x20] sm:$0xff]  }
 0x810   : > { %v12177_v43 = vunpack.c.h.bf16 %v12260_v16  ;;  %v11269_v5 = vsel %vm1329_vm1, %v11266_v18, %v11268_v49  ;;  %v12176_v40 = vunpack.c.l.bf16 %v12260_v16  ;;  %v11271_v39 = vsel %vm1329_vm1, %v11268_v49, %v11270_v8 }
 0x811   : > { %v11284_v18 = vrot.slane %v12188_v2, 1 }
 0x812   : > { %v11274_v37 = vrot.slane %v12177_v43, 1  ;;  %v11272_v46 = vrot.slane %v12176_v40, 1 }
 0x813   : > { %v11285_v15 = vsel %vm1329_vm1, %v11282_v31, %v11284_v18 }
 0x814   : > { %v11277_v7 = vsel %vm1329_vm1, %v11274_v37, %v11276_v25  ;;  %v11273_v62 = vsel %vm1329_vm1, %v11270_v8, %v11272_v46  ;;  %v12265_v8 = vld [vmem:[%s15702_s12 + $0x48] sm:$0xff]  }
 0x816   : > { %14002 = vmatmul.mubr.bf16.gmra.mrb[40].mxu1 %v17343_v1  ;;  %v11263_v1 = vrot.slane %v11164_v32, 1 }
 0x817   : > { %14005 = vmatprep.mubr.bf16.mxu1 %v10661_v29 }
 0x818   : > { %v11265_v17 = vsel %vm1329_vm1, %v11263_v1, %v11264_v60  ;;  %v12264_v1 = vld [vmem:[%s15702_s12 + $0x40] sm:$0xff]  }
 0x81e   : > { %14006 = vmatmul.mubr.bf16.gmra.mrb[44].mxu1 %v10663_v35  ;;  %v11275_v35 = vsel %vm1329_vm1, %v11272_v46, %v11274_v37 }
 0x899   : > { %v13963_v51 = vpop.f32.mrb[0].mxu1 }
 0x89a   : > { %v11016_v44 = vmul.f32 %v13963_v51, %v17555_v24  ;;  %v10770_v55 = vpop.f32.mrb[1].mxu1  ;;  %v11280_v51 = vrot.slane %v12184_v14, 1 }
 0x89b   : > { %v11014_v28 = vmul.f32 %v17555_v24, %v10770_v55  ;;  %v13964_v63 = vpop.f32.mrb[2].mxu1 }
 0x89c   : > { %v11069_v20 = vadd.f32 %v17562_v52, %v11016_v44  ;;  %v11017_v50 = vmul.f32 %v13964_v63, %v17555_v24  ;;  %v10773_v58 = vpop.f32.mrb[3].mxu1  ;;  %v11281_v0 = vsel %vm1329_vm1, %v11278_v26, %v11280_v51  ;;  %v11283_v30 = vsel %vm1329_vm1, %v11280_v51, %v11282_v31  ;;  %v12267_v26 = vld [vmem:[%s15702_s12 + $0x58] sm:$0xff]  }
 0x89d   : > { %v11067_v12 = vadd.f32 %v17562_v52, %v11014_v28  ;;  %v11015_v6 = vmul.f32 %v17555_v24, %v10773_v58 }
 0x89e   : > { %v11410_v22 = vadd.f32 %v11269_v5, %v11069_v20  ;;  %v11070_v3 = vadd.f32 %v17562_v52, %v11017_v50  ;;  %v11286_v5 = vrot.slane %v12189_v36, 1  ;;  %v12193_v20 = vunpack.c.h.bf16 %v12264_v1 }
 0x89f   : > { %v11408_v41 = vadd.f32 %v11265_v17, %v11067_v12  ;;  %v11068_v21 = vadd.f32 %v17562_v52, %v11015_v6  ;;  %v12196_v12 = vunpack.c.l.bf16 %v12265_v8 }
 0x8a0   : > { %v11458_v42 = vmax.f32 %v11410_v22, 0.0  ;;  %v11411_v47 = vadd.f32 %v11271_v39, %v11070_v3  ;;  %v12192_v39 = vunpack.c.l.bf16 %v12264_v1  ;;  %v11287_v37 = vsel %vm1329_vm1, %v11284_v18, %v11286_v5 }
 0x8a1   : > { %v11456_v54 = vmax.f32 %v11408_v41, 0.0  ;;  %v11409_v61 = vadd.f32 %v11267_v13, %v11068_v21  ;;  %v13967_v48 = vpop.f32.mrb[4].mxu1  ;;  %v12197_v21 = vunpack.c.h.bf16 %v12265_v8  ;;  %v11290_v56 = vrot.slane %v12193_v20, 1 }
 0x8a2   : > { %11506 = vst [vmem:[%s17579_s26 + $0x10] sm:$0xff] %v11458_v42  ;;  %v11459_v19 = vmax.f32 %v11411_v47, 0.0  ;;  %v11020_v4 = vmul.f32 %v13967_v48, %v17555_v24  ;;  %v10786_v59 = vpop.f32.mrb[5].mxu1  ;;  %v12266_v48 = vld [vmem:[%s15702_s12 + $0x50] sm:$0xff]  }
 0x8a3   : > { %11504 = vst [vmem:[%s17579_s26] sm:$0xff] %v11456_v54  ;;  %v11457_v38 = vmax.f32 %v11409_v61, 0.0  ;;  %v11018_v45 = vmul.f32 %v17555_v24, %v10786_v59  ;;  %v13968_v33 = vpop.f32.mrb[6].mxu1  ;;  %v11292_v54 = vrot.slane %v12196_v12, 1  ;;  %v11288_v61 = vrot.slane %v12192_v39, 1 }
 0x8a4   : > { %11507 = vst [vmem:[%s17579_s26 + $0x18] sm:$0xff] %v11459_v19  ;;  %v11073_v23 = vadd.f32 %v17562_v52, %v11020_v4  ;;  %v11021_v29 = vmul.f32 %v13968_v33, %v17555_v24  ;;  %v10789_v27 = vpop.f32.mrb[7].mxu1  ;;  %v12201_v33 = vunpack.c.h.bf16 %v12266_v48 }
 0x8a5   : > { %11505 = vst [vmem:[%s17579_s26 + $0x8] sm:$0xff] %v11457_v38  ;;  %v11071_v53 = vadd.f32 %v17562_v52, %v11018_v45  ;;  %v11019_v10 = vmul.f32 %v17555_v24, %v10789_v27  ;;  %v11294_v38 = vrot.slane %v12197_v21, 1  ;;  %v11293_v27 = vsel %vm1329_vm1, %v11290_v56, %v11292_v54 }
 0x8a6   : > { %v11414_v9 = vadd.f32 %v11277_v7, %v11073_v23  ;;  %v11074_v32 = vadd.f32 %v17562_v52, %v11021_v29  ;;  %v12204_v23 = vunpack.c.l.bf16 %v12267_v26  ;;  %v11289_v14 = vsel %vm1329_vm1, %v11286_v5, %v11288_v61 }
 0x8a7   : > { %v11412_v49 = vadd.f32 %v11273_v62, %v11071_v53  ;;  %v11072_v16 = vadd.f32 %v17562_v52, %v11019_v10  ;;  %v11295_v18 = vsel %vm1329_vm1, %v11292_v54, %v11294_v38 }
 0x8a8   : > { %v11462_v60 = vmax.f32 %v11414_v9, 0.0  ;;  %v11415_v34 = vadd.f32 %v11279_v11, %v11074_v32  ;;  %v11291_v9 = vsel %vm1329_vm1, %v11288_v61, %v11290_v56  ;;  %v12200_v32 = vunpack.c.l.bf16 %v12266_v48 }
 0x8a9   : > { %v11460_v44 = vmax.f32 %v11412_v49, 0.0  ;;  %v11413_v55 = vadd.f32 %v11275_v35, %v11072_v16  ;;  %v13971_v43 = vpop.f32.mrb[8].mxu1  ;;  %v12205_v16 = vunpack.c.h.bf16 %v12267_v26  ;;  %v11300_v51 = vrot.slane %v12204_v23, 1 }
 0x8aa   : > { %11510 = vst [vmem:[%s17579_s26 + $0x30] sm:$0xff] %v11462_v60  ;;  %v11463_v28 = vmax.f32 %v11415_v34, 0.0  ;;  %v11024_v63 = vmul.f32 %v13971_v43, %v17555_v24  ;;  %v10802_v40 = vpop.f32.mrb[9].mxu1  ;;  %v11298_v34 = vrot.slane %v12201_v33, 1 }
 0x8ab   : > { %11508 = vst [vmem:[%s17579_s26 + $0x20] sm:$0xff] %v11460_v44  ;;  %v11461_v17 = vmax.f32 %v11413_v55, 0.0  ;;  %v11022_v50 = vmul.f32 %v17555_v24, %v10802_v40  ;;  %v13972_v58 = vpop.f32.mrb[10].mxu1  ;;  %v12268_v55 = vld [vmem:[%s15702_s12 + $0x60] sm:$0xff]  }
 0x8ac   : > { %11511 = vst [vmem:[%s17579_s26 + $0x38] sm:$0xff] %v11463_v28  ;;  %v11077_v6 = vadd.f32 %v17562_v52, %v11024_v63  ;;  %v11025_v22 = vmul.f32 %v13972_v58, %v17555_v24  ;;  %v10805_v3 = vpop.f32.mrb[11].mxu1  ;;  %v11296_v28 = vrot.slane %v12200_v32, 1  ;;  %v12269_v63 = vld [vmem:[%s15702_s12 + $0x68] sm:$0xff]   ;;  %v11301_v12 = vsel %vm1329_vm1, %v11298_v34, %v11300_v51 }
 0x8ad   : > { %11509 = vst [vmem:[%s17579_s26 + $0x28] sm:$0xff] %v11461_v17  ;;  %v11075_v13 = vadd.f32 %v17562_v52, %v11022_v50  ;;  %v11023_v41 = vmul.f32 %v17555_v24, %v10805_v3  ;;  %v11302_v17 = vrot.slane %v12205_v16, 1 }
 0x8ae   : > { %v11418_v25 = vadd.f32 %v11285_v15, %v11077_v6  ;;  %v11078_v46 = vadd.f32 %v17562_v52, %v11025_v22  ;;  %v12209_v6 = vunpack.c.h.bf16 %v12268_v55  ;;  %v11297_v21 = vsel %vm1329_vm1, %v11294_v38, %v11296_v28  ;;  %v12271_v38 = vld [vmem:[%s15702_s12 + $0x78] sm:$0xff]  }
 0x8af   : > { %v11416_v42 = vadd.f32 %v11281_v0, %v11075_v13  ;;  %v11076_v47 = vadd.f32 %v17562_v52, %v11023_v41  ;;  %v12212_v13 = vunpack.c.l.bf16 %v12269_v63  ;;  %v11303_v56 = vsel %vm1329_vm1, %v11300_v51, %v11302_v17 }
 0x8b0   : > { %v11466_v19 = vmax.f32 %v11418_v25, 0.0  ;;  %v11419_v4 = vadd.f32 %v11287_v37, %v11078_v46  ;;  %v12208_v37 = vunpack.c.l.bf16 %v12268_v55  ;;  %v11299_v48 = vsel %vm1329_vm1, %v11296_v28, %v11298_v34 }
 0x8b1   : > { %v11464_v59 = vmax.f32 %v11416_v42, 0.0  ;;  %v11417_v57 = vadd.f32 %v11283_v30, %v11076_v47  ;;  %v13975_v2 = vpop.f32.mrb[12].mxu1  ;;  %v12213_v47 = vunpack.c.h.bf16 %v12269_v63  ;;  %v11306_v26 = vrot.slane %v12209_v6, 1 }
 0x8b2   : > { %11514 = vst [vmem:[%s17579_s26 + $0x50] sm:$0xff] %v11466_v19  ;;  %v11467_v7 = vmax.f32 %v11419_v4, 0.0  ;;  %v11028_v45 = vmul.f32 %v13975_v2, %v17555_v24  ;;  %v10818_v62 = vpop.f32.mrb[13].mxu1  ;;  %v12270_v2 = vld [vmem:[%s15702_s12 + $0x70] sm:$0xff]  }
 0x8b3   : > { %11512 = vst [vmem:[%s17579_s26 + $0x40] sm:$0xff] %v11464_v59  ;;  %v11465_v29 = vmax.f32 %v11417_v57, 0.0  ;;  %v11026_v35 = vmul.f32 %v17555_v24, %v10818_v62  ;;  %v13976_v53 = vpop.f32.mrb[14].mxu1  ;;  %v11308_v59 = vrot.slane %v12212_v13, 1  ;;  %v11304_v57 = vrot.slane %v12208_v37, 1 }
 0x8b4   : > { %11515 = vst [vmem:[%s17579_s26 + $0x58] sm:$0xff] %v11467_v7  ;;  %v11081_v11 = vadd.f32 %v17562_v52, %v11028_v45  ;;  %v11029_v10 = vmul.f32 %v13976_v53, %v17555_v24  ;;  %v10821_v36 = vpop.f32.mrb[15].mxu1  ;;  %v12217_v53 = vunpack.c.h.bf16 %v12270_v2 }
 0x8b5   : > { %11513 = vst [vmem:[%s17579_s26 + $0x48] sm:$0xff] %v11465_v29  ;;  %v11079_v31 = vadd.f32 %v17562_v52, %v11026_v35  ;;  %v11027_v49 = vmul.f32 %v17555_v24, %v10821_v36  ;;  %v11310_v29 = vrot.slane %v12213_v47, 1  ;;  %v11309_v36 = vsel %vm1329_vm1, %v11306_v26, %v11308_v59 }
 0x8b6   : > { %v11422_v1 = vadd.f32 %v11293_v27, %v11081_v11  ;;  %v11082_v60 = vadd.f32 %v17562_v52, %v11029_v10  ;;  %v12220_v11 = vunpack.c.l.bf16 %v12271_v38  ;;  %v11305_v32 = vsel %vm1329_vm1, %v11302_v17, %v11304_v57 }
 0x8b7   : > { %v11420_v8 = vadd.f32 %v11289_v14, %v11079_v31  ;;  %v11080_v44 = vadd.f32 %v17562_v52, %v11027_v49  ;;  %v11311_v51 = vsel %vm1329_vm1, %v11308_v59, %v11310_v29 }
 0x8b8   : > { %v11470_v43 = vmax.f32 %v11422_v1, 0.0  ;;  %v11423_v5 = vadd.f32 %v11295_v18, %v11082_v60  ;;  %v11307_v1 = vsel %vm1329_vm1, %v11304_v57, %v11306_v26  ;;  %v12216_v60 = vunpack.c.l.bf16 %v12270_v2 }
 0x8b9   : > { %v11468_v15 = vmax.f32 %v11420_v8, 0.0  ;;  %v11421_v40 = vadd.f32 %v11291_v9, %v11080_v44  ;;  %v13979_v20 = vpop.f32.mrb[16].mxu1  ;;  %v12221_v44 = vunpack.c.h.bf16 %v12271_v38  ;;  %v11316_v28 = vrot.slane %v12220_v11, 1 }
 0x8ba   : > { %11518 = vst [vmem:[%s17579_s26 + $0x70] sm:$0xff] %v11470_v43  ;;  %v11471_v50 = vmax.f32 %v11423_v5, 0.0  ;;  %v11032_v58 = vmul.f32 %v13979_v20, %v17555_v24  ;;  %v10834_v39 = vpop.f32.mrb[17].mxu1  ;;  %v11314_v5 = vrot.slane %v12217_v53, 1 }
 0x8bb   : > { %11516 = vst [vmem:[%s17579_s26 + $0x60] sm:$0xff] %v11468_v15  ;;  %v11469_v0 = vmax.f32 %v11421_v40, 0.0  ;;  %v11030_v22 = vmul.f32 %v17555_v24, %v10834_v39  ;;  %v13980_v3 = vpop.f32.mrb[18].mxu1  ;;  %v12272_v40 = vld [vmem:[%s15702_s12 + $0x80] sm:$0xff]  }
 0x8bc   : > { %11519 = vst [vmem:[%s17579_s26 + $0x78] sm:$0xff] %v11471_v50  ;;  %v11085_v41 = vadd.f32 %v17562_v52, %v11032_v58  ;;  %v11033_v25 = vmul.f32 %v13980_v3, %v17555_v24  ;;  %v10837_v46 = vpop.f32.mrb[19].mxu1  ;;  %v11312_v50 = vrot.slane %v12216_v60, 1  ;;  %v12273_v58 = vld [vmem:[%s15702_s12 + $0x88] sm:$0xff]   ;;  %v11317_v13 = vsel %vm1329_vm1, %v11314_v5, %v11316_v28 }
 0x8bd   : > { %11517 = vst [vmem:[%s17579_s26 + $0x68] sm:$0xff] %v11469_v0  ;;  %v11083_v30 = vadd.f32 %v17562_v52, %v11030_v22  ;;  %v11031_v42 = vmul.f32 %v17555_v24, %v10837_v46  ;;  %v11318_v0 = vrot.slane %v12221_v44, 1 }
 0x8be   : > { %v11426_v54 = vadd.f32 %v11301_v12, %v11085_v41  ;;  %v11086_v61 = vadd.f32 %v17562_v52, %v11033_v25  ;;  %v12225_v41 = vunpack.c.h.bf16 %v12272_v40  ;;  %v11313_v47 = vsel %vm1329_vm1, %v11310_v29, %v11312_v50  ;;  %v12275_v29 = vld [vmem:[%s15702_s12 + $0x98] sm:$0xff]  }
 0x8bf   : > { %v11424_v19 = vadd.f32 %v11297_v21, %v11083_v30  ;;  %v11084_v4 = vadd.f32 %v17562_v52, %v11031_v42  ;;  %v12228_v30 = vunpack.c.l.bf16 %v12273_v58  ;;  %v11319_v26 = vsel %vm1329_vm1, %v11316_v28, %v11318_v0 }
 0x8c0   : > { %v11474_v7 = vmax.f32 %v11426_v54, 0.0  ;;  %v11427_v45 = vadd.f32 %v11303_v56, %v11086_v61  ;;  %v12224_v56 = vunpack.c.l.bf16 %v12272_v40  ;;  %v11315_v2 = vsel %vm1329_vm1, %v11312_v50, %v11314_v5 }
 0x8c1   : > { %v11472_v62 = vmax.f32 %v11424_v19, 0.0  ;;  %v11425_v33 = vadd.f32 %v11299_v48, %v11084_v4  ;;  %v13983_v23 = vpop.f32.mrb[20].mxu1  ;;  %v12229_v4 = vunpack.c.h.bf16 %v12273_v58  ;;  %v11322_v38 = vrot.slane %v12225_v41, 1 }
 0x8c2   : > { %11522 = vst [vmem:[%s17579_s26 + $0x90] sm:$0xff] %v11474_v7  ;;  %v11475_v27 = vmax.f32 %v11427_v45, 0.0  ;;  %v11036_v35 = vmul.f32 %v13983_v23, %v17555_v24  ;;  %v10850_v14 = vpop.f32.mrb[21].mxu1  ;;  %v12274_v23 = vld [vmem:[%s15702_s12 + $0x90] sm:$0xff]  }
 0x8c3   : > { %11520 = vst [vmem:[%s17579_s26 + $0x80] sm:$0xff] %v11472_v62  ;;  %v11473_v10 = vmax.f32 %v11425_v33, 0.0  ;;  %v11034_v9 = vmul.f32 %v17555_v24, %v10850_v14  ;;  %v13984_v31 = vpop.f32.mrb[22].mxu1  ;;  %v11324_v62 = vrot.slane %v12228_v30, 1  ;;  %v11320_v33 = vrot.slane %v12224_v56, 1 }
 0x8c4   : > { %11523 = vst [vmem:[%s17579_s26 + $0x98] sm:$0xff] %v11475_v27  ;;  %v11089_v18 = vadd.f32 %v17562_v52, %v11036_v35  ;;  %v11037_v49 = vmul.f32 %v13984_v31, %v17555_v24  ;;  %v10853_v16 = vpop.f32.mrb[23].mxu1  ;;  %v12233_v31 = vunpack.c.h.bf16 %v12274_v23 }
 0x8c5   : > { %11521 = vst [vmem:[%s17579_s26 + $0x88] sm:$0xff] %v11473_v10  ;;  %v11087_v34 = vadd.f32 %v17562_v52, %v11034_v9  ;;  %v11035_v8 = vmul.f32 %v17555_v24, %v10853_v16  ;;  %v11326_v10 = vrot.slane %v12229_v4, 1  ;;  %v11325_v16 = vsel %vm1329_vm1, %v11322_v38, %v11324_v62 }
 0x8c6   : > { %v11430_v55 = vadd.f32 %v11309_v36, %v11089_v18  ;;  %v11090_v43 = vadd.f32 %v17562_v52, %v11037_v49  ;;  %v12236_v18 = vunpack.c.l.bf16 %v12275_v29  ;;  %v11321_v60 = vsel %vm1329_vm1, %v11318_v0, %v11320_v33 }
 0x8c7   : > { %v11428_v63 = vadd.f32 %v11305_v32, %v11087_v34  ;;  %v11088_v15 = vadd.f32 %v17562_v52, %v11035_v8  ;;  %v11327_v28 = vsel %vm1329_vm1, %v11324_v62, %v11326_v10 }
 0x8c8   : > { %v11478_v20 = vmax.f32 %v11430_v55, 0.0  ;;  %v11431_v17 = vadd.f32 %v11311_v51, %v11090_v43  ;;  %v11323_v55 = vsel %vm1329_vm1, %v11320_v33, %v11322_v38  ;;  %v12232_v43 = vunpack.c.l.bf16 %v12274_v23 }
 0x8c9   : > { %v11476_v12 = vmax.f32 %v11428_v63, 0.0  ;;  %v11429_v39 = vadd.f32 %v11307_v1, %v11088_v15  ;;  %v13987_v6 = vpop.f32.mrb[24].mxu1  ;;  %v12237_v15 = vunpack.c.h.bf16 %v12275_v29  ;;  %v11332_v50 = vrot.slane %v12236_v18, 1 }
 0x8ca   : > { %11526 = vst [vmem:[%s17579_s26 + $0xb0] sm:$0xff] %v11478_v20  ;;  %v11479_v22 = vmax.f32 %v11431_v17, 0.0  ;;  %v11040_v3 = vmul.f32 %v13987_v6, %v17555_v24  ;;  %v10866_v37 = vpop.f32.mrb[25].mxu1  ;;  %v11330_v17 = vrot.slane %v12233_v31, 1 }
 0x8cb   : > { %11524 = vst [vmem:[%s17579_s26 + $0xa0] sm:$0xff] %v11476_v12  ;;  %v11477_v21 = vmax.f32 %v11429_v39, 0.0  ;;  %v11038_v25 = vmul.f32 %v17555_v24, %v10866_v37  ;;  %v13988_v46 = vpop.f32.mrb[26].mxu1  ;;  %v12276_v39 = vld [vmem:[%s15702_s12 + $0xa0] sm:$0xff]  }
 0x8cc   : > { %11527 = vst [vmem:[%s17579_s26 + $0xb8] sm:$0xff] %v11479_v22  ;;  %v11093_v42 = vadd.f32 %v17562_v52, %v11040_v3  ;;  %v11041_v54 = vmul.f32 %v13988_v46, %v17555_v24  ;;  %v10869_v61 = vpop.f32.mrb[27].mxu1  ;;  %v11328_v22 = vrot.slane %v12232_v43, 1  ;;  %v12277_v3 = vld [vmem:[%s15702_s12 + $0xa8] sm:$0xff]   ;;  %v11333_v30 = vsel %vm1329_vm1, %v11330_v17, %v11332_v50 }
 0x8cd   : > { %11525 = vst [vmem:[%s17579_s26 + $0xa8] sm:$0xff] %v11477_v21  ;;  %v11091_v48 = vadd.f32 %v17562_v52, %v11038_v25  ;;  %v11039_v19 = vmul.f32 %v17555_v24, %v10869_v61  ;;  %v11334_v21 = vrot.slane %v12237_v15, 1 }
 0x8ce   : > { %v11434_v59 = vadd.f32 %v11317_v13, %v11093_v42  ;;  %v11094_v57 = vadd.f32 %v17562_v52, %v11041_v54  ;;  %v12241_v42 = vunpack.c.h.bf16 %v12276_v39  ;;  %v11329_v4 = vsel %vm1329_vm1, %v11326_v10, %v11328_v22  ;;  %v12279_v10 = vld [vmem:[%s15702_s12 + $0xb8] sm:$0xff]  }
 0x8cf   : > { %v11432_v7 = vadd.f32 %v11313_v47, %v11091_v48  ;;  %v11092_v45 = vadd.f32 %v17562_v52, %v11039_v19  ;;  %v12244_v48 = vunpack.c.l.bf16 %v12277_v3  ;;  %v11335_v38 = vsel %vm1329_vm1, %v11332_v50, %v11334_v21 }
 0x8d0   : > { %v11482_v27 = vmax.f32 %v11434_v59, 0.0  ;;  %v11435_v35 = vadd.f32 %v11319_v26, %v11094_v57  ;;  %v12240_v26 = vunpack.c.l.bf16 %v12276_v39  ;;  %v11331_v23 = vsel %vm1329_vm1, %v11328_v22, %v11330_v17 }
 0x8d1   : > { %v11480_v14 = vmax.f32 %v11432_v7, 0.0  ;;  %v11433_v53 = vadd.f32 %v11315_v2, %v11092_v45  ;;  %v13991_v11 = vpop.f32.mrb[28].mxu1  ;;  %v12245_v45 = vunpack.c.h.bf16 %v12277_v3  ;;  %v11338_v29 = vrot.slane %v12241_v42, 1 }
 0x8d2   : > { %11530 = vst [vmem:[%s17579_s26 + $0xd0] sm:$0xff] %v11482_v27  ;;  %v11483_v36 = vmax.f32 %v11435_v35, 0.0  ;;  %v11044_v9 = vmul.f32 %v13991_v11, %v17555_v24  ;;  %v10882_v32 = vpop.f32.mrb[29].mxu1  ;;  %v12278_v11 = vld [vmem:[%s15702_s12 + $0xb0] sm:$0xff]  }
 0x8d3   : > { %11528 = vst [vmem:[%s17579_s26 + $0xc0] sm:$0xff] %v11480_v14  ;;  %v11481_v49 = vmax.f32 %v11433_v53, 0.0  ;;  %v11042_v1 = vmul.f32 %v17555_v24, %v10882_v32  ;;  %v13992_v34 = vpop.f32.mrb[30].mxu1  ;;  %v11340_v14 = vrot.slane %v12244_v48, 1  ;;  %v11336_v53 = vrot.slane %v12240_v26, 1 }
 0x8d4   : > { %11531 = vst [vmem:[%s17579_s26 + $0xd8] sm:$0xff] %v11483_v36  ;;  %v11097_v51 = vadd.f32 %v17562_v52, %v11044_v9  ;;  %v11045_v8 = vmul.f32 %v13992_v34, %v17555_v24  ;;  %v10885_v44 = vpop.f32.mrb[31].mxu1  ;;  %v12249_v34 = vunpack.c.h.bf16 %v12278_v11 }
 0x8d5   : > { %11529 = vst [vmem:[%s17579_s26 + $0xc8] sm:$0xff] %v11481_v49  ;;  %v11095_v5 = vadd.f32 %v17562_v52, %v11042_v1  ;;  %v11043_v63 = vmul.f32 %v17555_v24, %v10885_v44  ;;  %v11342_v49 = vrot.slane %v12245_v45, 1  ;;  %v11341_v44 = vsel %vm1329_vm1, %v11338_v29, %v11340_v14 }
 0x8d6   : > { %v11438_v40 = vadd.f32 %v11325_v16, %v11097_v51  ;;  %v11098_v20 = vadd.f32 %v17562_v52, %v11045_v8  ;;  %v12252_v51 = vunpack.c.l.bf16 %v12279_v10  ;;  %v11337_v43 = vsel %vm1329_vm1, %v11334_v21, %v11336_v53 }
 0x8d7   : > { %v11436_v58 = vadd.f32 %v11321_v60, %v11095_v5  ;;  %v11096_v12 = vadd.f32 %v17562_v52, %v11043_v63  ;;  %v11343_v50 = vsel %vm1329_vm1, %v11340_v14, %v11342_v49 }
 0x8d8   : > { %v11486_v6 = vmax.f32 %v11438_v40, 0.0  ;;  %v11439_v0 = vadd.f32 %v11327_v28, %v11098_v20  ;;  %v11339_v40 = vsel %vm1329_vm1, %v11336_v53, %v11338_v29  ;;  %v12248_v20 = vunpack.c.l.bf16 %v12278_v11 }
 0x8d9   : > { %v11484_v13 = vmax.f32 %v11436_v58, 0.0  ;;  %v11437_v37 = vadd.f32 %v11323_v55, %v11096_v12  ;;  %v13995_v41 = vpop.f32.mrb[32].mxu1  ;;  %v12253_v12 = vunpack.c.h.bf16 %v12279_v10  ;;  %v11348_v22 = vrot.slane %v12252_v51, 1 }
 0x8da   : > { %11534 = vst [vmem:[%s17579_s26 + $0xf0] sm:$0xff] %v11486_v6  ;;  %v11487_v25 = vmax.f32 %v11439_v0, 0.0  ;;  %v11048_v46 = vmul.f32 %v13995_v41, %v17555_v24  ;;  %v10898_v56 = vpop.f32.mrb[33].mxu1  ;;  %v11346_v0 = vrot.slane %v12249_v34, 1  ;;  %v11344_v21 = vrot.slane %v12248_v20, 1 }
 0x8db   : > { %11532 = vst [vmem:[%s17579_s26 + $0xe0] sm:$0xff] %v11484_v13  ;;  %v11485_v47 = vmax.f32 %v11437_v37, 0.0  ;;  %v11046_v54 = vmul.f32 %v17555_v24, %v10898_v56  ;;  %v13996_v61 = vpop.f32.mrb[34].mxu1 }
 0x8dc   : > { %11535 = vst [vmem:[%s17579_s26 + $0xf8] sm:$0xff] %v11487_v25  ;;  %v11101_v19 = vadd.f32 %v17562_v52, %v11048_v46  ;;  %v11049_v59 = vmul.f32 %v13996_v61, %v17555_v24  ;;  %v10901_v57 = vpop.f32.mrb[35].mxu1  ;;  %v12280_v25 = vld [vmem:[%s15702_s12 + $0xc0] sm:$0xff]   ;;  %v11162_v46 = vld [vmem:[%s15702_s12 + $0xc8] sm:$0xf]  ;;  %v11349_v48 = vsel %vm1329_vm1, %v11346_v0, %v11348_v22  ;;  %v11345_v45 = vsel %vm1329_vm1, %v11342_v49, %v11344_v21 }
 0x8dd   : > { %11533 = vst [vmem:[%s17579_s26 + $0xe8] sm:$0xff] %v11485_v47  ;;  %v11099_v2 = vadd.f32 %v17562_v52, %v11046_v54  ;;  %v11047_v7 = vmul.f32 %v17555_v24, %v10901_v57  ;;  %v11350_v47 = vrot.slane %v12253_v12, 1  ;;  %v11347_v10 = vsel %vm1329_vm1, %v11344_v21, %v11346_v0 }
 0x8de   : > { %v11442_v62 = vadd.f32 %v11333_v30, %v11101_v19  ;;  %v11102_v33 = vadd.f32 %v17562_v52, %v11049_v59  ;;  %v11163_v19 = vld [vmem:[%s15702_s12 + $0xcc] sm:$0x1]  ;;  %s14781_s12 = smul.u32 6144, %s15538_s25  ;;  %s11553_s25 = scalar_lea.sflag [#allocation5], %s15698_s10 }
 0x8df   : > { %v11440_v27 = vadd.f32 %v11329_v4, %v11099_v2  ;;  %v11100_v35 = vadd.f32 %v17562_v52, %v11047_v7  ;;  %v12257_v2 = vunpack.c.h.bf16 %v12280_v25  ;;  %v11212_v14 = vunpack.c.l.bf16 %v11163_v19 }
 0x8e0   : > { %v11490_v36 = vmax.f32 %v11442_v62, 0.0  ;;  %v11443_v9 = vadd.f32 %v11335_v38, %v11102_v33  ;;  %v11211_v38 = vunpack.c.l.bf16 %v11162_v46  ;;  %s17782_s20 = scalar_lea.hbm %s17837_s6, %s14781_s12 }
 0x8e1   : > { %v11488_v32 = vmax.f32 %v11440_v27, 0.0  ;;  %v11441_v31 = vadd.f32 %v11331_v23, %v11100_v35  ;;  %v13999_v18 = vpop.f32.mrb[36].mxu1  ;;  %v12256_v23 = vunpack.c.l.bf16 %v12280_v25  ;;  %v11351_v27 = vsel %vm1329_vm1, %v11348_v22, %v11350_v47 }
 0x8e2   : > { %11538 = vst [vmem:[%s17579_s26 + $0x110] sm:$0xff] %v11490_v36  ;;  %v11491_v16 = vmax.f32 %v11443_v9, 0.0  ;;  %v11052_v1 = vmul.f32 %v13999_v18, %v17555_v24  ;;  %v10914_v60 = vpop.f32.mrb[37].mxu1  ;;  %v11358_v51 = vrot.slane %v11212_v14, 1 }
 0x8e3   : > { %11536 = vst [vmem:[%s17579_s26 + $0x100] sm:$0xff] %v11488_v32  ;;  %v11489_v8 = vmax.f32 %v11441_v31, 0.0  ;;  %v11050_v55 = vmul.f32 %v17555_v24, %v10914_v60  ;;  %v14000_v5 = vpop.f32.mrb[38].mxu1  ;;  %v11354_v32 = vrot.slane %v12257_v2, 1  ;;  %v11356_v31 = vrot.slane %v11211_v38, 1 }
 0x8e4   : > { %11539 = vst [vmem:[%s17579_s26 + $0x118] sm:$0xff] %v11491_v16  ;;  %v11105_v28 = vadd.f32 %v17562_v52, %v11052_v1  ;;  %v11053_v63 = vmul.f32 %v14000_v5, %v17555_v24  ;;  %v10917_v15 = vpop.f32.mrb[39].mxu1  ;;  %v11352_v16 = vrot.slane %v12256_v23, 1 }
 0x8e5   : > { %11537 = vst [vmem:[%s17579_s26 + $0x108] sm:$0xff] %v11489_v8  ;;  %v11103_v17 = vadd.f32 %v17562_v52, %v11050_v55  ;;  %v11051_v58 = vmul.f32 %v17555_v24, %v10917_v15  ;;  %v11357_v5 = vsel %vm1329_vm1, %v11354_v32, %v11356_v31 }
 0x8e6   : > { %v11446_v39 = vadd.f32 %v11341_v44, %v11105_v28  ;;  %v11106_v6 = vadd.f32 %v17562_v52, %v11053_v63  ;;  %v11355_v0 = vsel %vm1329_vm1, %v11352_v16, %v11354_v32 }
 0x8e7   : > { %v11444_v3 = vadd.f32 %v11337_v43, %v11103_v17  ;;  %v11104_v13 = vadd.f32 %v17562_v52, %v11051_v58  ;;  %v11359_v58 = vsel %vm1329_vm1, %v11356_v31, %v11358_v51 }
 0x8e8   : > { %v11494_v37 = vmax.f32 %v11446_v39, 0.0  ;;  %v11447_v41 = vadd.f32 %v11343_v50, %v11106_v6 }
 0x8e9   : > { %v11492_v30 = vmax.f32 %v11444_v3, 0.0  ;;  %v11445_v56 = vadd.f32 %v11339_v40, %v11104_v13  ;;  %v14003_v42 = vpop.f32.mrb[40].mxu1  ;;  %v11353_v40 = vsel %vm1329_vm1, %v11350_v47, %v11352_v16 }
 0x8ea   : > { %11542 = vst [vmem:[%s17579_s26 + $0x130] sm:$0xff] %v11494_v37  ;;  %v11495_v54 = vmax.f32 %v11447_v41, 0.0  ;;  %v11056_v61 = vmul.f32 %v14003_v42, %v17555_v24  ;;  %v10930_v26 = vpop.f32.mrb[41].mxu1 }
 0x8eb   : > { %11540 = vst [vmem:[%s17579_s26 + $0x120] sm:$0xff] %v11492_v30  ;;  %v11493_v4 = vmax.f32 %v11445_v56, 0.0  ;;  %v11054_v59 = vmul.f32 %v17555_v24, %v10930_v26  ;;  %v14004_v57 = vpop.f32.mrb[42].mxu1 }
 0x8ec   : > { %11543 = vst [vmem:[%s17579_s26 + $0x138] sm:$0xff] %v11495_v54  ;;  %v11109_v7 = vadd.f32 %v17562_v52, %v11056_v61  ;;  %v11057_v62 = vmul.f32 %v14004_v57, %v17555_v24  ;;  %v10933_v33 = vpop.f32.mrb[43].mxu1 }
 0x8ed   : > { %11541 = vst [vmem:[%s17579_s26 + $0x128] sm:$0xff] %v11493_v4  ;;  %v11107_v29 = vadd.f32 %v17562_v52, %v11054_v59  ;;  %v11055_v35 = vmul.f32 %v17555_v24, %v10933_v33 }
 0x8ee   : > { %v11450_v53 = vadd.f32 %v11349_v48, %v11109_v7  ;;  %v11110_v11 = vadd.f32 %v17562_v52, %v11057_v62 }
 0x8ef   : > { %v11448_v36 = vadd.f32 %v11345_v45, %v11107_v29  ;;  %v11108_v9 = vadd.f32 %v17562_v52, %v11055_v35 }
 0x8f0   : > { %v11498_v18 = vmax.f32 %v11450_v53, 0.0  ;;  %v11451_v49 = vadd.f32 %v11351_v27, %v11110_v11 }
 0x8f1   : > { %v11496_v1 = vmax.f32 %v11448_v36, 0.0  ;;  %v11449_v60 = vadd.f32 %v11347_v10, %v11108_v9  ;;  %v14007_v34 = vpop.f32.mrb[44].mxu1 }
 0x8f2   : > { %11546 = vst [vmem:[%s17579_s26 + $0x150] sm:$0xff] %v11498_v18  ;;  %v11499_v8 = vmax.f32 %v11451_v49, 0.0  ;;  %v11060_v44 = vmul.f32 %v14007_v34, %v17555_v24  ;;  %v10946_v55 = vpop.f32.mrb[45].mxu1 }
 0x8f3   : > { %11544 = vst [vmem:[%s17579_s26 + $0x140] sm:$0xff] %v11496_v1  ;;  %v11497_v43 = vmax.f32 %v11449_v60, 0.0  ;;  %v11058_v28 = vmul.f32 %v17555_v24, %v10946_v55  ;;  %v14008_v63 = vpop.f32.mrb[46].mxu1 }
 0x8f4   : > { %11547 = vst [vmem:[%s17579_s26 + $0x158] sm:$0xff] %v11499_v8  ;;  %v11113_v15 = vadd.f32 %v17562_v52, %v11060_v44  ;;  %v11061_v20 = vmul.f32 %v14008_v63, %v17555_v24  ;;  %v10949_v17 = vpop.f32.mrb[47].mxu1 }
 0x8f5   : > { %11545 = vst [vmem:[%s17579_s26 + $0x148] sm:$0xff] %v11497_v43  ;;  %v11111_v50 = vadd.f32 %v17562_v52, %v11058_v28  ;;  %v11059_v12 = vmul.f32 %v17555_v24, %v10949_v17 }
 0x8f6   : > { %v11454_v39 = vadd.f32 %v11357_v5, %v11113_v15  ;;  %v11114_v6 = vadd.f32 %v17562_v52, %v11061_v20 }
 0x8f7   : > { %v11452_v22 = vadd.f32 %v11353_v40, %v11111_v50  ;;  %v11112_v3 = vadd.f32 %v17562_v52, %v11059_v12 }
 0x8f8   : > { %v11502_v13 = vmax.f32 %v11454_v39, 0.0  ;;  %v11455_v37 = vadd.f32 %v11359_v58, %v11114_v6 }
 0x8f9   : > { %v11500_v41 = vmax.f32 %v11452_v22, 0.0  ;;  %v11453_v21 = vadd.f32 %v11355_v0, %v11112_v3 }
 0x8fa   : > { %11550 = vst [vmem:[%s17579_s26 + $0x170] sm:$0xff] %v11502_v13  ;;  %v11503_v24 = vmax.f32 %v11455_v37, 0.0 }
 0x8fb   : > { %11548 = vst [vmem:[%s17579_s26 + $0x160] sm:$0xff] %v11500_v41  ;;  %v11501_v25 = vmax.f32 %v11453_v21, 0.0 }
 0x8fc   : > { %11551 = vst [vmem:[%s17579_s26 + $0x178] sm:$0xff] %v11503_v24 }
 0x8fd   : > { %11549 = vst [vmem:[%s17579_s26 + $0x168] sm:$0xff] %v11501_v25 }
 0x8fe   : > { %15414 = shalt.err (!%p15411_p1)
}
 0x8ff   : > { %s15415_s29 = scalar_lea.hbm %s17782_s20, 6144  ;;  %s15419_s18 = scalar_lea.hbm %s17837_s6, 12288 }
 0x900   : > { %p15416_p13 = scmp.ne.s32.totalorder %s17782_s20, %s15415_s29  ;;  %p15420_p4 = scmp.lt.u32.totalorder %s17782_s20, %s17837_s6 }
 0x901   : > { %p15421_p5 = scmp.lt.u32.totalorder %s15419_s18, %s15415_s29  ;;  %p15423_p11 = scmp.lt.u32.totalorder %s15415_s29, %s17782_s20 }
 0x902   : > { %p15417_p6 = pnand %p15416_p13, %p17956_p0 }
 0x903   : > { %p15422_p8 = por %p15421_p5, %p15420_p4 }
 0x904   : > { %p15418_p10 = pneg %p15417_p6 }
 0x905   : > { %p15424_p2 = por %p15423_p11, %p15422_p8 }
 0x907   : > { %p15425_p3 = pnand %p15424_p2, %p15418_p10 }
 0x909   : > { %15428 = shalt.err (!%p15425_p3)
}
 0x90a   : > { %s15480_s17 = smov 128   ;;  %s15481_s19 = smov 8  }
 0x90b   : > { %14792 = dma.vmem_to_hbm [thread:$0]  (%p17956_p0), %s17785_s13, 6144, %s17782_s20, %s11553_s25, %s15480_s17, %s15480_s17, %s15481_s19  }
 0x90c PF: > { %s11581_s30 = sand.u32 1, %s15459_s21   ;;  %p17957_p7 = scmp.ne.s32.totalorder %s17861_s28, 0 }
 0x90d   : > { %p17958_p9 = scmp.ge.s32.totalorder %s15471_s24, 2  ;;  %s11582_s15 = scalar_lea.sflag [#allocation5], %s11581_s30 }
 0x90f   : > { %p14806_p12 = pnand %p17958_p9, %p17957_p7 }
 0x911   : > { %15454 = dma.done.wait (!%p14806_p12), %s11582_s15, 6144  }
 0x912   : > { %15456 = vsyncadd (!%p14806_p12), %s11582_s15, 4294961152  ;;  %p20_p1 = scmp.ge.s32.totalorder %s15633_s8, 4   ;;  %s17959_s21 = smov %s15463_s22 }
 0x913   : > { %s17960_s22 = smov %s15467_s23  ;;  %s17961_s23 = smov %s15649_s11 }
 0x914   : > { %s17962_s24 = smov %s15633_s8  ;;  %22 = sbr.rel (!%p20_p1) target bundleno = 6 (0x6), region = 113 }
 0x91b   :  { %11587 = vsyncpa [#allocation4], 1 }
 0x91c   :  { %11589 = vsyncpa [#allocation4 + $0x1], 1 }
 0x91d   :  { %11590 = vsyncpa [#allocation7], 1 }
 0x91e   :  { %11591 = vsyncpa [#allocation5], 1 }
 0x91f   :  { %11593 = vsyncpa [#allocation5 + $0x1], 1 }

</bundles_post_ra>
